<compile_context>
chip_gen: v7x
topology: tpu7x:2x2x1
jax: 0.10.0
libtpu: 0.0.40
codegen_flags: <defaults>
</compile_context>

<pallas_src>
import jax
import jax.numpy as jnp
from jax.experimental import pallas as pl
from jax.experimental.pallas import tpu as pltpu

EPS_BN = 1e-5      # torch.nn.BatchNorm1d default eps
EPS_NORM = 1e-12   # torch.nn.functional.normalize default eps

_VMEM = pl.BlockSpec(memory_space=pltpu.MemorySpace.VMEM)
_SMEM = pl.BlockSpec(memory_space=pltpu.MemorySpace.SMEM)


def _vmem_limit():
    """VMEM request with headroom: ~48 MiB on v7x (64 MiB phys), ~100 MiB on v5e/v6e."""
    try:
        cap = int(pltpu.get_tpu_info().vmem_capacity_bytes)
        return max(32 << 20, min(cap - (16 << 20), 100 << 20))
    except Exception:
        return 48 << 20   # conservative default, safe on every generation


# ----------------------------- Pallas kernels ------------------------------

def _bn_prelu(h, gamma, beta, alpha):
    """BatchNorm1d (training batch stats, fp32) + PReLU."""
    mean = jnp.mean(h, axis=0, keepdims=True)
    var = jnp.mean((h - mean) ** 2, axis=0, keepdims=True)
    hn = (h - mean) * jax.lax.rsqrt(var + EPS_BN) * gamma + beta
    return jnp.where(hn >= 0.0, hn, alpha * hn)


def _l2_normalize_in_kernel(v):
    ss = jnp.sum(v * v, axis=-1, keepdims=True)
    return v * jax.lax.rsqrt(jnp.maximum(ss, EPS_NORM * EPS_NORM))


def make_fused_forward_kernel(num_layers):
    """Single fused kernel: student encoder + predictor + teacher encoder.

    Input ref layout (all VMEM unless noted):
      [0] A_hat (N,N) bf16, [1] X (N,F_in) bf16,
      then per student layer: w(bf16), b, gamma, beta   (4 refs each),
      then per teacher layer: w(bf16), b, gamma, beta   (4 refs each),
      then predictor: w1(bf16), b1, gamma, beta, w2(bf16), b2,
      then SMEM fp32 alphas[2L+1] (student L, teacher L, predictor).
    Outputs:
      student (N,rep) f32, s_norm (N,rep) bf16, p_norm (N,rep) bf16,
      t_norm (N,rep) f32.
    """
    def kernel(*refs):
        n_in = 2 + 8 * num_layers + 6 + 1
        in_refs = refs[:n_in]
        student_out, s_norm_out, p_norm_out, t_norm_out = refs[n_in:n_in + 4]

        a_ref = in_refs[0]             # (N, N) bf16 normalized adjacency (read per use)
        x = in_refs[1][...]            # (N, F_in) bf16 features
        alphas = in_refs[n_in - 1]     # SMEM (2L+1,) f32 PReLU slopes

        def layer_refs(enc, li):
            o = 2 + 4 * (enc * num_layers + li)
            return in_refs[o], in_refs[o + 1], in_refs[o + 2], in_refs[o + 3]

        hs_bf = x                       # student activations (bf16)
        ht_bf = x                       # teacher activations (bf16)
        s32 = None
        t32 = None
        for li in range(num_layers):
            ws, bs, gs, bes = layer_refs(0, li)
            wt, bt, gt, bet = layer_refs(1, li)
            f_out = ws.shape[1]
            # XW for both towers (bf16 MXU, fp32 accumulate)
            xw_s = jnp.dot(hs_bf, ws[...], preferred_element_type=jnp.float32)
            xw_t = jnp.dot(ht_bf, wt[...], preferred_element_type=jnp.float32)
            # single shared A_hat pass over [xw_s | xw_t]
            xw_cat = jnp.concatenate([xw_s, xw_t], axis=1).astype(jnp.bfloat16)
            agg = jnp.dot(a_ref[...], xw_cat,
                          preferred_element_type=jnp.float32)
            agg_s = agg[:, :f_out] + bs[...]
            agg_t = agg[:, f_out:] + bt[...]
            s32 = _bn_prelu(agg_s, gs[...], bes[...], alphas[li])
            t32 = _bn_prelu(agg_t, gt[...], bet[...], alphas[num_layers + li])
            hs_bf = s32.astype(jnp.bfloat16)
            ht_bf = t32.astype(jnp.bfloat16)

        student_out[...] = s32

        # predictor: Linear -> BN -> PReLU -> Linear
        po = 2 + 8 * num_layers
        pw1, pb1, pg, pbe, pw2, pb2 = in_refs[po:po + 6]
        h1 = jnp.dot(hs_bf, pw1[...],
                     preferred_element_type=jnp.float32) + pb1[...]
        h1 = _bn_prelu(h1, pg[...], pbe[...], alphas[2 * num_layers])
        pred = jnp.dot(h1.astype(jnp.bfloat16), pw2[...],
                       preferred_element_type=jnp.float32) + pb2[...]

        # normalized outputs (rsqrt -> EUP slot, essentially free)
        s_norm_out[...] = _l2_normalize_in_kernel(s32).astype(jnp.bfloat16)
        p_norm_out[...] = _l2_normalize_in_kernel(pred).astype(jnp.bfloat16)
        t_norm_out[...] = _l2_normalize_in_kernel(t32)

    return kernel


def similarity_kernel(s_ref, tT_ref, o_ref):
    """Row tile of: normalize(student) @ normalize(teacher)^T + 10*I.

    tT_ref is the pre-transposed (d, N) teacher so the matmul is a plain dot.
    The diagonal boost only touches the (tm, tm) sub-block of this tile.
    """
    sim = jnp.dot(s_ref[...], tT_ref[...], preferred_element_type=jnp.float32)
    o_ref[...] = sim
    tm = s_ref.shape[0]
    col0 = pl.multiple_of(pl.program_id(0) * tm, tm)
    r = jax.lax.broadcasted_iota(jnp.int32, (tm, tm), 0)
    c = jax.lax.broadcasted_iota(jnp.int32, (tm, tm), 1)
    boost = jnp.where(r == c, jnp.float32(10.0), jnp.float32(0.0))
    o_ref[:, pl.ds(col0, tm)] = o_ref[:, pl.ds(col0, tm)] + boost


def pair_loss_kernel(p_ref, tT_ref, m_ref, part_ref):
    """BYOL pair loss, row-tiled partial sums (megacore-parallel grid axis).

    Accumulates sum(m*cos) and sum(m) for this tile; the 2-2*cos epilogue and
    the final normalization happen once in XLA.  p_ref is already the
    L2-normalized prediction (bf16); m_ref holds the combined mask M + M^T.
    """
    cos = jnp.dot(p_ref[...], tT_ref[...], preferred_element_type=jnp.float32)
    m = m_ref[...].astype(jnp.float32)
    wsum = jnp.sum(m * cos)
    msum = jnp.sum(m)
    lanes = jax.lax.broadcasted_iota(jnp.int32, (1, 8, 128), 2)
    part_ref[...] = jnp.where(lanes < 64, wsum, msum)   # lane-dense partials


# ----------------------------- kernel wrappers ------------------------------

def _row_tile(n, target=512):
    tm = min(target, n)
    while tm > 8 and n % tm != 0:
        tm //= 2
    return tm if n % tm == 0 else n


def fused_forward(params, a_norm, x):
    student_layers = params["student_encoder"]
    teacher_layers = params["teacher_encoder"]
    pred_p = params["predictor"]
    num_layers = len(student_layers)
    n = x.shape[0]
    rep = student_layers[-1]["w"].shape[1]
    bf = jnp.bfloat16

    inputs = [a_norm.astype(bf), x.astype(bf)]
    for layers in (student_layers, teacher_layers):
        for layer in layers:
            inputs += [layer["w"].astype(bf),
                       layer["b"].reshape(1, -1).astype(jnp.float32),
                       layer["gamma"].reshape(1, -1).astype(jnp.float32),
                       layer["beta"].reshape(1, -1).astype(jnp.float32)]
    inputs += [pred_p["w1"].astype(bf),
               pred_p["b1"].reshape(1, -1).astype(jnp.float32),
               pred_p["gamma"].reshape(1, -1).astype(jnp.float32),
               pred_p["beta"].reshape(1, -1).astype(jnp.float32),
               pred_p["w2"].astype(bf),
               pred_p["b2"].reshape(1, -1).astype(jnp.float32)]
    alphas = [l["alpha"] for l in student_layers] + \
             [l["alpha"] for l in teacher_layers] + [pred_p["alpha"]]
    inputs.append(jnp.stack(alphas).astype(jnp.float32))

    in_specs = [_VMEM] * (len(inputs) - 1) + [_SMEM]
    out_shape = (jax.ShapeDtypeStruct((n, rep), jnp.float32),   # student
                 jax.ShapeDtypeStruct((n, rep), jnp.bfloat16),  # s_norm
                 jax.ShapeDtypeStruct((n, rep), jnp.bfloat16),  # p_norm
                 jax.ShapeDtypeStruct((n, rep), jnp.float32))   # t_norm

    # rough FLOP / byte hint for the XLA scheduler
    flops = 0
    f_prev = x.shape[1]
    for layer in student_layers:
        f_out = layer["w"].shape[1]
        flops += 2 * (2 * n * f_prev * f_out)   # student + teacher XW
        flops += 2 * (n * n * 2 * f_out)        # one A @ [xw_s | xw_t]
        f_prev = f_out
    ph = pred_p["w1"].shape[1]
    flops += 2 * (n * rep * ph + n * ph * rep)
    bytes_accessed = 2 * n * n + 2 * n * x.shape[1] + 12 * n * rep

    return pl.pallas_call(
        make_fused_forward_kernel(num_layers),
        out_shape=out_shape,
        in_specs=in_specs,
        out_specs=(_VMEM, _VMEM, _VMEM, _VMEM),
        compiler_params=pltpu.CompilerParams(vmem_limit_bytes=_vmem_limit()),
        cost_estimate=pl.CostEstimate(flops=int(flops),
                                      transcendentals=int(8 * n),
                                      bytes_accessed=int(bytes_accessed)),
    )(*inputs)


def similarity(s_norm_bf16, tT_bf16, tm):
    n, d = s_norm_bf16.shape
    return pl.pallas_call(
        similarity_kernel,
        out_shape=jax.ShapeDtypeStruct((n, n), jnp.float32),
        grid=(n // tm,),
        in_specs=[pl.BlockSpec((tm, d), lambda i: (i, 0)),
                  pl.BlockSpec((d, n), lambda i: (0, 0))],
        out_specs=pl.BlockSpec((tm, n), lambda i: (i, 0)),
        compiler_params=pltpu.CompilerParams(
            dimension_semantics=("parallel",),
            vmem_limit_bytes=_vmem_limit()),
    )(s_norm_bf16, tT_bf16)


def pair_loss(p_norm_bf16, tT_bf16, msum_bf16, tm):
    n, d = p_norm_bf16.shape
    n_tiles = n // tm
    parts = pl.pallas_call(
        pair_loss_kernel,
        out_shape=jax.ShapeDtypeStruct((n_tiles, 8, 128), jnp.float32),
        grid=(n_tiles,),
        in_specs=[pl.BlockSpec((tm, d), lambda i: (i, 0)),
                  pl.BlockSpec((d, n), lambda i: (0, 0)),
                  pl.BlockSpec((tm, n), lambda i: (i, 0))],
        out_specs=pl.BlockSpec((1, 8, 128), lambda i: (i, 0, 0)),
        compiler_params=pltpu.CompilerParams(
            dimension_semantics=("parallel",),
            vmem_limit_bytes=_vmem_limit()),
    )(p_norm_bf16, tT_bf16, msum_bf16)
    wsum = jnp.sum(parts[:, 0, 0])                  # sum((M+M^T) * cos)
    msum = jnp.sum(parts[:, 0, 64])                 # sum(M+M^T) == 2*|pos|
    cnt = jnp.maximum(msum * 0.5, 1.0)              # guard empty pos set
    return (2.0 * msum - 2.0 * wsum) / cnt          # sum((M+M^T)*(2-2cos))/|pos|


# --------------------------------- glue -------------------------------------

def gcn_normalized_adjacency(edge_index, n):
    # A_hat = A + I ; D^{-1/2} A_hat D^{-1/2}   (edge_weight = None -> ones)
    a = jnp.zeros((n, n), jnp.float32).at[edge_index[0], edge_index[1]].set(1.0)
    a = a + jnp.eye(n, dtype=jnp.float32)
    deg = jnp.sum(a, axis=1)
    dinv = jax.lax.rsqrt(deg)
    return a * dinv[:, None] * dinv[None, :]


def kmeans_labels(x, k, n_iter, seed):
    # TODO(synk): faiss.Kmeans replaced by plain-JAX Lloyd's iterations; faiss
    # seeding / internal details are not bit-reproducible.
    key = jax.random.PRNGKey(seed)
    idx = jax.random.choice(key, x.shape[0], shape=(k,), replace=False)
    cent = x[idx]
    for _ in range(n_iter):
        d2 = jnp.sum((x[:, None, :] - cent[None, :, :]) ** 2, axis=-1)
        lab = jnp.argmin(d2, axis=1)
        onehot = jax.nn.one_hot(lab, k, dtype=jnp.float32)
        counts = jnp.sum(onehot, axis=0)
        new_c = (onehot.T @ x) / jnp.maximum(counts[:, None], 1.0)
        cent = jnp.where(counts[:, None] > 0, new_c, cent)
    d2 = jnp.sum((x[:, None, :] - cent[None, :, :]) ** 2, axis=-1)
    return jnp.argmin(d2, axis=1)


def afsc_forward(params, x, edge_index, neighbor_index, *, topk, num_kmeans,
                 num_centroids, clus_num_iters):
    n = x.shape[0]
    a_norm = gcn_normalized_adjacency(edge_index, n)

    # one fused Pallas call: student encoder + predictor + teacher encoder,
    # emitting normalized bf16 student/pred and fp32 normalized teacher.
    student, s_norm_bf, p_norm_bf, t_norm = fused_forward(params, a_norm, x)

    # pre-transpose the teacher ONCE to (d, N) bf16; reused by both row-tiled
    # kernels so no per-tile layout work is needed inside the grids.
    t_T_bf = jnp.transpose(t_norm.astype(jnp.bfloat16))

    # adj sparse pattern (edge_weight is None -> ones at neighbor[0] indices)
    adj_mask = jnp.zeros((n, n), dtype=jnp.bool_)
    adj_mask = adj_mask.at[neighbor_index[0], neighbor_index[1]].set(True)

    tm = _row_tile(n)
    sim = similarity(s_norm_bf, t_T_bf, tm)

    # TODO(synk): top_k (sort) done in plain JAX; no clean Pallas equivalent.
    _, i_knn = jax.lax.top_k(sim, topk)
    rows = jnp.repeat(jnp.arange(n), topk)
    knn_mask = jnp.zeros((n, n), dtype=jnp.bool_)
    knn_mask = knn_mask.at[rows, i_knn.reshape(-1)].set(True)
    locality = knn_mask & adj_mask

    labels = jnp.stack(
        [kmeans_labels(t_norm, num_centroids, clus_num_iters, 1234 + s)
         for s in range(num_kmeans)], axis=0)
    same_cluster = jnp.any(labels[:, :, None] == labels[:, None, :], axis=0)
    globality = knn_mask & same_cluster

    # pos_ = locality + globality ; coalesced indices == union of nonzero slots
    # loss = mean over pos pairs of (L[i,j] + L[j,i]) == sum((M+M^T)*L)/|pos|
    pos_mask = (locality | globality).astype(jnp.float32)
    msum = (pos_mask + pos_mask.T).astype(jnp.bfloat16)   # single compact mask

    loss = pair_loss(p_norm_bf, t_T_bf, msum, tm)
    return student, loss


# ------------------------------ parameter init -------------------------------

def init_params(key, layer_config, pred_hid):
    keys = jax.random.split(key, 4 + 2 * len(layer_config))
    ki = 0
    layers = []
    for i in range(1, len(layer_config)):
        f_in, f_out = layer_config[i - 1], layer_config[i]
        w = jax.random.normal(keys[ki], (f_in, f_out), jnp.float32) / jnp.sqrt(float(f_in))
        ki += 1
        layers.append(dict(
            w=w,
            b=jnp.zeros((f_out,), jnp.float32),
            gamma=jnp.ones((f_out,), jnp.float32),
            beta=jnp.zeros((f_out,), jnp.float32),
            alpha=jnp.array(0.25, jnp.float32),   # PReLU default init
        ))
    rep = layer_config[-1]
    pred = dict(
        w1=jax.random.normal(keys[ki], (rep, pred_hid), jnp.float32) / jnp.sqrt(float(rep)),
        b1=jnp.zeros((pred_hid,), jnp.float32),
        gamma=jnp.ones((pred_hid,), jnp.float32),
        beta=jnp.zeros((pred_hid,), jnp.float32),
        alpha=jnp.array(0.25, jnp.float32),
        w2=jax.random.normal(keys[ki + 1], (pred_hid, rep), jnp.float32) / jnp.sqrt(float(pred_hid)),
        b2=jnp.zeros((rep,), jnp.float32),
    )
    # teacher is a true deepcopy of the student at init (independent arrays)
    teacher_layers = jax.tree_util.tree_map(jnp.copy, layers)
    return {
        "student_encoder": layers,
        "teacher_encoder": teacher_layers,
        "predictor": pred,
    }


# ----------------------------------- main ------------------------------------

if __name__ == "__main__":
    N, F_IN = 128, 16
    layer_config = [F_IN, 128, 128]   # lane-dense (128-wide) hidden / rep dims
    pred_hid = 128
    topk = 4
    num_kmeans = 2
    num_centroids = 8
    clus_num_iters = 5

    key = jax.random.PRNGKey(0)
    kx, kp = jax.random.split(key)
    x = jax.random.normal(kx, (N, F_IN), jnp.float32)

    # deterministic symmetric graph: ring + skip-2 edges, no self loops
    i = jnp.arange(N)
    src = jnp.concatenate([i, i, (i + 1) % N, (i + 2) % N])
    dst = jnp.concatenate([(i + 1) % N, (i + 2) % N, i, i])
    edge_index = jnp.stack([src, dst]).astype(jnp.int32)

    params = init_params(kp, layer_config, pred_hid)

    # `neighbor` arg of AFSC.forward: (indices, values); values unused when
    # edge_weight is None (ones pattern).
    neighbor = (edge_index, jnp.ones((edge_index.shape[1],), jnp.float32))

    student, loss = afsc_forward(
        params, x, edge_index, neighbor[0],
        topk=topk, num_kmeans=num_kmeans,
        num_centroids=num_centroids, clus_num_iters=clus_num_iters)

    jax.block_until_ready((student, loss))
    print("KERNEL_OK")
</pallas_src>

<mosaic_0001>
module attributes {stable_mosaic.version = 11 : i64} {
  func.func @kernel(%arg0: memref<128x128xbf16, #tpu.memory_space<vmem>>, %arg1: memref<128x16xbf16, #tpu.memory_space<vmem>>, %arg2: memref<16x128xbf16, #tpu.memory_space<vmem>>, %arg3: memref<1x128xf32, #tpu.memory_space<vmem>>, %arg4: memref<1x128xf32, #tpu.memory_space<vmem>>, %arg5: memref<1x128xf32, #tpu.memory_space<vmem>>, %arg6: memref<128x128xbf16, #tpu.memory_space<vmem>>, %arg7: memref<1x128xf32, #tpu.memory_space<vmem>>, %arg8: memref<1x128xf32, #tpu.memory_space<vmem>>, %arg9: memref<1x128xf32, #tpu.memory_space<vmem>>, %arg10: memref<16x128xbf16, #tpu.memory_space<vmem>>, %arg11: memref<1x128xf32, #tpu.memory_space<vmem>>, %arg12: memref<1x128xf32, #tpu.memory_space<vmem>>, %arg13: memref<1x128xf32, #tpu.memory_space<vmem>>, %arg14: memref<128x128xbf16, #tpu.memory_space<vmem>>, %arg15: memref<1x128xf32, #tpu.memory_space<vmem>>, %arg16: memref<1x128xf32, #tpu.memory_space<vmem>>, %arg17: memref<1x128xf32, #tpu.memory_space<vmem>>, %arg18: memref<128x128xbf16, #tpu.memory_space<vmem>>, %arg19: memref<1x128xf32, #tpu.memory_space<vmem>>, %arg20: memref<1x128xf32, #tpu.memory_space<vmem>>, %arg21: memref<1x128xf32, #tpu.memory_space<vmem>>, %arg22: memref<128x128xbf16, #tpu.memory_space<vmem>>, %arg23: memref<1x128xf32, #tpu.memory_space<vmem>>, %arg24: memref<5xf32, #tpu.memory_space<smem>>, %arg25: memref<128x128xf32, #tpu.memory_space<vmem>>, %arg26: memref<128x128xbf16, #tpu.memory_space<vmem>>, %arg27: memref<128x128xbf16, #tpu.memory_space<vmem>>, %arg28: memref<128x128xf32, #tpu.memory_space<vmem>>) attributes {dimension_semantics = [], scalar_prefetch = 0 : i64, scratch_operands = 0 : i64, tpu.core_type = #tpu.core_type<tc>} {
    %c0 = arith.constant 0 : index
    %c0_0 = arith.constant 0 : index
    %0 = vector.load %arg1[%c0, %c0_0] : memref<128x16xbf16, #tpu.memory_space<vmem>>, vector<128x16xbf16>
    %c0_1 = arith.constant 0 : index
    %c0_2 = arith.constant 0 : index
    %1 = vector.load %arg2[%c0_1, %c0_2] : memref<16x128xbf16, #tpu.memory_space<vmem>>, vector<16x128xbf16>
    %cst = arith.constant dense<0.000000e+00> : vector<128x128xf32>
    %2 = tpu.matmul %0, %1, %cst {dimension_numbers = #tpu.dot_dimension_numbers<[1], [0], [0], [1], [0, 0, 1, 1], [], []>} : vector<128x16xbf16>, vector<16x128xbf16>, vector<128x128xf32> -> vector<128x128xf32>
    %c0_3 = arith.constant 0 : index
    %c0_4 = arith.constant 0 : index
    %3 = vector.load %arg10[%c0_3, %c0_4] : memref<16x128xbf16, #tpu.memory_space<vmem>>, vector<16x128xbf16>
    %cst_5 = arith.constant dense<0.000000e+00> : vector<128x128xf32>
    %4 = tpu.matmul %0, %3, %cst_5 {dimension_numbers = #tpu.dot_dimension_numbers<[1], [0], [0], [1], [0, 0, 1, 1], [], []>} : vector<128x16xbf16>, vector<16x128xbf16>, vector<128x128xf32> -> vector<128x128xf32>
    %5 = tpu.concatenate %2, %4 in 1 : vector<128x128xf32>, vector<128x128xf32> -> vector<128x256xf32>
    %6 = arith.truncf %5 : vector<128x256xf32> to vector<128x256xbf16>
    %c0_6 = arith.constant 0 : index
    %c0_7 = arith.constant 0 : index
    %7 = vector.load %arg0[%c0_6, %c0_7] : memref<128x128xbf16, #tpu.memory_space<vmem>>, vector<128x128xbf16>
    %cst_8 = arith.constant dense<0.000000e+00> : vector<128x256xf32>
    %8 = tpu.matmul %7, %6, %cst_8 {dimension_numbers = #tpu.dot_dimension_numbers<[1], [0], [0], [1], [0, 0, 1, 1], [], []>} : vector<128x128xbf16>, vector<128x256xbf16>, vector<128x256xf32> -> vector<128x256xf32>
    %9 = vector.extract_strided_slice %8 {offsets = [0, 0], sizes = [128, 128], strides = [1, 1]} : vector<128x256xf32> to vector<128x128xf32>
    %c0_9 = arith.constant 0 : index
    %c0_10 = arith.constant 0 : index
    %10 = vector.load %arg3[%c0_9, %c0_10] : memref<1x128xf32, #tpu.memory_space<vmem>>, vector<1x128xf32>
    %11 = vector.broadcast %10 : vector<1x128xf32> to vector<128x128xf32>
    %12 = arith.addf %9, %11 : vector<128x128xf32>
    %13 = vector.extract_strided_slice %8 {offsets = [0, 128], sizes = [128, 128], strides = [1, 1]} : vector<128x256xf32> to vector<128x128xf32>
    %c0_11 = arith.constant 0 : index
    %c0_12 = arith.constant 0 : index
    %14 = vector.load %arg11[%c0_11, %c0_12] : memref<1x128xf32, #tpu.memory_space<vmem>>, vector<1x128xf32>
    %15 = vector.broadcast %14 : vector<1x128xf32> to vector<128x128xf32>
    %16 = arith.addf %13, %15 : vector<128x128xf32>
    %c0_13 = arith.constant 0 : index
    %c0_14 = arith.constant 0 : index
    %17 = vector.load %arg4[%c0_13, %c0_14] : memref<1x128xf32, #tpu.memory_space<vmem>>, vector<1x128xf32>
    %c0_15 = arith.constant 0 : index
    %c0_16 = arith.constant 0 : index
    %18 = vector.load %arg5[%c0_15, %c0_16] : memref<1x128xf32, #tpu.memory_space<vmem>>, vector<1x128xf32>
    %c0_17 = arith.constant 0 : index
    %19 = memref.load %arg24[%c0_17] : memref<5xf32, #tpu.memory_space<smem>>
    %cst_18 = arith.constant dense<0.000000e+00> : vector<128xf32>
    %20 = vector.multi_reduction <add>, %12, %cst_18 [0] : vector<128x128xf32> to vector<128xf32>
    %21 = vector.shape_cast %20 : vector<128xf32> to vector<1x128xf32>
    %cst_19 = arith.constant 1.280000e+02 : f32
    %22 = vector.broadcast %cst_19 : f32 to vector<1x128xf32>
    %23 = arith.divf %21, %22 : vector<1x128xf32>
    %24 = vector.broadcast %23 : vector<1x128xf32> to vector<128x128xf32>
    %25 = arith.subf %12, %24 : vector<128x128xf32>
    %26 = arith.mulf %25, %25 : vector<128x128xf32>
    %cst_20 = arith.constant dense<0.000000e+00> : vector<128xf32>
    %27 = vector.multi_reduction <add>, %26, %cst_20 [0] : vector<128x128xf32> to vector<128xf32>
    %28 = vector.shape_cast %27 : vector<128xf32> to vector<1x128xf32>
    %cst_21 = arith.constant 1.280000e+02 : f32
    %29 = vector.broadcast %cst_21 : f32 to vector<1x128xf32>
    %30 = arith.divf %28, %29 : vector<1x128xf32>
    %31 = vector.broadcast %23 : vector<1x128xf32> to vector<128x128xf32>
    %32 = arith.subf %12, %31 : vector<128x128xf32>
    %cst_22 = arith.constant 9.99999974E-6 : f32
    %33 = vector.broadcast %cst_22 : f32 to vector<1x128xf32>
    %34 = arith.addf %30, %33 : vector<1x128xf32>
    %35 = math.rsqrt %34 : vector<1x128xf32>
    %36 = vector.broadcast %35 : vector<1x128xf32> to vector<128x128xf32>
    %37 = arith.mulf %32, %36 : vector<128x128xf32>
    %38 = vector.broadcast %17 : vector<1x128xf32> to vector<128x128xf32>
    %39 = arith.mulf %37, %38 : vector<128x128xf32>
    %40 = vector.broadcast %18 : vector<1x128xf32> to vector<128x128xf32>
    %41 = arith.addf %39, %40 : vector<128x128xf32>
    %cst_23 = arith.constant 0.000000e+00 : f32
    %42 = vector.broadcast %cst_23 : f32 to vector<128x128xf32>
    %43 = arith.cmpf oge, %41, %42 : vector<128x128xf32>
    %44 = vector.broadcast %19 : f32 to vector<128x128xf32>
    %45 = arith.mulf %44, %41 : vector<128x128xf32>
    %46 = arith.select %43, %41, %45 : vector<128x128xi1>, vector<128x128xf32>
    %c0_24 = arith.constant 0 : index
    %c0_25 = arith.constant 0 : index
    %47 = vector.load %arg12[%c0_24, %c0_25] : memref<1x128xf32, #tpu.memory_space<vmem>>, vector<1x128xf32>
    %c0_26 = arith.constant 0 : index
    %c0_27 = arith.constant 0 : index
    %48 = vector.load %arg13[%c0_26, %c0_27] : memref<1x128xf32, #tpu.memory_space<vmem>>, vector<1x128xf32>
    %c2 = arith.constant 2 : index
    %49 = memref.load %arg24[%c2] : memref<5xf32, #tpu.memory_space<smem>>
    %cst_28 = arith.constant dense<0.000000e+00> : vector<128xf32>
    %50 = vector.multi_reduction <add>, %16, %cst_28 [0] : vector<128x128xf32> to vector<128xf32>
    %51 = vector.shape_cast %50 : vector<128xf32> to vector<1x128xf32>
    %cst_29 = arith.constant 1.280000e+02 : f32
    %52 = vector.broadcast %cst_29 : f32 to vector<1x128xf32>
    %53 = arith.divf %51, %52 : vector<1x128xf32>
    %54 = vector.broadcast %53 : vector<1x128xf32> to vector<128x128xf32>
    %55 = arith.subf %16, %54 : vector<128x128xf32>
    %56 = arith.mulf %55, %55 : vector<128x128xf32>
    %cst_30 = arith.constant dense<0.000000e+00> : vector<128xf32>
    %57 = vector.multi_reduction <add>, %56, %cst_30 [0] : vector<128x128xf32> to vector<128xf32>
    %58 = vector.shape_cast %57 : vector<128xf32> to vector<1x128xf32>
    %cst_31 = arith.constant 1.280000e+02 : f32
    %59 = vector.broadcast %cst_31 : f32 to vector<1x128xf32>
    %60 = arith.divf %58, %59 : vector<1x128xf32>
    %61 = vector.broadcast %53 : vector<1x128xf32> to vector<128x128xf32>
    %62 = arith.subf %16, %61 : vector<128x128xf32>
    %cst_32 = arith.constant 9.99999974E-6 : f32
    %63 = vector.broadcast %cst_32 : f32 to vector<1x128xf32>
    %64 = arith.addf %60, %63 : vector<1x128xf32>
    %65 = math.rsqrt %64 : vector<1x128xf32>
    %66 = vector.broadcast %65 : vector<1x128xf32> to vector<128x128xf32>
    %67 = arith.mulf %62, %66 : vector<128x128xf32>
    %68 = vector.broadcast %47 : vector<1x128xf32> to vector<128x128xf32>
    %69 = arith.mulf %67, %68 : vector<128x128xf32>
    %70 = vector.broadcast %48 : vector<1x128xf32> to vector<128x128xf32>
    %71 = arith.addf %69, %70 : vector<128x128xf32>
    %cst_33 = arith.constant 0.000000e+00 : f32
    %72 = vector.broadcast %cst_33 : f32 to vector<128x128xf32>
    %73 = arith.cmpf oge, %71, %72 : vector<128x128xf32>
    %74 = vector.broadcast %49 : f32 to vector<128x128xf32>
    %75 = arith.mulf %74, %71 : vector<128x128xf32>
    %76 = arith.select %73, %71, %75 : vector<128x128xi1>, vector<128x128xf32>
    %77 = arith.truncf %46 : vector<128x128xf32> to vector<128x128xbf16>
    %78 = arith.truncf %76 : vector<128x128xf32> to vector<128x128xbf16>
    %c0_34 = arith.constant 0 : index
    %c0_35 = arith.constant 0 : index
    %79 = vector.load %arg6[%c0_34, %c0_35] : memref<128x128xbf16, #tpu.memory_space<vmem>>, vector<128x128xbf16>
    %cst_36 = arith.constant dense<0.000000e+00> : vector<128x128xf32>
    %80 = tpu.matmul %77, %79, %cst_36 {dimension_numbers = #tpu.dot_dimension_numbers<[1], [0], [0], [1], [0, 0, 1, 1], [], []>} : vector<128x128xbf16>, vector<128x128xbf16>, vector<128x128xf32> -> vector<128x128xf32>
    %c0_37 = arith.constant 0 : index
    %c0_38 = arith.constant 0 : index
    %81 = vector.load %arg14[%c0_37, %c0_38] : memref<128x128xbf16, #tpu.memory_space<vmem>>, vector<128x128xbf16>
    %cst_39 = arith.constant dense<0.000000e+00> : vector<128x128xf32>
    %82 = tpu.matmul %78, %81, %cst_39 {dimension_numbers = #tpu.dot_dimension_numbers<[1], [0], [0], [1], [0, 0, 1, 1], [], []>} : vector<128x128xbf16>, vector<128x128xbf16>, vector<128x128xf32> -> vector<128x128xf32>
    %83 = tpu.concatenate %80, %82 in 1 : vector<128x128xf32>, vector<128x128xf32> -> vector<128x256xf32>
    %84 = arith.truncf %83 : vector<128x256xf32> to vector<128x256xbf16>
    %c0_40 = arith.constant 0 : index
    %c0_41 = arith.constant 0 : index
    %85 = vector.load %arg0[%c0_40, %c0_41] : memref<128x128xbf16, #tpu.memory_space<vmem>>, vector<128x128xbf16>
    %cst_42 = arith.constant dense<0.000000e+00> : vector<128x256xf32>
    %86 = tpu.matmul %85, %84, %cst_42 {dimension_numbers = #tpu.dot_dimension_numbers<[1], [0], [0], [1], [0, 0, 1, 1], [], []>} : vector<128x128xbf16>, vector<128x256xbf16>, vector<128x256xf32> -> vector<128x256xf32>
    %87 = vector.extract_strided_slice %86 {offsets = [0, 0], sizes = [128, 128], strides = [1, 1]} : vector<128x256xf32> to vector<128x128xf32>
    %c0_43 = arith.constant 0 : index
    %c0_44 = arith.constant 0 : index
    %88 = vector.load %arg7[%c0_43, %c0_44] : memref<1x128xf32, #tpu.memory_space<vmem>>, vector<1x128xf32>
    %89 = vector.broadcast %88 : vector<1x128xf32> to vector<128x128xf32>
    %90 = arith.addf %87, %89 : vector<128x128xf32>
    %91 = vector.extract_strided_slice %86 {offsets = [0, 128], sizes = [128, 128], strides = [1, 1]} : vector<128x256xf32> to vector<128x128xf32>
    %c0_45 = arith.constant 0 : index
    %c0_46 = arith.constant 0 : index
    %92 = vector.load %arg15[%c0_45, %c0_46] : memref<1x128xf32, #tpu.memory_space<vmem>>, vector<1x128xf32>
    %93 = vector.broadcast %92 : vector<1x128xf32> to vector<128x128xf32>
    %94 = arith.addf %91, %93 : vector<128x128xf32>
    %c0_47 = arith.constant 0 : index
    %c0_48 = arith.constant 0 : index
    %95 = vector.load %arg8[%c0_47, %c0_48] : memref<1x128xf32, #tpu.memory_space<vmem>>, vector<1x128xf32>
    %c0_49 = arith.constant 0 : index
    %c0_50 = arith.constant 0 : index
    %96 = vector.load %arg9[%c0_49, %c0_50] : memref<1x128xf32, #tpu.memory_space<vmem>>, vector<1x128xf32>
    %c1 = arith.constant 1 : index
    %97 = memref.load %arg24[%c1] : memref<5xf32, #tpu.memory_space<smem>>
    %cst_51 = arith.constant dense<0.000000e+00> : vector<128xf32>
    %98 = vector.multi_reduction <add>, %90, %cst_51 [0] : vector<128x128xf32> to vector<128xf32>
    %99 = vector.shape_cast %98 : vector<128xf32> to vector<1x128xf32>
    %cst_52 = arith.constant 1.280000e+02 : f32
    %100 = vector.broadcast %cst_52 : f32 to vector<1x128xf32>
    %101 = arith.divf %99, %100 : vector<1x128xf32>
    %102 = vector.broadcast %101 : vector<1x128xf32> to vector<128x128xf32>
    %103 = arith.subf %90, %102 : vector<128x128xf32>
    %104 = arith.mulf %103, %103 : vector<128x128xf32>
    %cst_53 = arith.constant dense<0.000000e+00> : vector<128xf32>
    %105 = vector.multi_reduction <add>, %104, %cst_53 [0] : vector<128x128xf32> to vector<128xf32>
    %106 = vector.shape_cast %105 : vector<128xf32> to vector<1x128xf32>
    %cst_54 = arith.constant 1.280000e+02 : f32
    %107 = vector.broadcast %cst_54 : f32 to vector<1x128xf32>
    %108 = arith.divf %106, %107 : vector<1x128xf32>
    %109 = vector.broadcast %101 : vector<1x128xf32> to vector<128x128xf32>
    %110 = arith.subf %90, %109 : vector<128x128xf32>
    %cst_55 = arith.constant 9.99999974E-6 : f32
    %111 = vector.broadcast %cst_55 : f32 to vector<1x128xf32>
    %112 = arith.addf %108, %111 : vector<1x128xf32>
    %113 = math.rsqrt %112 : vector<1x128xf32>
    %114 = vector.broadcast %113 : vector<1x128xf32> to vector<128x128xf32>
    %115 = arith.mulf %110, %114 : vector<128x128xf32>
    %116 = vector.broadcast %95 : vector<1x128xf32> to vector<128x128xf32>
    %117 = arith.mulf %115, %116 : vector<128x128xf32>
    %118 = vector.broadcast %96 : vector<1x128xf32> to vector<128x128xf32>
    %119 = arith.addf %117, %118 : vector<128x128xf32>
    %cst_56 = arith.constant 0.000000e+00 : f32
    %120 = vector.broadcast %cst_56 : f32 to vector<128x128xf32>
    %121 = arith.cmpf oge, %119, %120 : vector<128x128xf32>
    %122 = vector.broadcast %97 : f32 to vector<128x128xf32>
    %123 = arith.mulf %122, %119 : vector<128x128xf32>
    %124 = arith.select %121, %119, %123 : vector<128x128xi1>, vector<128x128xf32>
    %c0_57 = arith.constant 0 : index
    %c0_58 = arith.constant 0 : index
    %125 = vector.load %arg16[%c0_57, %c0_58] : memref<1x128xf32, #tpu.memory_space<vmem>>, vector<1x128xf32>
    %c0_59 = arith.constant 0 : index
    %c0_60 = arith.constant 0 : index
    %126 = vector.load %arg17[%c0_59, %c0_60] : memref<1x128xf32, #tpu.memory_space<vmem>>, vector<1x128xf32>
    %c3 = arith.constant 3 : index
    %127 = memref.load %arg24[%c3] : memref<5xf32, #tpu.memory_space<smem>>
    %cst_61 = arith.constant dense<0.000000e+00> : vector<128xf32>
    %128 = vector.multi_reduction <add>, %94, %cst_61 [0] : vector<128x128xf32> to vector<128xf32>
    %129 = vector.shape_cast %128 : vector<128xf32> to vector<1x128xf32>
    %cst_62 = arith.constant 1.280000e+02 : f32
    %130 = vector.broadcast %cst_62 : f32 to vector<1x128xf32>
    %131 = arith.divf %129, %130 : vector<1x128xf32>
    %132 = vector.broadcast %131 : vector<1x128xf32> to vector<128x128xf32>
    %133 = arith.subf %94, %132 : vector<128x128xf32>
    %134 = arith.mulf %133, %133 : vector<128x128xf32>
    %cst_63 = arith.constant dense<0.000000e+00> : vector<128xf32>
    %135 = vector.multi_reduction <add>, %134, %cst_63 [0] : vector<128x128xf32> to vector<128xf32>
    %136 = vector.shape_cast %135 : vector<128xf32> to vector<1x128xf32>
    %cst_64 = arith.constant 1.280000e+02 : f32
    %137 = vector.broadcast %cst_64 : f32 to vector<1x128xf32>
    %138 = arith.divf %136, %137 : vector<1x128xf32>
    %139 = vector.broadcast %131 : vector<1x128xf32> to vector<128x128xf32>
    %140 = arith.subf %94, %139 : vector<128x128xf32>
    %cst_65 = arith.constant 9.99999974E-6 : f32
    %141 = vector.broadcast %cst_65 : f32 to vector<1x128xf32>
    %142 = arith.addf %138, %141 : vector<1x128xf32>
    %143 = math.rsqrt %142 : vector<1x128xf32>
    %144 = vector.broadcast %143 : vector<1x128xf32> to vector<128x128xf32>
    %145 = arith.mulf %140, %144 : vector<128x128xf32>
    %146 = vector.broadcast %125 : vector<1x128xf32> to vector<128x128xf32>
    %147 = arith.mulf %145, %146 : vector<128x128xf32>
    %148 = vector.broadcast %126 : vector<1x128xf32> to vector<128x128xf32>
    %149 = arith.addf %147, %148 : vector<128x128xf32>
    %cst_66 = arith.constant 0.000000e+00 : f32
    %150 = vector.broadcast %cst_66 : f32 to vector<128x128xf32>
    %151 = arith.cmpf oge, %149, %150 : vector<128x128xf32>
    %152 = vector.broadcast %127 : f32 to vector<128x128xf32>
    %153 = arith.mulf %152, %149 : vector<128x128xf32>
    %154 = arith.select %151, %149, %153 : vector<128x128xi1>, vector<128x128xf32>
    %155 = arith.truncf %124 : vector<128x128xf32> to vector<128x128xbf16>
    %c0_67 = arith.constant 0 : index
    %c0_68 = arith.constant 0 : index
    %156 = vector.load %arg25[%c0_67, %c0_68] : memref<128x128xf32, #tpu.memory_space<vmem>>, vector<128x128xf32>
    tpu.vector_store %arg25[%c0_67, %c0_68], %124 {strides = array<i32>} : memref<128x128xf32, #tpu.memory_space<vmem>>, vector<128x128xf32>,
    %c0_69 = arith.constant 0 : index
    %c0_70 = arith.constant 0 : index
    %157 = vector.load %arg18[%c0_69, %c0_70] : memref<128x128xbf16, #tpu.memory_space<vmem>>, vector<128x128xbf16>
    %cst_71 = arith.constant dense<0.000000e+00> : vector<128x128xf32>
    %158 = tpu.matmul %155, %157, %cst_71 {dimension_numbers = #tpu.dot_dimension_numbers<[1], [0], [0], [1], [0, 0, 1, 1], [], []>} : vector<128x128xbf16>, vector<128x128xbf16>, vector<128x128xf32> -> vector<128x128xf32>
    %c0_72 = arith.constant 0 : index
    %c0_73 = arith.constant 0 : index
    %159 = vector.load %arg19[%c0_72, %c0_73] : memref<1x128xf32, #tpu.memory_space<vmem>>, vector<1x128xf32>
    %160 = vector.broadcast %159 : vector<1x128xf32> to vector<128x128xf32>
    %161 = arith.addf %158, %160 : vector<128x128xf32>
    %c0_74 = arith.constant 0 : index
    %c0_75 = arith.constant 0 : index
    %162 = vector.load %arg20[%c0_74, %c0_75] : memref<1x128xf32, #tpu.memory_space<vmem>>, vector<1x128xf32>
    %c0_76 = arith.constant 0 : index
    %c0_77 = arith.constant 0 : index
    %163 = vector.load %arg21[%c0_76, %c0_77] : memref<1x128xf32, #tpu.memory_space<vmem>>, vector<1x128xf32>
    %c4 = arith.constant 4 : index
    %164 = memref.load %arg24[%c4] : memref<5xf32, #tpu.memory_space<smem>>
    %cst_78 = arith.constant dense<0.000000e+00> : vector<128xf32>
    %165 = vector.multi_reduction <add>, %161, %cst_78 [0] : vector<128x128xf32> to vector<128xf32>
    %166 = vector.shape_cast %165 : vector<128xf32> to vector<1x128xf32>
    %cst_79 = arith.constant 1.280000e+02 : f32
    %167 = vector.broadcast %cst_79 : f32 to vector<1x128xf32>
    %168 = arith.divf %166, %167 : vector<1x128xf32>
    %169 = vector.broadcast %168 : vector<1x128xf32> to vector<128x128xf32>
    %170 = arith.subf %161, %169 : vector<128x128xf32>
    %171 = arith.mulf %170, %170 : vector<128x128xf32>
    %cst_80 = arith.constant dense<0.000000e+00> : vector<128xf32>
    %172 = vector.multi_reduction <add>, %171, %cst_80 [0] : vector<128x128xf32> to vector<128xf32>
    %173 = vector.shape_cast %172 : vector<128xf32> to vector<1x128xf32>
    %cst_81 = arith.constant 1.280000e+02 : f32
    %174 = vector.broadcast %cst_81 : f32 to vector<1x128xf32>
    %175 = arith.divf %173, %174 : vector<1x128xf32>
    %176 = vector.broadcast %168 : vector<1x128xf32> to vector<128x128xf32>
    %177 = arith.subf %161, %176 : vector<128x128xf32>
    %cst_82 = arith.constant 9.99999974E-6 : f32
    %178 = vector.broadcast %cst_82 : f32 to vector<1x128xf32>
    %179 = arith.addf %175, %178 : vector<1x128xf32>
    %180 = math.rsqrt %179 : vector<1x128xf32>
    %181 = vector.broadcast %180 : vector<1x128xf32> to vector<128x128xf32>
    %182 = arith.mulf %177, %181 : vector<128x128xf32>
    %183 = vector.broadcast %162 : vector<1x128xf32> to vector<128x128xf32>
    %184 = arith.mulf %182, %183 : vector<128x128xf32>
    %185 = vector.broadcast %163 : vector<1x128xf32> to vector<128x128xf32>
    %186 = arith.addf %184, %185 : vector<128x128xf32>
    %cst_83 = arith.constant 0.000000e+00 : f32
    %187 = vector.broadcast %cst_83 : f32 to vector<128x128xf32>
    %188 = arith.cmpf oge, %186, %187 : vector<128x128xf32>
    %189 = vector.broadcast %164 : f32 to vector<128x128xf32>
    %190 = arith.mulf %189, %186 : vector<128x128xf32>
    %191 = arith.select %188, %186, %190 : vector<128x128xi1>, vector<128x128xf32>
    %192 = arith.truncf %191 : vector<128x128xf32> to vector<128x128xbf16>
    %c0_84 = arith.constant 0 : index
    %c0_85 = arith.constant 0 : index
    %193 = vector.load %arg22[%c0_84, %c0_85] : memref<128x128xbf16, #tpu.memory_space<vmem>>, vector<128x128xbf16>
    %cst_86 = arith.constant dense<0.000000e+00> : vector<128x128xf32>
    %194 = tpu.matmul %192, %193, %cst_86 {dimension_numbers = #tpu.dot_dimension_numbers<[1], [0], [0], [1], [0, 0, 1, 1], [], []>} : vector<128x128xbf16>, vector<128x128xbf16>, vector<128x128xf32> -> vector<128x128xf32>
    %c0_87 = arith.constant 0 : index
    %c0_88 = arith.constant 0 : index
    %195 = vector.load %arg23[%c0_87, %c0_88] : memref<1x128xf32, #tpu.memory_space<vmem>>, vector<1x128xf32>
    %196 = vector.broadcast %195 : vector<1x128xf32> to vector<128x128xf32>
    %197 = arith.addf %194, %196 : vector<128x128xf32>
    %198 = arith.mulf %124, %124 : vector<128x128xf32>
    %cst_89 = arith.constant dense<0.000000e+00> : vector<128xf32>
    %199 = vector.multi_reduction <add>, %198, %cst_89 [1] : vector<128x128xf32> to vector<128xf32>
    %200 = vector.shape_cast %199 : vector<128xf32> to vector<128x1xf32>
    %cst_90 = arith.constant 1.000000e-24 : f32
    %201 = vector.broadcast %cst_90 : f32 to vector<128x1xf32>
    %202 = arith.maximumf %200, %201 : vector<128x1xf32>
    %203 = math.rsqrt %202 : vector<128x1xf32>
    %204 = vector.broadcast %203 : vector<128x1xf32> to vector<128x128xf32>
    %205 = arith.mulf %124, %204 : vector<128x128xf32>
    %206 = arith.truncf %205 : vector<128x128xf32> to vector<128x128xbf16>
    %c0_91 = arith.constant 0 : index
    %c0_92 = arith.constant 0 : index
    %207 = vector.load %arg26[%c0_91, %c0_92] : memref<128x128xbf16, #tpu.memory_space<vmem>>, vector<128x128xbf16>
    tpu.vector_store %arg26[%c0_91, %c0_92], %206 {strides = array<i32>} : memref<128x128xbf16, #tpu.memory_space<vmem>>, vector<128x128xbf16>,
    %208 = arith.mulf %197, %197 : vector<128x128xf32>
    %cst_93 = arith.constant dense<0.000000e+00> : vector<128xf32>
    %209 = vector.multi_reduction <add>, %208, %cst_93 [1] : vector<128x128xf32> to vector<128xf32>
    %210 = vector.shape_cast %209 : vector<128xf32> to vector<128x1xf32>
    %cst_94 = arith.constant 1.000000e-24 : f32
    %211 = vector.broadcast %cst_94 : f32 to vector<128x1xf32>
    %212 = arith.maximumf %210, %211 : vector<128x1xf32>
    %213 = math.rsqrt %212 : vector<128x1xf32>
    %214 = vector.broadcast %213 : vector<128x1xf32> to vector<128x128xf32>
    %215 = arith.mulf %197, %214 : vector<128x128xf32>
    %216 = arith.truncf %215 : vector<128x128xf32> to vector<128x128xbf16>
    %c0_95 = arith.constant 0 : index
    %c0_96 = arith.constant 0 : index
    %217 = vector.load %arg27[%c0_95, %c0_96] : memref<128x128xbf16, #tpu.memory_space<vmem>>, vector<128x128xbf16>
    tpu.vector_store %arg27[%c0_95, %c0_96], %216 {strides = array<i32>} : memref<128x128xbf16, #tpu.memory_space<vmem>>, vector<128x128xbf16>,
    %218 = arith.mulf %154, %154 : vector<128x128xf32>
    %cst_97 = arith.constant dense<0.000000e+00> : vector<128xf32>
    %219 = vector.multi_reduction <add>, %218, %cst_97 [1] : vector<128x128xf32> to vector<128xf32>
    %220 = vector.shape_cast %219 : vector<128xf32> to vector<128x1xf32>
    %cst_98 = arith.constant 1.000000e-24 : f32
    %221 = vector.broadcast %cst_98 : f32 to vector<128x1xf32>
    %222 = arith.maximumf %220, %221 : vector<128x1xf32>
    %223 = math.rsqrt %222 : vector<128x1xf32>
    %224 = vector.broadcast %223 : vector<128x1xf32> to vector<128x128xf32>
    %225 = arith.mulf %154, %224 : vector<128x128xf32>
    %c0_99 = arith.constant 0 : index
    %c0_100 = arith.constant 0 : index
    %226 = vector.load %arg28[%c0_99, %c0_100] : memref<128x128xf32, #tpu.memory_space<vmem>>, vector<128x128xf32>
    tpu.vector_store %arg28[%c0_99, %c0_100], %225 {strides = array<i32>} : memref<128x128xf32, #tpu.memory_space<vmem>>, vector<128x128xf32>,
    return
  }
}

</mosaic_0001>

<bundles_post_ra>
// kernel: tpu_custom_call.1
= control target key start
LH: loop header
LB: loop body
LE: loop exit
PB: predicated region body
PF: predicated region fallthrough
CT: control target
= control target key end

     0   :  { %s6235_s0 = inlined_call_operand.vmem [shape: bf16[128,128], index: 0, kind: input, shape index: {}]   ;;  %s6236_s1 = inlined_call_operand.vmem [shape: bf16[128,16], index: 1, kind: input, shape index: {}]   ;;  %s6237_s2 = inlined_call_operand.hbm [shape: bf16[16,128], index: 2, kind: input, shape index: {}]   ;;  %s6238_s3 = inlined_call_operand.hbm [shape: f32[1,128], index: 3, kind: input, shape index: {}]   ;;  %s6239_s4 = inlined_call_operand.hbm [shape: f32[1,128], index: 4, kind: input, shape index: {}]   ;;  %s6240_s5 = inlined_call_operand.hbm [shape: f32[1,128], index: 5, kind: input, shape index: {}]   ;;  %s6241_s6 = inlined_call_operand.hbm [shape: bf16[128,128], index: 6, kind: input, shape index: {}]   ;;  %s6242_s7 = inlined_call_operand.hbm [shape: f32[1,128], index: 7, kind: input, shape index: {}]   ;;  %s6243_s8 = inlined_call_operand.hbm [shape: f32[1,128], index: 8, kind: input, shape index: {}]   ;;  %s6244_s9 = inlined_call_operand.hbm [shape: f32[1,128], index: 9, kind: input, shape index: {}]   ;;  %s6245_s10 = inlined_call_operand.hbm [shape: bf16[16,128], index: 10, kind: input, shape index: {}]   ;;  %s6246_s11 = inlined_call_operand.hbm [shape: f32[1,128], index: 11, kind: input, shape index: {}]   ;;  %s6247_s12 = inlined_call_operand.hbm [shape: f32[1,128], index: 12, kind: input, shape index: {}]   ;;  %s6248_s13 = inlined_call_operand.hbm [shape: f32[1,128], index: 13, kind: input, shape index: {}]   ;;  %s6249_s14 = inlined_call_operand.hbm [shape: bf16[128,128], index: 14, kind: input, shape index: {}]   ;;  %s6250_s15 = inlined_call_operand.hbm [shape: f32[1,128], index: 15, kind: input, shape index: {}]   ;;  %s6251_s16 = inlined_call_operand.vmem [shape: f32[1,128], index: 16, kind: input, shape index: {}]   ;;  %s6252_s17 = inlined_call_operand.vmem [shape: f32[1,128], index: 17, kind: input, shape index: {}]   ;;  %s6253_s18 = inlined_call_operand.vmem [shape: bf16[128,128], index: 18, kind: input, shape index: {}]   ;;  %s6254_s19 = inlined_call_operand.vmem [shape: f32[1,128], index: 19, kind: input, shape index: {}]   ;;  %s6255_s20 = inlined_call_operand.vmem [shape: f32[1,128], index: 20, kind: input, shape index: {}]   ;;  %s6256_s21 = inlined_call_operand.vmem [shape: f32[1,128], index: 21, kind: input, shape index: {}]   ;;  %s6257_s22 = inlined_call_operand.hbm [shape: bf16[128,128], index: 22, kind: input, shape index: {}]   ;;  %s6258_s23 = inlined_call_operand.vmem [shape: f32[1,128], index: 23, kind: input, shape index: {}]   ;;  %s6259_s24 = inlined_call_operand.vmem [shape: f32[5], index: 24, kind: input, shape index: {}]   ;;  %s6260_s25 = inlined_call_operand.hbm [shape: f32[128,128], index: 25, kind: output, shape index: {0}]   ;;  %s6261_s26 = inlined_call_operand.hbm [shape: bf16[128,128], index: 26, kind: output, shape index: {1}]   ;;  %s6262_s27 = inlined_call_operand.hbm [shape: bf16[128,128], index: 27, kind: output, shape index: {2}]   ;;  %s6263_s28 = inlined_call_operand.hbm [shape: f32[128,128], index: 28, kind: output, shape index: {3}]  }
   0x1   :  { %6278 = sst [smem:[#allocation46_spill]] %s6235_s0 }
   0x2   :  { %6279 = sst [smem:[#allocation47_spill]] %s6236_s1 }
   0x3   :  { %6280 = sst [smem:[#allocation48_spill]] %s6237_s2 }
   0x4   :  { %6281 = sst [smem:[#allocation49_spill]] %s6238_s3 }
   0x5   :  { %6282 = sst [smem:[#allocation50_spill]] %s6239_s4 }
   0x6   :  { %6283 = sst [smem:[#allocation51_spill]] %s6240_s5 }
   0x7   :  { %6284 = sst [smem:[#allocation52_spill]] %s6241_s6 }
   0x8   :  { %6285 = sst [smem:[#allocation53_spill]] %s6242_s7 }
   0x9   :  { %6286 = sst [smem:[#allocation54_spill]] %s6243_s8 }
   0xa   :  { %6287 = sst [smem:[#allocation55_spill]] %s6244_s9 }
   0xb   :  { %6288 = sst [smem:[#allocation56_spill]] %s6245_s10 }
   0xc   :  { %6289 = sst [smem:[#allocation57_spill]] %s6246_s11 }
   0xd   :  { %6290 = sst [smem:[#allocation58_spill]] %s6247_s12 }
   0xe   :  { %6291 = sst [smem:[#allocation59_spill]] %s6263_s28 }
   0xf   :  { %34 = vsyncpa [#allocation3], 0 }
  0x10   :  { %35 = vsyncpa [#allocation7], 0 }
  0x11   :  { %36 = vsyncpa [#allocation10], 0 }
  0x12   :  { %37 = vsyncpa [#allocation13], 0 }
  0x13   :  { %38 = vsyncpa [#allocation16], 0 }
  0x14   :  { %39 = vsyncpa [#allocation19], 0 }
  0x15   :  { %40 = vsyncpa [#allocation22], 0 }
  0x16   :  { %41 = vsyncpa [#allocation25], 0 }
  0x17   :  { %42 = vsyncpa [#allocation5], 0 }
  0x18   :  { %43 = vsyncpa [#allocation4], 0 }
  0x19   :  { %44 = vsyncpa [#allocation30], 0 }
  0x1a   :  { %45 = vsyncpa [#allocation33], 0  ;;  %s4315_s8 = smov [#allocation6]   ;;  %s4316_s9 = smov [#allocation9]  }
  0x1b   :  { %s68_s5 = sshll.u32 %s4315_s8, 4  ;;  %s88_s30 = sshll.u32 %s4316_s9, 4  ;;  %s69_s5 = int_to_ptr.vmem [resolvable:$true] %s68_s5  ;;  %s89_s30 = int_to_ptr.vmem [resolvable:$true] %s88_s30 }
  0x1c   :  { %s6292_s10 = sld [smem:[#allocation49_spill]] }
  0x22   :  { %s3861_s0 = scalar_lea.hbm %s6292_s10, 16 }
  0x23   :  { %p3862_p0 = scmp.ne.s32.totalorder %s6292_s10, %s3861_s0  ;;  %p3865_p1 = scmp.lt.u32.totalorder %s3861_s0, %s6292_s10 }
  0x25   :  { %p3867_p2 = pnand %p3865_p1, %p3862_p0 }
  0x27   :  { %3870 = shalt.err (!%p3867_p2)
}
  0x28   :  { %s3871_s12 = scalar_lea.vmem %s69_s5, 16  ;;  %s3875_s1 = scalar_lea.vmem %s69_s5, 32 }
  0x29   :  { %p3872_p3 = scmp.ne.s32.totalorder %s69_s5, %s3871_s12  ;;  %p3876_p4 = scmp.lt.s32.totalorder %s69_s5, %s69_s5 }
  0x2a   :  { %p3877_p5 = scmp.lt.s32.totalorder %s3875_s1, %s3871_s12 }
  0x2c   :  { %p3878_p6 = por %p3877_p5, %p3876_p4 }
  0x2e   :  { %p3879_p7 = pnand %p3878_p6, %p3872_p3 }
  0x30   :  { %3882 = shalt.err (!%p3879_p7)
}
  0x31   :  { %71 = dma.hbm_to_vmem [thread:$0]  %s6292_s10, 16, %s69_s5, [#allocation7]  }
  0x32   :  { %s6293_s6 = sld [smem:[#allocation51_spill]] }
  0x38   :  { %s3883_s11 = scalar_lea.hbm %s6293_s6, 16 }
  0x39   :  { %p3884_p8 = scmp.ne.s32.totalorder %s6293_s6, %s3883_s11  ;;  %p3887_p9 = scmp.lt.u32.totalorder %s3883_s11, %s6293_s6 }
  0x3b   :  { %p3889_p10 = pnand %p3887_p9, %p3884_p8 }
  0x3d   :  { %3892 = shalt.err (!%p3889_p10)
}
  0x3e   :  { %s3893_s12 = scalar_lea.vmem %s89_s30, 16  ;;  %s3897_s1 = scalar_lea.vmem %s89_s30, 32 }
  0x3f   :  { %p3894_p11 = scmp.ne.s32.totalorder %s89_s30, %s3893_s12  ;;  %p3898_p12 = scmp.lt.s32.totalorder %s89_s30, %s89_s30 }
  0x40   :  { %p3899_p13 = scmp.lt.s32.totalorder %s3897_s1, %s3893_s12 }
  0x42   :  { %p3900_p0 = por %p3899_p13, %p3898_p12 }
  0x44   :  { %p3901_p1 = pnand %p3900_p0, %p3894_p11 }
  0x46   :  { %3904 = shalt.err (!%p3901_p1)
}
  0x47   :  { %91 = dma.hbm_to_vmem [thread:$0]  %s6293_s6, 16, %s89_s30, [#allocation10]  }
  0x48   :  { %s4317_s4 = smov [#allocation12]   ;;  %s4318_s9 = smov [#allocation15]  }
  0x49   :  { %s110_s8 = sshll.u32 %s4317_s4, 4  ;;  %s130_s3 = sshll.u32 %s4318_s9, 4  ;;  %s111_s8 = int_to_ptr.vmem [resolvable:$true] %s110_s8  ;;  %s131_s3 = int_to_ptr.vmem [resolvable:$true] %s130_s3 }
  0x4a   :  { %s6294_s0 = sld [smem:[#allocation53_spill]] }
  0x50   :  { %s3905_s2 = scalar_lea.hbm %s6294_s0, 16 }
  0x51   :  { %p3906_p2 = scmp.ne.s32.totalorder %s6294_s0, %s3905_s2  ;;  %p3909_p3 = scmp.lt.u32.totalorder %s3905_s2, %s6294_s0 }
  0x53   :  { %p3911_p4 = pnand %p3909_p3, %p3906_p2 }
  0x55   :  { %3914 = shalt.err (!%p3911_p4)
}
  0x56   :  { %s3915_s30 = scalar_lea.vmem %s111_s8, 16  ;;  %s3919_s6 = scalar_lea.vmem %s111_s8, 32 }
  0x57   :  { %p3916_p5 = scmp.ne.s32.totalorder %s111_s8, %s3915_s30  ;;  %p3920_p6 = scmp.lt.s32.totalorder %s111_s8, %s111_s8 }
  0x58   :  { %p3921_p7 = scmp.lt.s32.totalorder %s3919_s6, %s3915_s30 }
  0x5a   :  { %p3922_p8 = por %p3921_p7, %p3920_p6 }
  0x5c   :  { %p3923_p9 = pnand %p3922_p8, %p3916_p5 }
  0x5e   :  { %3926 = shalt.err (!%p3923_p9)
}
  0x5f   :  { %113 = dma.hbm_to_vmem [thread:$0]  %s6294_s0, 16, %s111_s8, [#allocation13]  }
  0x60   :  { %s6295_s9 = sld [smem:[#allocation55_spill]] }
  0x66   :  { %s3927_s11 = scalar_lea.hbm %s6295_s9, 16 }
  0x67   :  { %p3928_p10 = scmp.ne.s32.totalorder %s6295_s9, %s3927_s11  ;;  %p3931_p11 = scmp.lt.u32.totalorder %s3927_s11, %s6295_s9 }
  0x69   :  { %p3933_p12 = pnand %p3931_p11, %p3928_p10 }
  0x6b   :  { %3936 = shalt.err (!%p3933_p12)
}
  0x6c   :  { %s3937_s1 = scalar_lea.vmem %s131_s3, 16  ;;  %s3941_s30 = scalar_lea.vmem %s131_s3, 32 }
  0x6d   :  { %p3938_p13 = scmp.ne.s32.totalorder %s131_s3, %s3937_s1  ;;  %p3942_p0 = scmp.lt.s32.totalorder %s131_s3, %s131_s3 }
  0x6e   :  { %p3943_p1 = scmp.lt.s32.totalorder %s3941_s30, %s3937_s1 }
  0x70   :  { %p3944_p2 = por %p3943_p1, %p3942_p0 }
  0x72   :  { %p3945_p3 = pnand %p3944_p2, %p3938_p13 }
  0x74   :  { %3948 = shalt.err (!%p3945_p3)
}
  0x75   :  { %133 = dma.hbm_to_vmem [thread:$0]  %s6295_s9, 16, %s131_s3, [#allocation16]  }
  0x76   :  { %s4319_s6 = smov [#allocation18]   ;;  %s4320_s10 = smov [#allocation21]  }
  0x77   :  { %s152_s5 = sshll.u32 %s4319_s6, 4  ;;  %s172_s28 = sshll.u32 %s4320_s10, 4  ;;  %s153_s5 = int_to_ptr.vmem [resolvable:$true] %s152_s5  ;;  %s173_s28 = int_to_ptr.vmem [resolvable:$true] %s172_s28 }
  0x78   :  { %s6296_s29 = sld [smem:[#allocation57_spill]] }
  0x7e   :  { %s3949_s2 = scalar_lea.hbm %s6296_s29, 16 }
  0x7f   :  { %p3950_p4 = scmp.ne.s32.totalorder %s6296_s29, %s3949_s2  ;;  %p3953_p5 = scmp.lt.u32.totalorder %s3949_s2, %s6296_s29 }
  0x81   :  { %p3955_p6 = pnand %p3953_p5, %p3950_p4 }
  0x83   :  { %3958 = shalt.err (!%p3955_p6)
}
  0x84   :  { %s3959_s3 = scalar_lea.vmem %s153_s5, 16  ;;  %s3963_s9 = scalar_lea.vmem %s153_s5, 32 }
  0x85   :  { %p3960_p7 = scmp.ne.s32.totalorder %s153_s5, %s3959_s3  ;;  %p3964_p8 = scmp.lt.s32.totalorder %s153_s5, %s153_s5 }
  0x86   :  { %p3965_p9 = scmp.lt.s32.totalorder %s3963_s9, %s3959_s3 }
  0x88   :  { %p3966_p10 = por %p3965_p9, %p3964_p8 }
  0x8a   :  { %p3967_p11 = pnand %p3966_p10, %p3960_p7 }
  0x8c   :  { %3970 = shalt.err (!%p3967_p11)
}
  0x8d   :  { %155 = dma.hbm_to_vmem [thread:$0]  %s6296_s29, 16, %s153_s5, [#allocation19]  }
  0x8e   :  { %s3971_s4 = scalar_lea.hbm %s6248_s13, 16 }
  0x8f   :  { %p3972_p12 = scmp.ne.s32.totalorder %s6248_s13, %s3971_s4  ;;  %p3975_p13 = scmp.lt.u32.totalorder %s3971_s4, %s6248_s13 }
  0x91   :  { %p3977_p0 = pnand %p3975_p13, %p3972_p12 }
  0x93   :  { %3980 = shalt.err (!%p3977_p0)
}
  0x94   :  { %s3981_s1 = scalar_lea.vmem %s173_s28, 16  ;;  %s3985_s30 = scalar_lea.vmem %s173_s28, 32 }
  0x95   :  { %p3982_p1 = scmp.ne.s32.totalorder %s173_s28, %s3981_s1  ;;  %p3986_p2 = scmp.lt.s32.totalorder %s173_s28, %s173_s28 }
  0x96   :  { %p3987_p3 = scmp.lt.s32.totalorder %s3985_s30, %s3981_s1 }
  0x98   :  { %p3988_p4 = por %p3987_p3, %p3986_p2 }
  0x9a   :  { %p3989_p5 = pnand %p3988_p4, %p3982_p1 }
  0x9c   :  { %3992 = shalt.err (!%p3989_p5)
}
  0x9d   :  { %175 = dma.hbm_to_vmem [thread:$0]  %s6248_s13, 16, %s173_s28, [#allocation22]  }
  0x9e   :  { %s4321_s3 = smov [#allocation24]   ;;  %s4322_s8 = smov [#allocation2]  }
  0x9f   :  { %s194_s9 = sshll.u32 %s4321_s3, 4  ;;  %s55_s0 = sshll.u32 %s4322_s8, 4  ;;  %s195_s9 = int_to_ptr.vmem [resolvable:$true] %s194_s9  ;;  %s4557_s0 = int_to_ptr.vmem [resolvable:$true] %s55_s0 }
  0xa0   :  { %s3993_s4 = scalar_lea.hbm %s6250_s15, 16 }
  0xa1   :  { %p3994_p6 = scmp.ne.s32.totalorder %s6250_s15, %s3993_s4  ;;  %p3997_p7 = scmp.lt.u32.totalorder %s3993_s4, %s6250_s15 }
  0xa3   :  { %p3999_p8 = pnand %p3997_p7, %p3994_p6 }
  0xa5   :  { %4002 = shalt.err (!%p3999_p8)
}
  0xa6   :  { %s4003_s13 = scalar_lea.vmem %s195_s9, 16  ;;  %s4007_s28 = scalar_lea.vmem %s195_s9, 32 }
  0xa7   :  { %p4004_p9 = scmp.ne.s32.totalorder %s195_s9, %s4003_s13  ;;  %p4008_p10 = scmp.lt.s32.totalorder %s195_s9, %s195_s9 }
  0xa8   :  { %p4009_p11 = scmp.lt.s32.totalorder %s4007_s28, %s4003_s13 }
  0xaa   :  { %p4010_p12 = por %p4009_p11, %p4008_p10 }
  0xac   :  { %p4011_p13 = pnand %p4010_p12, %p4004_p9 }
  0xae   :  { %4014 = shalt.err (!%p4011_p13)
}
  0xaf   :  { %197 = dma.hbm_to_vmem [thread:$0]  %s6250_s15, 16, %s195_s9, [#allocation25]  }
  0xb0   :  { %s6297_s3 = sld [smem:[#allocation48_spill]] }
  0xb6   :  { %s4015_s8 = scalar_lea.hbm %s6297_s3, 128 }
  0xb7   :  { %p4016_p0 = scmp.ne.s32.totalorder %s6297_s3, %s4015_s8  ;;  %p4019_p1 = scmp.lt.u32.totalorder %s4015_s8, %s6297_s3 }
  0xb9   :  { %p4021_p2 = pnand %p4019_p1, %p4016_p0 }
  0xbb   :  { %4024 = shalt.err (!%p4021_p2)
}
  0xbc   :  { %s4025_s2 = scalar_lea.vmem %s4557_s0, 128  ;;  %p4030_p4 = scmp.lt.s32.totalorder %s4557_s0, %s4557_s0 }
  0xbd   :  { %p4026_p3 = scmp.ne.s32.totalorder %s4557_s0, %s4025_s2  ;;  %p4031_p5 = scmp.lt.s32.totalorder %s4025_s2, %s4025_s2 }
  0xbf   :  { %p4032_p6 = por %p4031_p5, %p4030_p4 }
  0xc1   :  { %p4033_p7 = pnand %p4032_p6, %p4026_p3 }
  0xc3   :  { %4036 = shalt.err (!%p4033_p7)
}
  0xc4   :  { %s4323_s15 = smov 64   ;;  %s4324_s9 = smov 4  }
  0xc5   :  { %61 = dma.hbm_to_vmem [thread:$0]  %s6297_s3, 128, %s4557_s0, [#allocation3], %s4323_s15, %s4323_s15, %s4324_s9  }
  0xc6   :  { %s4325_s13 = smov [#allocation8]   ;;  %s4326_s1 = smov [#allocation11]  }
  0xc7   :  { %s78_s28 = sshll.u32 %s4325_s13, 4  ;;  %s97_s30 = sshll.u32 %s4326_s1, 4  ;;  %s79_s28 = int_to_ptr.vmem [resolvable:$true] %s78_s28  ;;  %s4591_s30 = int_to_ptr.vmem [resolvable:$true] %s97_s30 }
  0xc8   :  { %s6298_s8 = sld [smem:[#allocation50_spill]] }
  0xce   :  { %s4037_s6 = scalar_lea.hbm %s6298_s8, 16 }
  0xcf   :  { %p4038_p8 = scmp.ne.s32.totalorder %s6298_s8, %s4037_s6  ;;  %p4041_p9 = scmp.lt.u32.totalorder %s4037_s6, %s6298_s8 }
  0xd1   :  { %p4043_p10 = pnand %p4041_p9, %p4038_p8 }
  0xd3   :  { %4046 = shalt.err (!%p4043_p10)
}
  0xd4   :  { %s4047_s0 = scalar_lea.vmem %s79_s28, 16  ;;  %s4051_s3 = scalar_lea.vmem %s79_s28, 32 }
  0xd5   :  { %p4048_p11 = scmp.ne.s32.totalorder %s79_s28, %s4047_s0  ;;  %p4052_p12 = scmp.lt.s32.totalorder %s79_s28, %s79_s28 }
  0xd6   :  { %p4053_p13 = scmp.lt.s32.totalorder %s4051_s3, %s4047_s0 }
  0xd8   :  { %p4054_p0 = por %p4053_p13, %p4052_p12 }
  0xda   :  { %p4055_p1 = pnand %p4054_p0, %p4048_p11 }
  0xdc   :  { %4058 = shalt.err (!%p4055_p1)
}
  0xdd   :  { %81 = dma.hbm_to_vmem [thread:$0]  %s6298_s8, 16, %s79_s28, [#allocation7]  }
  0xde   :  { %s6299_s5 = sld [smem:[#allocation52_spill]] }
  0xe4   :  { %s4059_s29 = scalar_lea.hbm %s6299_s5, 1024 }
  0xe5   :  { %p4060_p2 = scmp.ne.s32.totalorder %s6299_s5, %s4059_s29  ;;  %p4063_p3 = scmp.lt.u32.totalorder %s4059_s29, %s6299_s5 }
  0xe7   :  { %p4065_p4 = pnand %p4063_p3, %p4060_p2 }
  0xe9   :  { %4068 = shalt.err (!%p4065_p4)
}
  0xea   :  { %s4069_s2 = scalar_lea.vmem %s4591_s30, 1024  ;;  %p4074_p6 = scmp.lt.s32.totalorder %s4591_s30, %s4591_s30 }
  0xeb   :  { %p4070_p5 = scmp.ne.s32.totalorder %s4591_s30, %s4069_s2  ;;  %p4075_p7 = scmp.lt.s32.totalorder %s4069_s2, %s4069_s2 }
  0xed   :  { %p4076_p8 = por %p4075_p7, %p4074_p6 }
  0xef   :  { %p4077_p9 = pnand %p4076_p8, %p4070_p5 }
  0xf1   :  { %4080 = shalt.err (!%p4077_p9)
}
  0xf2   :  { %103 = dma.hbm_to_vmem [thread:$0]  %s6299_s5, 1024, %s4591_s30, [#allocation10], %s4323_s15, %s4323_s15, %s4324_s9  }
  0xf3   :  { %s4327_s0 = smov [#allocation14]   ;;  %s4328_s7 = smov [#allocation17]  }
  0xf4   :  { %s120_s3 = sshll.u32 %s4327_s0, 4  ;;  %s139_s12 = sshll.u32 %s4328_s7, 4  ;;  %s121_s3 = int_to_ptr.vmem [resolvable:$true] %s120_s3  ;;  %s4625_s12 = int_to_ptr.vmem [resolvable:$true] %s139_s12 }
  0xf5   :  { %s6300_s29 = sld [smem:[#allocation54_spill]] }
  0xfb   :  { %s4081_s10 = scalar_lea.hbm %s6300_s29, 16 }
  0xfc   :  { %p4082_p10 = scmp.ne.s32.totalorder %s6300_s29, %s4081_s10  ;;  %p4085_p11 = scmp.lt.u32.totalorder %s4081_s10, %s6300_s29 }
  0xfe   :  { %p4087_p12 = pnand %p4085_p11, %p4082_p10 }
 0x100   :  { %4090 = shalt.err (!%p4087_p12)
}
 0x101   :  { %s4091_s30 = scalar_lea.vmem %s121_s3, 16  ;;  %s4095_s5 = scalar_lea.vmem %s121_s3, 32 }
 0x102   :  { %p4092_p13 = scmp.ne.s32.totalorder %s121_s3, %s4091_s30  ;;  %p4096_p0 = scmp.lt.s32.totalorder %s121_s3, %s121_s3 }
 0x103   :  { %p4097_p1 = scmp.lt.s32.totalorder %s4095_s5, %s4091_s30 }
 0x105   :  { %p4098_p2 = por %p4097_p1, %p4096_p0 }
 0x107   :  { %p4099_p3 = pnand %p4098_p2, %p4092_p13 }
 0x109   :  { %4102 = shalt.err (!%p4099_p3)
}
 0x10a   :  { %123 = dma.hbm_to_vmem [thread:$0]  %s6300_s29, 16, %s121_s3, [#allocation13]  }
 0x10b   :  { %s6301_s13 = sld [smem:[#allocation56_spill]] }
 0x111   :  { %s4103_s1 = scalar_lea.hbm %s6301_s13, 128 }
 0x112   :  { %p4104_p4 = scmp.ne.s32.totalorder %s6301_s13, %s4103_s1  ;;  %p4107_p5 = scmp.lt.u32.totalorder %s4103_s1, %s6301_s13 }
 0x114   :  { %p4109_p6 = pnand %p4107_p5, %p4104_p4 }
 0x116   :  { %4112 = shalt.err (!%p4109_p6)
}
 0x117   :  { %s4113_s2 = scalar_lea.vmem %s4625_s12, 128  ;;  %p4118_p8 = scmp.lt.s32.totalorder %s4625_s12, %s4625_s12 }
 0x118   :  { %p4114_p7 = scmp.ne.s32.totalorder %s4625_s12, %s4113_s2  ;;  %p4119_p9 = scmp.lt.s32.totalorder %s4113_s2, %s4113_s2 }
 0x11a   :  { %p4120_p10 = por %p4119_p9, %p4118_p8 }
 0x11c   :  { %p4121_p11 = pnand %p4120_p10, %p4114_p7 }
 0x11e   :  { %4124 = shalt.err (!%p4121_p11)
}
 0x11f   :  { %145 = dma.hbm_to_vmem [thread:$0]  %s6301_s13, 128, %s4625_s12, [#allocation16], %s4323_s15, %s4323_s15, %s4324_s9  }
 0x120   :  { %s4329_s30 = smov [#allocation20]   ;;  %s4330_s28 = smov [#allocation23]  }
 0x121   :  { %s162_s5 = sshll.u32 %s4329_s30, 4  ;;  %s181_s8 = sshll.u32 %s4330_s28, 4  ;;  %s163_s5 = int_to_ptr.vmem [resolvable:$true] %s162_s5  ;;  %s4659_s8 = int_to_ptr.vmem [resolvable:$true] %s181_s8 }
 0x122   :  { %s6302_s1 = sld [smem:[#allocation58_spill]] }
 0x128   :  { %s4125_s6 = scalar_lea.hbm %s6302_s1, 16 }
 0x129   :  { %p4126_p12 = scmp.ne.s32.totalorder %s6302_s1, %s4125_s6  ;;  %p4129_p13 = scmp.lt.u32.totalorder %s4125_s6, %s6302_s1 }
 0x12b   :  { %p4131_p0 = pnand %p4129_p13, %p4126_p12 }
 0x12d   :  { %4134 = shalt.err (!%p4131_p0)
}
 0x12e   :  { %s4135_s12 = scalar_lea.vmem %s163_s5, 16  ;;  %s4139_s13 = scalar_lea.vmem %s163_s5, 32 }
 0x12f   :  { %p4136_p1 = scmp.ne.s32.totalorder %s163_s5, %s4135_s12  ;;  %p4140_p2 = scmp.lt.s32.totalorder %s163_s5, %s163_s5 }
 0x130   :  { %p4141_p3 = scmp.lt.s32.totalorder %s4139_s13, %s4135_s12 }
 0x132   :  { %p4142_p4 = por %p4141_p3, %p4140_p2 }
 0x134   :  { %p4143_p5 = pnand %p4142_p4, %p4136_p1 }
 0x136   :  { %4146 = shalt.err (!%p4143_p5)
}
 0x137   :  { %165 = dma.hbm_to_vmem [thread:$0]  %s6302_s1, 16, %s163_s5, [#allocation19]  }
 0x138   :  { %s4147_s0 = scalar_lea.hbm %s6249_s14, 1024 }
 0x139   :  { %p4148_p6 = scmp.ne.s32.totalorder %s6249_s14, %s4147_s0  ;;  %p4151_p7 = scmp.lt.u32.totalorder %s4147_s0, %s6249_s14 }
 0x13b   :  { %p4153_p8 = pnand %p4151_p7, %p4148_p6 }
 0x13d   :  { %4156 = shalt.err (!%p4153_p8)
}
 0x13e   :  { %s4157_s11 = scalar_lea.vmem %s4659_s8, 1024  ;;  %p4162_p10 = scmp.lt.s32.totalorder %s4659_s8, %s4659_s8 }
 0x13f   :  { %p4158_p9 = scmp.ne.s32.totalorder %s4659_s8, %s4157_s11  ;;  %p4163_p11 = scmp.lt.s32.totalorder %s4157_s11, %s4157_s11 }
 0x141   :  { %p4164_p12 = por %p4163_p11, %p4162_p10 }
 0x143   :  { %p4165_p13 = pnand %p4164_p12, %p4158_p9 }
 0x145   :  { %4168 = shalt.err (!%p4165_p13)
}
 0x146   :  { %187 = dma.hbm_to_vmem [thread:$0]  %s6249_s14, 1024, %s4659_s8, [#allocation22], %s4323_s15, %s4323_s15, %s4324_s9  }
 0x147   :  { %s230_s13 = sshll.u32 %s6259_s24, 4  ;;  %s4331_s3 = smov [#allocation26]   ;;  %s231_s13 = int_to_ptr.vmem [resolvable:$true] %s230_s13 }
 0x148   :  { %s215_s29 = sshll.u32 %s4331_s3, 4  ;;  %s4169_s0 = scalar_lea.hbm %s6257_s22, 1024  ;;  %s216_s29 = int_to_ptr.vmem [resolvable:$true] %s215_s29 }
 0x149   :  { %p4170_p0 = scmp.ne.s32.totalorder %s6257_s22, %s4169_s0  ;;  %p4173_p1 = scmp.lt.u32.totalorder %s4169_s0, %s6257_s22 }
 0x14b   :  { %p4175_p2 = pnand %p4173_p1, %p4170_p0 }
 0x14d   :  { %4178 = shalt.err (!%p4175_p2)
}
 0x14e   :  { %s4179_s14 = scalar_lea.vmem %s216_s29, 1024  ;;  %p4184_p4 = scmp.lt.s32.totalorder %s216_s29, %s216_s29 }
 0x14f   :  { %p4180_p3 = scmp.ne.s32.totalorder %s216_s29, %s4179_s14  ;;  %p4185_p5 = scmp.lt.s32.totalorder %s4179_s14, %s4179_s14 }
 0x151   :  { %p4186_p6 = por %p4185_p5, %p4184_p4 }
 0x153   :  { %p4187_p7 = pnand %p4186_p6, %p4180_p3 }
 0x155   :  { %4190 = shalt.err (!%p4187_p7)
}
 0x156   :  { %221 = dma.hbm_to_vmem [thread:$0]  %s6257_s22, 1024, %s216_s29, [#allocation25], %s4323_s15, %s4323_s15, %s4324_s9  }
 0x157   :  { %s4191_s11 = scalar_lea.vmem %s231_s13, 16  ;;  %p4196_p9 = scmp.lt.s32.totalorder %s231_s13, %s231_s13 }
 0x158   :  { %p4192_p8 = scmp.ne.s32.totalorder %s231_s13, %s4191_s11  ;;  %p4197_p10 = scmp.lt.s32.totalorder %s4191_s11, %s4191_s11 }
 0x15a   :  { %p4198_p11 = por %p4197_p10, %p4196_p9 }
 0x15c   :  { %p4199_p12 = pnand %p4198_p11, %p4192_p8 }
 0x15e   :  { %4202 = shalt.err (!%p4199_p12)
}
 0x15f   :  { %s4332_s5 = smov [#allocation27]  }
 0x160   :  { %233 = dma.vmem_to_smem %s231_s13, 16, %s4332_s5, [#allocation5]  }
 0x161   :  { %4291 = dma.done.wait [#allocation3], 128  }
 0x162   :  { %4292 = vsyncadd [#allocation3], 4294967168 }
 0x163   :  { %4293 = dma.done.wait [#allocation7], 32  }
 0x164   :  { %4294 = vsyncadd [#allocation7], 4294967264 }
 0x165   :  { %4295 = dma.done.wait [#allocation10], 1040  }
 0x166   :  { %4296 = vsyncadd [#allocation10], 4294966256 }
 0x167   :  { %4297 = dma.done.wait [#allocation13], 32  }
 0x168   :  { %4298 = vsyncadd [#allocation13], 4294967264 }
 0x169   :  { %4299 = dma.done.wait [#allocation16], 144  }
 0x16a   :  { %4300 = vsyncadd [#allocation16], 4294967152 }
 0x16b   :  { %4301 = dma.done.wait [#allocation19], 32  }
 0x16c   :  { %4302 = vsyncadd [#allocation19], 4294967264 }
 0x16d   :  { %4303 = dma.done.wait [#allocation22], 1040  }
 0x16e   :  { %4304 = vsyncadd [#allocation22], 4294966256 }
 0x16f   :  { %4305 = dma.done.wait [#allocation25], 1040  }
 0x170   :  { %4306 = vsyncadd [#allocation25], 4294966256 }
 0x171   :  { %4307 = dma.done.wait [#allocation5], 16  }
 0x172   :  { %4308 = vsyncadd [#allocation5], 4294967280 }
 0x173   :  { %282 = sfence }
 0x174   :  { %v3697_v0 = vld [vmem:[#allocation2] sm:$0xff]   ;;  %v3698_v1 = vld [vmem:[#allocation17] sm:$0xff]   ;;  %vm348_vm0 = vcmask 130048   ;;  %s6303_s2 = sld [smem:[#allocation47_spill]]  ;;  %v4333_v10 = vmov 0   ;;  %s6304_s22 = sld [smem:[#allocation46_spill]] }
 0x175   :  { %3508 = vmatprep.subr.bf16.mxu0 %v3697_v0  ;;  %3526 = vmatprep.subr.bf16.mxu1 %v3698_v1  ;;  %s816_s24 = sld [smem:[#allocation27]]  ;;  %s3220_s8 = sld [smem:[#allocation27 + $0x2]] }
 0x176   :  { %3509 = vmatpush3.bf16.msra.mxu0 %v3697_v0  ;;  %3527 = vmatpush3.bf16.msra.mxu1 %v3698_v1  ;;  %s4335_s12 = smov [#allocation28]  }
 0x177   :  { %s3115_s13 = sshll.u32 %s4335_s12, 4  ;;  %s6143_s13 = int_to_ptr.vmem [resolvable:$true] %s3115_s13 }
 0x17a   :  { %v3699_v2 = vld [vmem:[%s6303_s2] sm:$0xff]   ;;  %v3700_v3 = vld [vmem:[%s6303_s2 + $0x8] sm:$0xff]   ;;  %v3701_v4 = vld [vmem:[%s6303_s2 + $0x10] sm:$0xff]  }
 0x17b   :  { %3510 = vmatprep.mubr.msk.bf16.mxu0 %vm348_vm0, %v3699_v2  ;;  %3528 = vmatprep.mubr.msk.bf16.mxu1 %vm348_vm0, %v3699_v2  ;;  %v3702_v5 = vld [vmem:[%s6303_s2 + $0x18] sm:$0xff]   ;;  %v3703_v6 = vld [vmem:[%s6303_s2 + $0x20] sm:$0xff]   ;;  %v3704_v7 = vld [vmem:[%s6303_s2 + $0x28] sm:$0xff]  }
 0x17c   :  { %3511 = vmatmul.mubr.msk.bf16.vlgmr.msra.gmra.mrb[0].mxu0 %vm348_vm0, %v3700_v3  ;;  %3529 = vmatmul.mubr.msk.bf16.vlgmr.msra.gmra.mrb[0].mxu1 %vm348_vm0, %v3700_v3  ;;  %v3705_v8 = vld [vmem:[%s6303_s2 + $0x30] sm:$0xff]   ;;  %v3706_v9 = vld [vmem:[%s6303_s2 + $0x38] sm:$0xff]   ;;  %v3707_v59 = vld [vmem:[%s6304_s22] sm:$0xff]  }
 0x17d   :  { %3514 = vmatprep.mubr.msk.bf16.mxu0 %vm348_vm0, %v3701_v4  ;;  %3532 = vmatprep.mubr.msk.bf16.mxu1 %vm348_vm0, %v3701_v4  ;;  %v3708_v60 = vld [vmem:[%s6304_s22 + $0x8] sm:$0xff]   ;;  %v3709_v61 = vld [vmem:[%s6304_s22 + $0x10] sm:$0xff]   ;;  %v3710_v62 = vld [vmem:[%s6304_s22 + $0x18] sm:$0xff]  }
 0x17e   :  { %v3711_v63 = vld [vmem:[%s6304_s22 + $0x20] sm:$0xff]   ;;  %v3712_v0 = vld [vmem:[%s6304_s22 + $0x28] sm:$0xff]   ;;  %v3713_v1 = vld [vmem:[%s6304_s22 + $0x30] sm:$0xff]  }
 0x17f   :  { %v3714_v2 = vld [vmem:[%s6304_s22 + $0x38] sm:$0xff]   ;;  %v4784_v4 = vld [vmem:[#allocation6] ss:$0 sm:$0xff] }
 0x184   :  { %3515 = vmatmul.mubr.msk.bf16.gmra.mrb[4].mxu0 %vm348_vm0, %v3702_v5  ;;  %3533 = vmatmul.mubr.msk.bf16.gmra.mrb[4].mxu1 %vm348_vm0, %v3702_v5 }
 0x185   :  { %3518 = vmatprep.mubr.msk.bf16.mxu0 %vm348_vm0, %v3703_v6  ;;  %3536 = vmatprep.mubr.msk.bf16.mxu1 %vm348_vm0, %v3703_v6  ;;  %v4786_v6 = vld [vmem:[#allocation18] ss:$0 sm:$0xff] }
 0x18c   :  { %3519 = vmatmul.mubr.msk.bf16.gmra.mrb[8].mxu0 %vm348_vm0, %v3704_v7  ;;  %3537 = vmatmul.mubr.msk.bf16.gmra.mrb[8].mxu1 %vm348_vm0, %v3704_v7 }
 0x18d   :  { %3522 = vmatprep.mubr.msk.bf16.mxu0 %vm348_vm0, %v3705_v8  ;;  %3540 = vmatprep.mubr.msk.bf16.mxu1 %vm348_vm0, %v3705_v8  ;;  %v3715_v8 = vld [vmem:[#allocation11] sm:$0xff]  }
 0x18e   :  { %3544 = vmatprep.subr.bf16.mxu1 %v3715_v8 }
 0x18f   :  { %3545 = vmatpush3.bf16.msra.mxu1 %v3715_v8 }
 0x194   :  { %3523 = vmatmul.mubr.msk.bf16.gmra.mrb[12].mxu0 %vm348_vm0, %v3706_v9  ;;  %3541 = vmatmul.mubr.msk.bf16.gmra.mrb[12].mxu1 %vm348_vm0, %v3706_v9 }
 0x195   :  { %687 = vmatprep.mubr.bf16.mxu0 %v4333_v10 }
 0x24f   :  { %v3512_v11 = vpop.f32.mrb[0].mxu0  ;;  %v3530_v12 = vpop.f32.mrb[0].mxu1 }
 0x250   :  { %v407_v13 = vpop.f32.mrb[1].mxu0  ;;  %v512_v14 = vpop.f32.mrb[1].mxu1 }
 0x251   :  { %v3513_v15 = vpop.f32.mrb[2].mxu0  ;;  %v3531_v17 = vpop.f32.mrb[2].mxu1 }
 0x252   :  { %v577_v16 = vpack.c.bf16 %v3513_v15, %v3512_v11  ;;  %v410_v18 = vpop.f32.mrb[3].mxu0  ;;  %v578_v19 = vpack.c.bf16 %v3531_v17, %v3530_v12  ;;  %v515_v21 = vpop.f32.mrb[3].mxu1  ;;  %v3716_v17 = vld [vmem:[#allocation11 + $0x8] sm:$0xff]  }
 0x253   :  { %v575_v20 = vpack.c.bf16 %v410_v18, %v407_v13  ;;  %v576_v22 = vpack.c.bf16 %v515_v21, %v512_v14  ;;  %3546 = vmatprep.subr.bf16.mxu1 %v3716_v17 }
 0x254   :  { %3547 = vmatpush3.bf16.msra.mxu1 %v3716_v17 }
 0x255   :  { %655 = vmatprep.subr.bf16.mxu0 %v576_v22 }
 0x256   :  { %656 = vmatpush1.bf16.msra.mxu0 %v575_v20 }
 0x257   :  { %v3516_v23 = vpop.f32.mrb[4].mxu0  ;;  %v3534_v24 = vpop.f32.mrb[4].mxu1  ;;  %657 = vmatprep.subr.bf16.mxu0 %v578_v19 }
 0x258   :  { %v423_v25 = vpop.f32.mrb[5].mxu0  ;;  %v528_v26 = vpop.f32.mrb[5].mxu1 }
 0x259   :  { %v3517_v27 = vpop.f32.mrb[6].mxu0  ;;  %v3535_v29 = vpop.f32.mrb[6].mxu1 }
 0x25a   :  { %v581_v28 = vpack.c.bf16 %v3517_v27, %v3516_v23  ;;  %v426_v30 = vpop.f32.mrb[7].mxu0  ;;  %v582_v31 = vpack.c.bf16 %v3535_v29, %v3534_v24  ;;  %v531_v33 = vpop.f32.mrb[7].mxu1  ;;  %658 = vmatpush1.bf16.msra.mxu0 %v577_v16  ;;  %v3717_v23 = vld [vmem:[#allocation11 + $0x10] sm:$0xff]  }
 0x25b   :  { %v579_v32 = vpack.c.bf16 %v426_v30, %v423_v25  ;;  %v580_v34 = vpack.c.bf16 %v531_v33, %v528_v26  ;;  %3548 = vmatprep.subr.bf16.mxu1 %v3717_v23 }
 0x25c   :  { %3549 = vmatpush3.bf16.msra.mxu1 %v3717_v23 }
 0x25d   :  { %659 = vmatprep.subr.bf16.mxu0 %v580_v34 }
 0x25e   :  { %660 = vmatpush1.bf16.msra.mxu0 %v579_v32 }
 0x25f   :  { %v3520_v35 = vpop.f32.mrb[8].mxu0  ;;  %v3538_v36 = vpop.f32.mrb[8].mxu1  ;;  %661 = vmatprep.subr.bf16.mxu0 %v582_v31  ;;  %v3718_v31 = vld [vmem:[#allocation11 + $0x18] sm:$0xff]  }
 0x260   :  { %v439_v37 = vpop.f32.mrb[9].mxu0  ;;  %v544_v38 = vpop.f32.mrb[9].mxu1  ;;  %3550 = vmatprep.subr.bf16.mxu1 %v3718_v31 }
 0x261   :  { %v3521_v39 = vpop.f32.mrb[10].mxu0  ;;  %v3539_v41 = vpop.f32.mrb[10].mxu1  ;;  %3551 = vmatpush3.bf16.msra.mxu1 %v3718_v31 }
 0x262   :  { %v585_v40 = vpack.c.bf16 %v3521_v39, %v3520_v35  ;;  %v442_v42 = vpop.f32.mrb[11].mxu0  ;;  %v586_v43 = vpack.c.bf16 %v3539_v41, %v3538_v36  ;;  %v547_v45 = vpop.f32.mrb[11].mxu1  ;;  %662 = vmatpush1.bf16.msra.mxu0 %v581_v28 }
 0x263   :  { %v583_v44 = vpack.c.bf16 %v442_v42, %v439_v37  ;;  %v584_v46 = vpack.c.bf16 %v547_v45, %v544_v38  ;;  %v3719_v37 = vld [vmem:[#allocation11 + $0x20] sm:$0xff]   ;;  %v3720_v45 = vld [vmem:[#allocation11 + $0x28] sm:$0xff]  }
 0x264   :  { %3552 = vmatprep.subr.bf16.mxu1 %v3719_v37 }
 0x265   :  { %663 = vmatprep.subr.bf16.mxu0 %v584_v46  ;;  %3553 = vmatpush3.bf16.msra.mxu1 %v3719_v37 }
 0x266   :  { %664 = vmatpush1.bf16.msra.mxu0 %v583_v44  ;;  %3554 = vmatprep.subr.bf16.mxu1 %v3720_v45 }
 0x267   :  { %v3524_v47 = vpop.f32.mrb[12].mxu0  ;;  %v3542_v48 = vpop.f32.mrb[12].mxu1  ;;  %665 = vmatprep.subr.bf16.mxu0 %v586_v43 }
 0x268   :  { %v455_v49 = vpop.f32.mrb[13].mxu0  ;;  %v560_v50 = vpop.f32.mrb[13].mxu1 }
 0x269   :  { %v3525_v51 = vpop.f32.mrb[14].mxu0  ;;  %v3543_v53 = vpop.f32.mrb[14].mxu1  ;;  %3555 = vmatpush3.bf16.msra.mxu1 %v3720_v45 }
 0x26a   :  { %v589_v52 = vpack.c.bf16 %v3525_v51, %v3524_v47  ;;  %v458_v54 = vpop.f32.mrb[15].mxu0  ;;  %v590_v55 = vpack.c.bf16 %v3543_v53, %v3542_v48  ;;  %v563_v57 = vpop.f32.mrb[15].mxu1  ;;  %666 = vmatpush1.bf16.msra.mxu0 %v585_v40  ;;  %v3721_v51 = vld [vmem:[#allocation11 + $0x30] sm:$0xff]  }
 0x26b   :  { %v587_v56 = vpack.c.bf16 %v458_v54, %v455_v49  ;;  %v588_v58 = vpack.c.bf16 %v563_v57, %v560_v50  ;;  %3556 = vmatprep.subr.bf16.mxu1 %v3721_v51 }
 0x26d   :  { %667 = vmatprep.subr.bf16.mxu0 %v588_v58  ;;  %3557 = vmatpush3.bf16.msra.mxu1 %v3721_v51 }
 0x26e   :  { %668 = vmatpush1.bf16.msra.mxu0 %v587_v56 }
 0x26f   :  { %669 = vmatprep.subr.bf16.mxu0 %v590_v55  ;;  %v3722_v55 = vld [vmem:[#allocation11 + $0x38] sm:$0xff]  }
 0x270   :  { %3558 = vmatprep.subr.bf16.mxu1 %v3722_v55 }
 0x271   :  { %3559 = vmatpush3.bf16.msra.mxu1 %v3722_v55 }
 0x272   :  { %670 = vmatpush1.bf16.msra.mxu0 %v589_v52 }
 0x275   :  { %688 = vmatmul.mubr.bf16.vlgmr.msra.gmra.mrb[16].mxu0 %v3707_v59 }
 0x276   :  { %697 = vmatprep.mubr.bf16.mxu0 %v4333_v10 }
 0x27d   :  { %698 = vmatmul.mubr.bf16.gmra.mrb[20].mxu0 %v3708_v60  ;;  %v4852_v60 = vld [vmem:[#allocation23] sm:$0xff]  }
 0x27e   :  { %707 = vmatprep.mubr.bf16.mxu0 %v4333_v10  ;;  %3576 = vmatprep.subr.bf16.mxu1 %v4852_v60 }
 0x285   :  { %708 = vmatmul.mubr.bf16.gmra.mrb[24].mxu0 %v3709_v61 }
 0x286   :  { %717 = vmatprep.mubr.bf16.mxu0 %v4333_v10 }
 0x28d   :  { %718 = vmatmul.mubr.bf16.gmra.mrb[28].mxu0 %v3710_v62 }
 0x28e   :  { %727 = vmatprep.mubr.bf16.mxu0 %v4333_v10 }
 0x295   :  { %728 = vmatmul.mubr.bf16.gmra.mrb[32].mxu0 %v3711_v63 }
 0x296   :  { %737 = vmatprep.mubr.bf16.mxu0 %v4333_v10 }
 0x29d   :  { %738 = vmatmul.mubr.bf16.gmra.mrb[36].mxu0 %v3712_v0 }
 0x29e   :  { %747 = vmatprep.mubr.bf16.mxu0 %v4333_v10 }
 0x2a5   :  { %748 = vmatmul.mubr.bf16.gmra.mrb[40].mxu0 %v3713_v1 }
 0x2a6   :  { %757 = vmatprep.mubr.bf16.mxu0 %v4333_v10 }
 0x2ad   :  { %758 = vmatmul.mubr.bf16.gmra.mrb[44].mxu0 %v3714_v2 }
 0x2ae   :  { %1581 = vmatprep.mubr.bf16.mxu0 %v4333_v10 }
 0x348   :  { %v689_v3 = vpop.f32.mrb[16].mxu0 }
 0x349   :  { %v691_v5 = vpop.f32.mrb[17].mxu0  ;;  %v4789_v9 = vadd.f32 %v4784_v4, %v689_v3 }
 0x34a   :  { %v693_v7 = vpop.f32.mrb[18].mxu0  ;;  %v4795_v13 = vadd.f32 %v4786_v6, %v691_v5 }
 0x34b   :  { %v4792_v11 = vadd.f32 %v4784_v4, %v693_v7  ;;  %v695_v12 = vpop.f32.mrb[19].mxu0 }
 0x34c   :  { %v4798_v14 = vadd.f32 %v4786_v6, %v695_v12 }
 0x34d   :  { %v817_v15 = vadd.f32 %v4792_v11, %v4789_v9 }
 0x34e   :  { %v1008_v16 = vadd.f32 %v4798_v14, %v4795_v13 }
 0x350   :  { %v699_v18 = vpop.f32.mrb[20].mxu0 }
 0x351   :  { %v4805_v19 = vadd.f32 %v4784_v4, %v699_v18  ;;  %v701_v20 = vpop.f32.mrb[21].mxu0 }
 0x352   :  { %v4808_v21 = vadd.f32 %v4786_v6, %v701_v20  ;;  %v703_v22 = vpop.f32.mrb[22].mxu0 }
 0x353   :  { %v818_v24 = vadd.f32 %v817_v15, %v4805_v19  ;;  %v4812_v25 = vadd.f32 %v4784_v4, %v703_v22  ;;  %v705_v26 = vpop.f32.mrb[23].mxu0 }
 0x354   :  { %v1009_v27 = vadd.f32 %v1008_v16, %v4808_v21  ;;  %v4816_v28 = vadd.f32 %v4786_v6, %v705_v26 }
 0x355   :  { %v819_v29 = vadd.f32 %v818_v24, %v4812_v25 }
 0x356   :  { %v1010_v30 = vadd.f32 %v1009_v27, %v4816_v28 }
 0x358   :  { %v709_v32 = vpop.f32.mrb[24].mxu0 }
 0x359   :  { %v4821_v33 = vadd.f32 %v4784_v4, %v709_v32  ;;  %v711_v34 = vpop.f32.mrb[25].mxu0 }
 0x35a   :  { %v4824_v35 = vadd.f32 %v4786_v6, %v711_v34  ;;  %v713_v36 = vpop.f32.mrb[26].mxu0 }
 0x35b   :  { %v820_v38 = vadd.f32 %v819_v29, %v4821_v33  ;;  %v4828_v39 = vadd.f32 %v4784_v4, %v713_v36  ;;  %v715_v40 = vpop.f32.mrb[27].mxu0 }
 0x35c   :  { %v1011_v41 = vadd.f32 %v1010_v30, %v4824_v35  ;;  %v4832_v42 = vadd.f32 %v4786_v6, %v715_v40 }
 0x35d   :  { %v821_v43 = vadd.f32 %v820_v38, %v4828_v39 }
 0x35e   :  { %v1012_v44 = vadd.f32 %v1011_v41, %v4832_v42 }
 0x360   :  { %v719_v46 = vpop.f32.mrb[28].mxu0 }
 0x361   :  { %v4837_v47 = vadd.f32 %v4784_v4, %v719_v46  ;;  %v721_v48 = vpop.f32.mrb[29].mxu0 }
 0x362   :  { %v4840_v49 = vadd.f32 %v4786_v6, %v721_v48  ;;  %v723_v50 = vpop.f32.mrb[30].mxu0 }
 0x363   :  { %v822_v52 = vadd.f32 %v821_v43, %v4837_v47  ;;  %v4844_v53 = vadd.f32 %v4784_v4, %v723_v50  ;;  %v725_v54 = vpop.f32.mrb[31].mxu0 }
 0x364   :  { %v1013_v56 = vadd.f32 %v1012_v44, %v4840_v49  ;;  %v4848_v57 = vadd.f32 %v4786_v6, %v725_v54 }
 0x365   :  { %v823_v58 = vadd.f32 %v822_v52, %v4844_v53 }
 0x366   :  { %v1014_v59 = vadd.f32 %v1013_v56, %v4848_v57 }
 0x368   :  { %v729_v61 = vpop.f32.mrb[32].mxu0 }
 0x369   :  { %v4855_v62 = vadd.f32 %v4784_v4, %v729_v61  ;;  %v731_v63 = vpop.f32.mrb[33].mxu0 }
 0x36a   :  { %v4858_v0 = vadd.f32 %v4786_v6, %v731_v63  ;;  %v733_v1 = vpop.f32.mrb[34].mxu0 }
 0x36b   :  { %v824_v2 = vadd.f32 %v823_v58, %v4855_v62  ;;  %v4863_v3 = vadd.f32 %v4784_v4, %v733_v1  ;;  %v735_v5 = vpop.f32.mrb[35].mxu0 }
 0x36c   :  { %v1015_v7 = vadd.f32 %v1014_v59, %v4858_v0  ;;  %v4867_v8 = vadd.f32 %v4786_v6, %v735_v5 }
 0x36d   :  { %v825_v12 = vadd.f32 %v824_v2, %v4863_v3 }
 0x36e   :  { %v1016_v15 = vadd.f32 %v1015_v7, %v4867_v8 }
 0x370   :  { %v739_v16 = vpop.f32.mrb[36].mxu0 }
 0x371   :  { %v785_v17 = vadd.f32 %v4784_v4, %v739_v16  ;;  %v741_v18 = vpop.f32.mrb[37].mxu0 }
 0x372   :  { %v4873_v20 = vadd.f32 %v4786_v6, %v741_v18  ;;  %v743_v22 = vpop.f32.mrb[38].mxu0 }
 0x373   :  { %v826_v23 = vadd.f32 %v825_v12, %v785_v17  ;;  %v786_v24 = vadd.f32 %v4784_v4, %v743_v22  ;;  %v745_v26 = vpop.f32.mrb[39].mxu0 }
 0x374   :  { %v1017_v27 = vadd.f32 %v1016_v15, %v4873_v20  ;;  %v4878_v29 = vadd.f32 %v4786_v6, %v745_v26 }
 0x375   :  { %v827_v30 = vadd.f32 %v826_v23, %v786_v24 }
 0x376   :  { %v1018_v31 = vadd.f32 %v1017_v27, %v4878_v29 }
 0x378   :  { %v749_v32 = vpop.f32.mrb[40].mxu0 }
 0x379   :  { %v787_v34 = vadd.f32 %v4784_v4, %v749_v32  ;;  %v751_v36 = vpop.f32.mrb[41].mxu0 }
 0x37a   :  { %v4883_v37 = vadd.f32 %v4786_v6, %v751_v36  ;;  %v753_v38 = vpop.f32.mrb[42].mxu0 }
 0x37b   :  { %v828_v40 = vadd.f32 %v827_v30, %v787_v34  ;;  %v788_v41 = vadd.f32 %v4784_v4, %v753_v38  ;;  %v755_v43 = vpop.f32.mrb[43].mxu0 }
 0x37c   :  { %v1019_v44 = vadd.f32 %v1018_v31, %v4883_v37  ;;  %v4888_v45 = vadd.f32 %v4786_v6, %v755_v43 }
 0x37d   :  { %v829_v46 = vadd.f32 %v828_v40, %v788_v41 }
 0x37e   :  { %v1020_v48 = vadd.f32 %v1019_v44, %v4888_v45 }
 0x380   :  { %v759_v50 = vpop.f32.mrb[44].mxu0 }
 0x381   :  { %v789_v51 = vadd.f32 %v4784_v4, %v759_v50  ;;  %v761_v52 = vpop.f32.mrb[45].mxu0 }
 0x382   :  { %v812_v54 = vadd.f32 %v4786_v6, %v761_v52  ;;  %v763_v55 = vpop.f32.mrb[46].mxu0 }
 0x383   :  { %v830_v56 = vadd.f32 %v829_v46, %v789_v51  ;;  %v790_v58 = vadd.f32 %v4784_v4, %v763_v55  ;;  %v765_v59 = vpop.f32.mrb[47].mxu0 }
 0x384   :  { %v1021_v61 = vadd.f32 %v1020_v48, %v812_v54  ;;  %v813_v63 = vadd.f32 %v4786_v6, %v765_v59 }
 0x385   :  { %v831_v1 = vadd.f32 %v830_v56, %v790_v58 }
 0x386   :  { %v1022_v2 = vadd.f32 %v1021_v61, %v813_v63 }
 0x387   :  { %v832_v5 = vrot.slane %v831_v1, 4 }
 0x388   :  { %v1023_v7 = vrot.slane %v1022_v2, 4 }
 0x389   :  { %v833_v12 = vadd.f32 %v832_v5, %v831_v1 }
 0x38a   :  { %v1024_v15 = vadd.f32 %v1023_v7, %v1022_v2 }
 0x38b   :  { %v834_v16 = vrot.slane %v833_v12, 2 }
 0x38c   :  { %v1025_v18 = vrot.slane %v1024_v15, 2 }
 0x38d   :  { %v835_v22 = vadd.f32 %v834_v16, %v833_v12 }
 0x38e   :  { %v1026_v23 = vadd.f32 %v1025_v18, %v1024_v15 }
 0x38f   :  { %v836_v26 = vrot.slane %v835_v22, 1 }
 0x390   :  { %v1027_v27 = vrot.slane %v1026_v23, 1 }
 0x391   :  { %v837_v30 = vadd.f32 %v836_v26, %v835_v22 }
 0x392   :  { %v1028_v32 = vadd.f32 %v1027_v27, %v1026_v23 }
 0x393   :  { %v839_v31 = vmul.f32 0.0078125, %v837_v30 }
 0x395   :  { %v4896_v4 = vsub.f32 %v4789_v9, %v839_v31  ;;  %v4899_v6 = vsub.f32 %v4792_v11, %v839_v31  ;;  %v4902_v36 = vsub.f32 %v4805_v19, %v839_v31  ;;  %v4905_v38 = vsub.f32 %v4812_v25, %v839_v31 }
 0x396   :  { %v4908_v40 = vsub.f32 %v4821_v33, %v839_v31  ;;  %v4911_v43 = vsub.f32 %v4828_v39, %v839_v31  ;;  %v4914_v44 = vsub.f32 %v4837_v47, %v839_v31  ;;  %v4917_v9 = vsub.f32 %v4844_v53, %v839_v31 }
 0x397   :  { %v4920_v11 = vsub.f32 %v4855_v62, %v839_v31  ;;  %v4923_v19 = vsub.f32 %v4863_v3, %v839_v31  ;;  %v4925_v25 = vsub.f32 %v785_v17, %v839_v31  ;;  %v4927_v46 = vsub.f32 %v786_v24, %v839_v31 }
 0x398   :  { %v4929_v33 = vsub.f32 %v787_v34, %v839_v31  ;;  %v4931_v39 = vsub.f32 %v788_v41, %v839_v31  ;;  %v4933_v48 = vsub.f32 %v789_v51, %v839_v31  ;;  %v4935_v47 = vsub.f32 %v790_v58, %v839_v31 }
 0x399   :  { %v856_v53 = vmul.f32 %v4896_v4, %v4896_v4  ;;  %v857_v62 = vmul.f32 %v4899_v6, %v4899_v6  ;;  %v1029_v3 = vmul.f32 0.0078125, %v1028_v32  ;;  %v858_v17 = vmul.f32 %v4902_v36, %v4902_v36 }
 0x39a   :  { %v859_v24 = vmul.f32 %v4905_v38, %v4905_v38  ;;  %v864_v16 = vmul.f32 %v4920_v11, %v4920_v11  ;;  %v865_v26 = vmul.f32 %v4923_v19, %v4923_v19  ;;  %v866_v32 = vmul.f32 %v4925_v25, %v4925_v25 }
 0x39b   :  { %v872_v34 = vadd.f32 %v857_v62, %v856_v53  ;;  %v4946_v41 = vsub.f32 %v4795_v13, %v1029_v3  ;;  %v4949_v50 = vsub.f32 %v4798_v14, %v1029_v3  ;;  %v4952_v51 = vsub.f32 %v4808_v21, %v1029_v3 }
 0x39c   :  { %v4955_v52 = vsub.f32 %v4816_v28, %v1029_v3  ;;  %v4958_v55 = vsub.f32 %v4824_v35, %v1029_v3  ;;  %v4961_v56 = vsub.f32 %v4832_v42, %v1029_v3  ;;  %v4964_v58 = vsub.f32 %v4840_v49, %v1029_v3 }
 0x39d   :  { %v873_v13 = vadd.f32 %v872_v34, %v858_v17  ;;  %v4967_v59 = vsub.f32 %v4848_v57, %v1029_v3  ;;  %v4970_v14 = vsub.f32 %v4858_v0, %v1029_v3  ;;  %v4973_v21 = vsub.f32 %v4867_v8, %v1029_v3 }
 0x39e   :  { %v4976_v28 = vsub.f32 %v4873_v20, %v1029_v3  ;;  %v4979_v35 = vsub.f32 %v4878_v29, %v1029_v3  ;;  %v4982_v42 = vsub.f32 %v4883_v37, %v1029_v3  ;;  %v4985_v49 = vsub.f32 %v4888_v45, %v1029_v3 }
 0x39f   :  { %v860_v57 = vmul.f32 %v4908_v40, %v4908_v40  ;;  %v874_v0 = vadd.f32 %v873_v13, %v859_v24  ;;  %v4989_v61 = vsub.f32 %v812_v54, %v1029_v3  ;;  %v4991_v8 = vsub.f32 %v813_v63, %v1029_v3 }
 0x3a0   :  { %v1046_v20 = vmul.f32 %v4946_v41, %v4946_v41  ;;  %v1047_v29 = vmul.f32 %v4949_v50, %v4949_v50  ;;  %v861_v37 = vmul.f32 %v4911_v43, %v4911_v43  ;;  %v862_v45 = vmul.f32 %v4914_v44, %v4914_v44 }
 0x3a1   :  { %v875_v1 = vadd.f32 %v874_v0, %v860_v57  ;;  %v1048_v54 = vmul.f32 %v4952_v51, %v4952_v51  ;;  %v863_v63 = vmul.f32 %v4917_v9, %v4917_v9  ;;  %v1049_v12 = vmul.f32 %v4955_v52, %v4955_v52 }
 0x3a2   :  { %v1062_v5 = vadd.f32 %v1047_v29, %v1046_v20  ;;  %v1050_v22 = vmul.f32 %v4958_v55, %v4958_v55  ;;  %v1051_v30 = vmul.f32 %v4961_v56, %v4961_v56  ;;  %v1052_v62 = vmul.f32 %v4964_v58, %v4964_v58 }
 0x3a3   :  { %v876_v2 = vadd.f32 %v875_v1, %v861_v37  ;;  %v867_v17 = vmul.f32 %v4927_v46, %v4927_v46  ;;  %v1053_v34 = vmul.f32 %v4967_v59, %v4967_v59  ;;  %v868_v57 = vmul.f32 %v4929_v33, %v4929_v33 }
 0x3a4   :  { %v1063_v15 = vadd.f32 %v1062_v5, %v1048_v54  ;;  %v1054_v20 = vmul.f32 %v4970_v14, %v4970_v14  ;;  %v869_v37 = vmul.f32 %v4931_v39, %v4931_v39  ;;  %v870_v54 = vmul.f32 %v4933_v48, %v4933_v48 }
 0x3a5   :  { %v877_v7 = vadd.f32 %v876_v2, %v862_v45  ;;  %v1055_v45 = vmul.f32 %v4973_v21, %v4973_v21 }
 0x3a6   :  { %v1064_v23 = vadd.f32 %v1063_v15, %v1049_v12  ;;  %v871_v12 = vmul.f32 %v4935_v47, %v4935_v47 }
 0x3a7   :  { %v878_v18 = vadd.f32 %v877_v7, %v863_v63  ;;  %v1056_v63 = vmul.f32 %v4976_v28, %v4976_v28 }
 0x3a8   :  { %v1065_v31 = vadd.f32 %v1064_v23, %v1050_v22  ;;  %v1058_v23 = vmul.f32 %v4982_v42, %v4982_v42 }
 0x3a9   :  { %v879_v27 = vadd.f32 %v878_v18, %v864_v16  ;;  %v1057_v16 = vmul.f32 %v4979_v35, %v4979_v35 }
 0x3aa   :  { %v1066_v3 = vadd.f32 %v1065_v31, %v1051_v30  ;;  %v1059_v30 = vmul.f32 %v4985_v49, %v4985_v49 }
 0x3ab   :  { %v880_v53 = vadd.f32 %v879_v27, %v865_v26 }
 0x3ac   :  { %v1067_v13 = vadd.f32 %v1066_v3, %v1052_v62 }
 0x3ad   :  { %v881_v24 = vadd.f32 %v880_v53, %v866_v32  ;;  %v1060_v53 = vmul.f32 %v4989_v61, %v4989_v61 }
 0x3ae   :  { %v1068_v29 = vadd.f32 %v1067_v13, %v1053_v34 }
 0x3af   :  { %v882_v0 = vadd.f32 %v881_v24, %v867_v17  ;;  %v1061_v17 = vmul.f32 %v4991_v8, %v4991_v8 }
 0x3b0   :  { %v1069_v2 = vadd.f32 %v1068_v29, %v1054_v20 }
 0x3b1   :  { %v883_v1 = vadd.f32 %v882_v0, %v868_v57 }
 0x3b2   :  { %v1070_v7 = vadd.f32 %v1069_v2, %v1055_v45 }
 0x3b3   :  { %v884_v5 = vadd.f32 %v883_v1, %v869_v37 }
 0x3b4   :  { %v1071_v18 = vadd.f32 %v1070_v7, %v1056_v63 }
 0x3b5   :  { %v885_v15 = vadd.f32 %v884_v5, %v870_v54 }
 0x3b6   :  { %v1072_v26 = vadd.f32 %v1071_v18, %v1057_v16  ;;  %v5051_v16 = vstv %s816_s24  ;;  %v5053_v18 = vstv %s3220_s8 }
 0x3b7   :  { %v886_v22 = vadd.f32 %v885_v15, %v871_v12  ;;  %v5049_v15 = vld [vmem:[#allocation8] ss:$0 sm:$0xff] }
 0x3b8   :  { %v1073_v31 = vadd.f32 %v1072_v26, %v1058_v23 }
 0x3b9   :  { %v887_v27 = vrot.slane %v886_v22, 4 }
 0x3ba   :  { %v1074_v62 = vadd.f32 %v1073_v31, %v1059_v30  ;;  %v5063_v30 = vld [vmem:[#allocation9] ss:$0 sm:$0xff] }
 0x3bb   :  { %v888_v32 = vadd.f32 %v887_v27, %v886_v22 }
 0x3bc   :  { %v1075_v24 = vadd.f32 %v1074_v62, %v1060_v53 }
 0x3bd   :  { %v889_v3 = vrot.slane %v888_v32, 2 }
 0x3be   :  { %v1076_v13 = vadd.f32 %v1075_v24, %v1061_v17 }
 0x3bf   :  { %v890_v34 = vadd.f32 %v889_v3, %v888_v32 }
 0x3c0   :  { %v1077_v0 = vrot.slane %v1076_v13, 4 }
 0x3c1   :  { %v891_v57 = vrot.slane %v890_v34, 1 }
 0x3c2   :  { %v1078_v29 = vadd.f32 %v1077_v0, %v1076_v13 }
 0x3c3   :  { %v892_v20 = vadd.f32 %v891_v57, %v890_v34 }
 0x3c4   :  { %v1079_v1 = vrot.slane %v1078_v29, 2 }
 0x3c5   :  { %v893_v37 = vmul.f32 0.0078125, %v892_v20 }
 0x3c6   :  { %v1080_v2 = vadd.f32 %v1079_v1, %v1078_v29 }
 0x3c7   :  { %v894_v45 = vadd.f32 1e-05, %v893_v37 }
 0x3c8   :  { %v1081_v54 = vrot.slane %v1080_v2, 1 }
 0x3c9   :  { %3747 = vrsqrt.f32 %v894_v45 }
 0x3ca   :  { %v1082_v5 = vadd.f32 %v1081_v54, %v1080_v2  ;;  %v5098_v2 = vld [vmem:[#allocation20] ss:$0 sm:$0xff] }
 0x3cc   :  { %v1083_v63 = vmul.f32 0.0078125, %v1082_v5 }
 0x3ce   :  { %v1084_v7 = vadd.f32 1e-05, %v1083_v63 }
 0x3d0   :  { %3749 = vrsqrt.f32 %v1084_v7 }
 0x3d3   :  { %v5047_v12 = vpop.eup %3747 }
 0x3d4   :  { %v911_v22 = vmul.f32 %v5047_v12, %v4935_v47  ;;  %v896_v23 = vmul.f32 %v5047_v12, %v4896_v4  ;;  %v897_v26 = vmul.f32 %v5047_v12, %v4899_v6  ;;  %v898_v27 = vmul.f32 %v5047_v12, %v4902_v36 }
 0x3d5   :  { %v899_v31 = vmul.f32 %v5047_v12, %v4905_v38  ;;  %v900_v32 = vmul.f32 %v5047_v12, %v4908_v40  ;;  %v901_v47 = vmul.f32 %v5047_v12, %v4911_v43  ;;  %v902_v4 = vmul.f32 %v5047_v12, %v4914_v44 }
 0x3d6   :  { %v933_v53 = vmul.f32 %v5049_v15, %v911_v22  ;;  %v918_v6 = vmul.f32 %v5049_v15, %v896_v23  ;;  %v919_v36 = vmul.f32 %v5049_v15, %v897_v26  ;;  %v920_v62 = vmul.f32 %v5049_v15, %v898_v27  ;;  %v5102_v26 = vld [vmem:[#allocation21] ss:$0 sm:$0xff] }
 0x3d7   :  { %v921_v3 = vmul.f32 %v5049_v15, %v899_v31  ;;  %v922_v38 = vmul.f32 %v5049_v15, %v900_v32  ;;  %v923_v40 = vmul.f32 %v5049_v15, %v901_v47  ;;  %v903_v43 = vmul.f32 %v5047_v12, %v4917_v9  ;;  %v3724_v47 = vld [vmem:[#allocation23 + $0x8] sm:$0xff]  }
 0x3d8   :  { %v5083_v17 = vadd.f32 %v5063_v30, %v933_v53  ;;  %v940_v44 = vadd.f32 %v5063_v30, %v918_v6  ;;  %v941_v24 = vadd.f32 %v5063_v30, %v919_v36  ;;  %v942_v34 = vadd.f32 %v5063_v30, %v920_v62 }
 0x3d9   :  { %v943_v13 = vadd.f32 %v5063_v30, %v921_v3  ;;  %v944_v57 = vadd.f32 %v5063_v30, %v922_v38  ;;  %v945_v0 = vadd.f32 %v5063_v30, %v923_v40  ;;  %v924_v20 = vmul.f32 %v5049_v15, %v902_v4 }
 0x3da   :  { %vm956_vm1 = vcmp.ge.f32.partialorder %v940_v44, 0.0  ;;  %vm957_vm2 = vcmp.ge.f32.partialorder %v941_v24, 0.0  ;;  %v973_v9 = vmul.f32 %v5051_v16, %v940_v44  ;;  %v974_v29 = vmul.f32 %v5051_v16, %v941_v24  ;;  %v5096_v45 = vpop.eup %3749 }
 0x3db   :  { %vm958_vm3 = vcmp.ge.f32.partialorder %v942_v34, 0.0  ;;  %vm959_vm4 = vcmp.ge.f32.partialorder %v943_v13, 0.0  ;;  %v975_v37 = vmul.f32 %v5051_v16, %v942_v34  ;;  %v976_v1 = vmul.f32 %v5051_v16, %v943_v13 }
 0x3dc   :  { %v989_v54 = vsel %vm956_vm1, %v940_v44, %v973_v9  ;;  %v990_v5 = vsel %vm957_vm2, %v941_v24, %v974_v29  ;;  %vm960_vm5 = vcmp.ge.f32.partialorder %v944_v57, 0.0  ;;  %vm961_vm6 = vcmp.ge.f32.partialorder %v945_v0, 0.0  ;;  %v3725_v24 = vld [vmem:[#allocation23 + $0x10] sm:$0xff]  }
 0x3dd   :  { %v1101_v63 = vmul.f32 %v5096_v45, %v4991_v8  ;;  %v1195_v7 = vpack.c.bf16 %v990_v5, %v989_v54  ;;  %v991_v22 = vsel %vm958_vm3, %v942_v34, %v975_v37  ;;  %v992_v23 = vsel %vm959_vm4, %v943_v13, %v976_v1 }
 0x3de   :  { %v1196_v27 = vpack.c.bf16 %v992_v23, %v991_v22  ;;  %v977_v31 = vmul.f32 %v5051_v16, %v944_v57  ;;  %v978_v32 = vmul.f32 %v5051_v16, %v945_v0  ;;  %v925_v4 = vmul.f32 %v5049_v15, %v903_v43 }
 0x3df   :  { %v1123_v53 = vmul.f32 %v5098_v2, %v1101_v63  ;;  %3560 = vmatprep.mubr.bf16.mxu1 %v1195_v7  ;;  %v946_v6 = vadd.f32 %v5063_v30, %v924_v20  ;;  %v904_v8 = vmul.f32 %v5047_v12, %v4920_v11  ;;  %v905_v36 = vmul.f32 %v5047_v12, %v4923_v19  ;;  %v3726_v7 = vld [vmem:[#allocation23 + $0x18] sm:$0xff]  }
 0x3e0   :  { %3561 = vmatmul.mubr.bf16.vlgmr.msra.gmra.mrb[16].mxu1 %v1196_v27  ;;  %v993_v62 = vsel %vm960_vm5, %v944_v57, %v977_v31  ;;  %v994_v3 = vsel %vm961_vm6, %v945_v0, %v978_v32  ;;  %v947_v38 = vadd.f32 %v5063_v30, %v925_v4  ;;  %v906_v40 = vmul.f32 %v5047_v12, %v4925_v25 }
 0x3e1   :  { %v5119_v43 = vadd.f32 %v5102_v26, %v1123_v53  ;;  %v1197_v44 = vpack.c.bf16 %v994_v3, %v993_v62  ;;  %3577 = vmatpush3.bf16.msra.mxu1 %v4852_v60  ;;  %vm962_vm7 = vcmp.ge.f32.partialorder %v946_v6, 0.0  ;;  %v979_v11 = vmul.f32 %v5051_v16, %v946_v6 }
 0x3e2   :  { %3578 = vmatprep.subr.bf16.mxu1 %v3724_v47  ;;  %vm963_vm8 = vcmp.ge.f32.partialorder %v947_v38, 0.0  ;;  %v980_v19 = vmul.f32 %v5051_v16, %v947_v38  ;;  %v926_v34 = vmul.f32 %v5049_v15, %v904_v8  ;;  %v927_v13 = vmul.f32 %v5049_v15, %v905_v36  ;;  %v3727_v8 = vld [vmem:[#allocation23 + $0x20] sm:$0xff]  }
 0x3e3   :  { %3564 = vmatprep.mubr.bf16.mxu1 %v1197_v44  ;;  %v995_v25 = vsel %vm962_vm7, %v946_v6, %v979_v11  ;;  %v907_v57 = vmul.f32 %v5047_v12, %v4927_v46  ;;  %v928_v0 = vmul.f32 %v5049_v15, %v906_v40  ;;  %v908_v60 = vmul.f32 %v5047_v12, %v4929_v33 }
 0x3e4   :  { %v996_v20 = vsel %vm963_vm8, %v947_v38, %v980_v19  ;;  %v948_v9 = vadd.f32 %v5063_v30, %v926_v34  ;;  %v949_v29 = vadd.f32 %v5063_v30, %v927_v13  ;;  %v909_v37 = vmul.f32 %v5047_v12, %v4931_v39 }
 0x3e5   :  { %3579 = vmatpush3.bf16.msra.mxu1 %v3724_v47  ;;  %v1198_v1 = vpack.c.bf16 %v996_v20, %v995_v25  ;;  %v929_v54 = vmul.f32 %v5049_v15, %v907_v57  ;;  %v950_v5 = vadd.f32 %v5063_v30, %v928_v0  ;;  %v930_v46 = vmul.f32 %v5049_v15, %v908_v60  ;;  %v3728_v25 = vld [vmem:[#allocation23 + $0x28] sm:$0xff]  }
 0x3e6   :  { %3580 = vmatprep.subr.bf16.mxu1 %v3725_v24  ;;  %vm964_vm9 = vcmp.ge.f32.partialorder %v948_v9, 0.0  ;;  %vm965_vm10 = vcmp.ge.f32.partialorder %v949_v29, 0.0  ;;  %v981_v33 = vmul.f32 %v5051_v16, %v948_v9  ;;  %v982_v63 = vmul.f32 %v5051_v16, %v949_v29 }
 0x3e7   :  { %v951_v22 = vadd.f32 %v5063_v30, %v929_v54  ;;  %vm966_vm11 = vcmp.ge.f32.partialorder %v950_v5, 0.0  ;;  %v983_v39 = vmul.f32 %v5051_v16, %v950_v5  ;;  %v931_v23 = vmul.f32 %v5049_v15, %v909_v37  ;;  %v3729_v37 = vld [vmem:[#allocation23 + $0x30] sm:$0xff]  }
 0x3e8   :  { %3565 = vmatmul.mubr.bf16.gmra.mrb[20].mxu1 %v1198_v1  ;;  %v997_v27 = vsel %vm964_vm9, %v948_v9, %v981_v33  ;;  %v998_v31 = vsel %vm965_vm10, %v949_v29, %v982_v63  ;;  %v952_v32 = vadd.f32 %v5063_v30, %v930_v46  ;;  %v910_v47 = vmul.f32 %v5047_v12, %v4933_v48 }
 0x3e9   :  { %v1199_v4 = vpack.c.bf16 %v998_v31, %v997_v27  ;;  %3581 = vmatpush3.bf16.msra.mxu1 %v3725_v24  ;;  %vm967_vm12 = vcmp.ge.f32.partialorder %v951_v22, 0.0  ;;  %v984_v53 = vmul.f32 %v5051_v16, %v951_v22  ;;  %v999_v6 = vsel %vm966_vm11, %v950_v5, %v983_v39  ;;  %v3730_v31 = vld [vmem:[#allocation23 + $0x38] sm:$0xff]  }
 0x3ea   :  { %3582 = vmatprep.subr.bf16.mxu1 %v3726_v7  ;;  %v953_v36 = vadd.f32 %v5063_v30, %v931_v23  ;;  %vm968_vm13 = vcmp.ge.f32.partialorder %v952_v32, 0.0  ;;  %v985_v62 = vmul.f32 %v5051_v16, %v952_v32  ;;  %v932_v3 = vmul.f32 %v5049_v15, %v910_v47 }
 0x3eb   :  { %3568 = vmatprep.mubr.bf16.mxu1 %v1199_v4  ;;  %v1000_v38 = vsel %vm967_vm12, %v951_v22, %v984_v53  ;;  %vm971_vm14 = vcmp.ge.f32.partialorder %v5083_v17, 0.0  ;;  %v988_v48 = vmul.f32 %v5051_v16, %v5083_v17  ;;  %v1086_v12 = vmul.f32 %v5096_v45, %v4946_v41 }
 0x3ec   :  { %v1200_v40 = vpack.c.bf16 %v1000_v38, %v999_v6  ;;  %vm969_vm15 = vcmp.ge.f32.partialorder %v953_v36, 0.0  ;;  %v986_v44 = vmul.f32 %v5051_v16, %v953_v36  ;;  %v1001_v11 = vsel %vm968_vm13, %v952_v32, %v985_v62 }
 0x3ed   :  { %3583 = vmatpush3.bf16.msra.mxu1 %v3726_v7  ;;  %v954_v19 = vadd.f32 %v5063_v30, %v932_v3  ;;  %v1004_v15 = vsel %vm971_vm14, %v5083_v17, %v988_v48  ;;  %v1087_v24 = vmul.f32 %v5096_v45, %v4949_v50  ;;  %v1108_v34 = vmul.f32 %v5098_v2, %v1086_v12 }
 0x3ee   :  { %3584 = vmatprep.subr.bf16.mxu1 %v3727_v8  ;;  %v1002_v13 = vsel %vm969_vm15, %v953_v36, %v986_v44  ;;  %v1088_v41 = vmul.f32 %v5096_v45, %v4952_v51  ;;  %v1089_v57 = vmul.f32 %v5096_v45, %v4955_v52  ;;  %v1090_v0 = vmul.f32 %v5096_v45, %v4958_v55 }
 0x3ef   :  { %v1201_v30 = vpack.c.bf16 %v1002_v13, %v1001_v11  ;;  %vm970_vm0 = vcmp.ge.f32.partialorder %v954_v19, 0.0  ;;  %v987_v17 = vmul.f32 %v5051_v16, %v954_v19  ;;  %v1109_v50 = vmul.f32 %v5098_v2, %v1087_v24 }
 0x3f0   :  { %3569 = vmatmul.mubr.bf16.gmra.mrb[24].mxu1 %v1200_v40  ;;  %v1130_v60 = vadd.f32 %v5102_v26, %v1108_v34  ;;  %v1110_v20 = vmul.f32 %v5098_v2, %v1088_v41  ;;  %v1111_v9 = vmul.f32 %v5098_v2, %v1089_v57  ;;  %v1091_v51 = vmul.f32 %v5096_v45, %v4961_v56 }
 0x3f1   :  { %3572 = vmatprep.mubr.bf16.mxu1 %v1201_v30  ;;  %3585 = vmatpush3.bf16.msra.mxu1 %v3727_v8  ;;  %v1003_v52 = vsel %vm970_vm0, %v954_v19, %v987_v17  ;;  %v1131_v55 = vadd.f32 %v5102_v26, %v1109_v50  ;;  %v1112_v29 = vmul.f32 %v5098_v2, %v1090_v0  ;;  %vm1161_vm15 = vcmp.ge.f32.partialorder %v5119_v43, 0.0 }
 0x3f2   :  { %3586 = vmatprep.subr.bf16.mxu1 %v3728_v25  ;;  %v1202_v16 = vpack.c.bf16 %v1004_v15, %v1003_v52  ;;  %vm1146_vm1 = vcmp.ge.f32.partialorder %v1130_v60, 0.0  ;;  %v1163_v1 = vmul.f32 %v5053_v18, %v1130_v60  ;;  %v1132_v54 = vadd.f32 %v5102_v26, %v1110_v20 }
 0x3f3   :  { %vm1147_vm2 = vcmp.ge.f32.partialorder %v1131_v55, 0.0  ;;  %v1164_v5 = vmul.f32 %v5053_v18, %v1131_v55  ;;  %v1133_v56 = vadd.f32 %v5102_v26, %v1111_v9  ;;  %v1113_v46 = vmul.f32 %v5098_v2, %v1091_v51 }
 0x3f4   :  { %v1179_v33 = vsel %vm1146_vm1, %v1130_v60, %v1163_v1  ;;  %vm1148_vm3 = vcmp.ge.f32.partialorder %v1132_v54, 0.0  ;;  %v1165_v63 = vmul.f32 %v5053_v18, %v1132_v54  ;;  %v1134_v7 = vadd.f32 %v5102_v26, %v1112_v29 }
 0x3f5   :  { %3587 = vmatpush3.bf16.msra.mxu1 %v3728_v25  ;;  %v1180_v22 = vsel %vm1147_vm2, %v1131_v55, %v1164_v5  ;;  %vm1149_vm4 = vcmp.ge.f32.partialorder %v1133_v56, 0.0  ;;  %v1166_v39 = vmul.f32 %v5053_v18, %v1133_v56  ;;  %v1135_v23 = vadd.f32 %v5102_v26, %v1113_v46 }
 0x3f6   :  { %3588 = vmatprep.subr.bf16.mxu1 %v3729_v37  ;;  %v1203_v27 = vpack.c.bf16 %v1180_v22, %v1179_v33  ;;  %v1181_v32 = vsel %vm1148_vm3, %v1132_v54, %v1165_v63  ;;  %vm1150_vm5 = vcmp.ge.f32.partialorder %v1134_v7, 0.0  ;;  %v1167_v47 = vmul.f32 %v5053_v18, %v1134_v7 }
 0x3f7   :  { %v1182_v4 = vsel %vm1149_vm4, %v1133_v56, %v1166_v39  ;;  %vm1151_vm6 = vcmp.ge.f32.partialorder %v1135_v23, 0.0  ;;  %v1168_v53 = vmul.f32 %v5053_v18, %v1135_v23  ;;  %v1092_v6 = vmul.f32 %v5096_v45, %v4964_v58 }
 0x3f8   :  { %3573 = vmatmul.mubr.bf16.gmra.mrb[28].mxu1 %v1202_v16  ;;  %v1204_v8 = vpack.c.bf16 %v1182_v4, %v1181_v32  ;;  %v1183_v36 = vsel %vm1150_vm5, %v1134_v7, %v1167_v47  ;;  %v1093_v62 = vmul.f32 %v5096_v45, %v4967_v59  ;;  %v1094_v3 = vmul.f32 %v5096_v45, %v4970_v14 }
 0x3f9   :  { %3589 = vmatpush3.bf16.msra.mxu1 %v3729_v37  ;;  %3592 = vmatprep.mubr.bf16.mxu1 %v1203_v27  ;;  %v1184_v38 = vsel %vm1151_vm6, %v1135_v23, %v1168_v53  ;;  %v1114_v48 = vmul.f32 %v5098_v2, %v1092_v6  ;;  %v1095_v12 = vmul.f32 %v5096_v45, %v4973_v21 }
 0x3fa   :  { %3590 = vmatprep.subr.bf16.mxu1 %v3730_v31  ;;  %v1205_v40 = vpack.c.bf16 %v1184_v38, %v1183_v36  ;;  %v1115_v58 = vmul.f32 %v5098_v2, %v1093_v62  ;;  %v1116_v44 = vmul.f32 %v5098_v2, %v1094_v3  ;;  %v1096_v59 = vmul.f32 %v5096_v45, %v4976_v28 }
 0x3fb   :  { %v1136_v11 = vadd.f32 %v5102_v26, %v1114_v48  ;;  %v1117_v14 = vmul.f32 %v5098_v2, %v1095_v12  ;;  %v1097_v19 = vmul.f32 %v5096_v45, %v4979_v35  ;;  %v1098_v15 = vmul.f32 %v5096_v45, %v4982_v42 }
 0x3fc   :  { %v1137_v21 = vadd.f32 %v5102_v26, %v1115_v58  ;;  %v1138_v24 = vadd.f32 %v5102_v26, %v1116_v44  ;;  %v1118_v34 = vmul.f32 %v5098_v2, %v1096_v59  ;;  %v1099_v13 = vmul.f32 %v5096_v45, %v4985_v49 }
 0x3fd   :  { %3591 = vmatpush3.bf16.msra.mxu1 %v3730_v31  ;;  %vm1152_vm7 = vcmp.ge.f32.partialorder %v1136_v11, 0.0  ;;  %v1169_v28 = vmul.f32 %v5053_v18, %v1136_v11  ;;  %v1139_v25 = vadd.f32 %v5102_v26, %v1117_v14  ;;  %v1119_v35 = vmul.f32 %v5098_v2, %v1097_v19 }
 0x3fe   :  { %vm1153_vm8 = vcmp.ge.f32.partialorder %v1137_v21, 0.0  ;;  %v1170_v42 = vmul.f32 %v5053_v18, %v1137_v21  ;;  %vm1154_vm9 = vcmp.ge.f32.partialorder %v1138_v24, 0.0  ;;  %v1171_v41 = vmul.f32 %v5053_v18, %v1138_v24 }
 0x3ff   :  { %v1185_v57 = vsel %vm1152_vm7, %v1136_v11, %v1169_v28  ;;  %vm1155_vm10 = vcmp.ge.f32.partialorder %v1139_v25, 0.0  ;;  %v1172_v0 = vmul.f32 %v5053_v18, %v1139_v25  ;;  %v1140_v49 = vadd.f32 %v5102_v26, %v1118_v34 }
 0x400   :  { %3593 = vmatmul.mubr.bf16.vlgmr.msra.gmra.mrb[32].mxu1 %v1204_v8  ;;  %v1186_v30 = vsel %vm1153_vm8, %v1137_v21, %v1170_v42  ;;  %v1187_v17 = vsel %vm1154_vm9, %v1138_v24, %v1171_v41  ;;  %v1141_v50 = vadd.f32 %v5102_v26, %v1119_v35  ;;  %v1120_v60 = vmul.f32 %v5098_v2, %v1098_v15 }
 0x401   :  { %3596 = vmatprep.mubr.bf16.mxu1 %v1205_v40  ;;  %v1206_v20 = vpack.c.bf16 %v1186_v30, %v1185_v57  ;;  %v1188_v9 = vsel %vm1155_vm10, %v1139_v25, %v1172_v0  ;;  %vm1156_vm11 = vcmp.ge.f32.partialorder %v1140_v49, 0.0  ;;  %v1173_v51 = vmul.f32 %v5053_v18, %v1140_v49 }
 0x402   :  { %v1207_v52 = vpack.c.bf16 %v1188_v9, %v1187_v17  ;;  %vm1157_vm12 = vcmp.ge.f32.partialorder %v1141_v50, 0.0  ;;  %v1174_v55 = vmul.f32 %v5053_v18, %v1141_v50  ;;  %v1121_v29 = vmul.f32 %v5098_v2, %v1099_v13 }
 0x403   :  { %v1189_v16 = vsel %vm1156_vm11, %v1140_v49, %v1173_v51  ;;  %v1142_v37 = vadd.f32 %v5102_v26, %v1120_v60  ;;  %v1100_v1 = vmul.f32 %v5096_v45, %v4989_v61  ;;  %v1178_v56 = vmul.f32 %v5053_v18, %v5119_v43 }
 0x404   :  { %v1190_v54 = vsel %vm1157_vm12, %v1141_v50, %v1174_v55  ;;  %v1143_v5 = vadd.f32 %v5102_v26, %v1121_v29 }
 0x405   :  { %v1208_v46 = vpack.c.bf16 %v1190_v54, %v1189_v16  ;;  %vm1158_vm13 = vcmp.ge.f32.partialorder %v1142_v37, 0.0  ;;  %v1175_v33 = vmul.f32 %v5053_v18, %v1142_v37  ;;  %v1122_v63 = vmul.f32 %v5098_v2, %v1100_v1  ;;  %v3853_v54 = vld [vmem:[%s6304_s22] sm:$0xff]  }
 0x406   :  { %vm1159_vm14 = vcmp.ge.f32.partialorder %v1143_v5, 0.0  ;;  %v1176_v7 = vmul.f32 %v5053_v18, %v1143_v5  ;;  %v1194_v27 = vsel %vm1161_vm15, %v5119_v43, %v1178_v56  ;;  %v3855_v56 = vld [vmem:[%s6304_s22 + $0x10] sm:$0xff]  }
 0x407   :  { %v1191_v22 = vsel %vm1158_vm13, %v1142_v37, %v1175_v33  ;;  %v1144_v61 = vadd.f32 %v5102_v26, %v1122_v63  ;;  %v3857_v33 = vld [vmem:[%s6304_s22 + $0x20] sm:$0xff]   ;;  %v3858_v63 = vld [vmem:[%s6304_s22 + $0x28] sm:$0xff]  }
 0x408   :  { %3597 = vmatmul.mubr.bf16.gmra.mrb[36].mxu1 %v1206_v20  ;;  %v1192_v45 = vsel %vm1159_vm14, %v1143_v5, %v1176_v7  ;;  %v3854_v5 = vld [vmem:[%s6304_s22 + $0x8] sm:$0xff]   ;;  %v3859_v7 = vld [vmem:[%s6304_s22 + $0x30] sm:$0xff]  }
 0x409   :  { %3600 = vmatprep.mubr.bf16.mxu1 %v1207_v52  ;;  %v1209_v39 = vpack.c.bf16 %v1192_v45, %v1191_v22  ;;  %vm1160_vm0 = vcmp.ge.f32.partialorder %v1144_v61, 0.0  ;;  %v1177_v23 = vmul.f32 %v5053_v18, %v1144_v61  ;;  %v3860_v22 = vld [vmem:[%s6304_s22 + $0x38] sm:$0xff]   ;;  %v5267_v45 = vld [vmem:[#allocation12] ss:$0 sm:$0xff] }
 0x40b   :  { %v1193_v31 = vsel %vm1160_vm0, %v1144_v61, %v1177_v23  ;;  %v5269_v23 = vld [vmem:[#allocation24] ss:$0 sm:$0xff] }
 0x40c   :  { %v1210_v32 = vpack.c.bf16 %v1194_v27, %v1193_v31 }
 0x410   :  { %3601 = vmatmul.mubr.bf16.gmra.mrb[40].mxu1 %v1208_v46  ;;  %v3856_v46 = vld [vmem:[%s6304_s22 + $0x18] sm:$0xff]  }
 0x411   :  { %3604 = vmatprep.mubr.bf16.mxu1 %v1209_v39 }
 0x418   :  { %3605 = vmatmul.mubr.bf16.gmra.mrb[44].mxu1 %v1210_v32 }
 0x4b3   :  { %v3562_v2 = vpop.f32.mrb[16].mxu1 }
 0x4b4   :  { %v1309_v47 = vpop.f32.mrb[17].mxu1 }
 0x4b5   :  { %v3563_v4 = vpop.f32.mrb[18].mxu1 }
 0x4b6   :  { %v1535_v53 = vpack.c.bf16 %v3563_v4, %v3562_v2  ;;  %v1312_v6 = vpop.f32.mrb[19].mxu1 }
 0x4b7   :  { %v1533_v26 = vpack.c.bf16 %v1312_v6, %v1309_v47 }
 0x4bb   :  { %v3566_v8 = vpop.f32.mrb[20].mxu1 }
 0x4bc   :  { %v1325_v36 = vpop.f32.mrb[21].mxu1 }
 0x4bd   :  { %v3567_v62 = vpop.f32.mrb[22].mxu1 }
 0x4be   :  { %v1539_v3 = vpack.c.bf16 %v3567_v62, %v3566_v8  ;;  %v1328_v38 = vpop.f32.mrb[23].mxu1 }
 0x4bf   :  { %v1537_v48 = vpack.c.bf16 %v1328_v38, %v1325_v36 }
 0x4c3   :  { %v3570_v18 = vpop.f32.mrb[24].mxu1 }
 0x4c4   :  { %v1341_v12 = vpop.f32.mrb[25].mxu1 }
 0x4c5   :  { %v3571_v43 = vpop.f32.mrb[26].mxu1 }
 0x4c6   :  { %v1543_v40 = vpack.c.bf16 %v3571_v43, %v3570_v18  ;;  %v1344_v58 = vpop.f32.mrb[27].mxu1 }
 0x4c7   :  { %v1541_v44 = vpack.c.bf16 %v1344_v58, %v1341_v12 }
 0x4cb   :  { %v3574_v59 = vpop.f32.mrb[28].mxu1 }
 0x4cc   :  { %v1357_v11 = vpop.f32.mrb[29].mxu1 }
 0x4cd   :  { %v3575_v14 = vpop.f32.mrb[30].mxu1 }
 0x4ce   :  { %v1547_v19 = vpack.c.bf16 %v3575_v14, %v3574_v59  ;;  %v1360_v15 = vpop.f32.mrb[31].mxu1 }
 0x4cf   :  { %v1545_v21 = vpack.c.bf16 %v1360_v15, %v1357_v11 }
 0x4d3   :  { %v3594_v24 = vpop.f32.mrb[32].mxu1 }
 0x4d4   :  { %v1470_v34 = vpop.f32.mrb[33].mxu1 }
 0x4d5   :  { %v3595_v13 = vpop.f32.mrb[34].mxu1 }
 0x4d6   :  { %v1536_v28 = vpack.c.bf16 %v3595_v13, %v3594_v24  ;;  %v1473_v25 = vpop.f32.mrb[35].mxu1 }
 0x4d7   :  { %v1534_v35 = vpack.c.bf16 %v1473_v25, %v1470_v34 }
 0x4d9   :  { %1549 = vmatprep.subr.bf16.mxu0 %v1534_v35 }
 0x4da   :  { %1550 = vmatpush1.bf16.msra.mxu0 %v1533_v26 }
 0x4db   :  { %v3598_v42 = vpop.f32.mrb[36].mxu1  ;;  %1551 = vmatprep.subr.bf16.mxu0 %v1536_v28 }
 0x4dc   :  { %v1486_v41 = vpop.f32.mrb[37].mxu1 }
 0x4dd   :  { %v3599_v57 = vpop.f32.mrb[38].mxu1 }
 0x4de   :  { %v1540_v0 = vpack.c.bf16 %v3599_v57, %v3598_v42  ;;  %v1489_v49 = vpop.f32.mrb[39].mxu1  ;;  %1552 = vmatpush1.bf16.msra.mxu0 %v1535_v53  ;;  %v3732_v57 = vld [vmem:[%s6253_s18 + $0x8] sm:$0xff]  }
 0x4df   :  { %v1538_v30 = vpack.c.bf16 %v1489_v49, %v1486_v41  ;;  %v3731_v41 = vld [vmem:[%s6253_s18] sm:$0xff]  }
 0x4e0   :  { %3608 = vmatprep.subr.bf16.mxu1 %v3731_v41 }
 0x4e1   :  { %1553 = vmatprep.subr.bf16.mxu0 %v1538_v30  ;;  %3609 = vmatpush3.bf16.msra.mxu1 %v3731_v41 }
 0x4e2   :  { %1554 = vmatpush1.bf16.msra.mxu0 %v1537_v48  ;;  %3610 = vmatprep.subr.bf16.mxu1 %v3732_v57 }
 0x4e3   :  { %v3602_v17 = vpop.f32.mrb[40].mxu1  ;;  %1555 = vmatprep.subr.bf16.mxu0 %v1540_v0 }
 0x4e4   :  { %v1502_v50 = vpop.f32.mrb[41].mxu1 }
 0x4e5   :  { %v3603_v60 = vpop.f32.mrb[42].mxu1  ;;  %3611 = vmatpush3.bf16.msra.mxu1 %v3732_v57 }
 0x4e6   :  { %v1544_v20 = vpack.c.bf16 %v3603_v60, %v3602_v17  ;;  %v1505_v9 = vpop.f32.mrb[43].mxu1  ;;  %1556 = vmatpush1.bf16.msra.mxu0 %v1539_v3 }
 0x4e7   :  { %v1542_v51 = vpack.c.bf16 %v1505_v9, %v1502_v50 }
 0x4e9   :  { %1557 = vmatprep.subr.bf16.mxu0 %v1542_v51  ;;  %v3733_v51 = vld [vmem:[%s6253_s18 + $0x10] sm:$0xff]  }
 0x4ea   :  { %1558 = vmatpush1.bf16.msra.mxu0 %v1541_v44  ;;  %3612 = vmatprep.subr.bf16.mxu1 %v3733_v51 }
 0x4eb   :  { %v3606_v52 = vpop.f32.mrb[44].mxu1  ;;  %1559 = vmatprep.subr.bf16.mxu0 %v1544_v20  ;;  %3613 = vmatpush3.bf16.msra.mxu1 %v3733_v51 }
 0x4ec   :  { %v1518_v55 = vpop.f32.mrb[45].mxu1 }
 0x4ed   :  { %v3607_v29 = vpop.f32.mrb[46].mxu1 }
 0x4ee   :  { %v1548_v16 = vpack.c.bf16 %v3607_v29, %v3606_v52  ;;  %v1521_v37 = vpop.f32.mrb[47].mxu1  ;;  %1560 = vmatpush1.bf16.msra.mxu0 %v1543_v40 }
 0x4ef   :  { %v1546_v1 = vpack.c.bf16 %v1521_v37, %v1518_v55  ;;  %v3734_v37 = vld [vmem:[%s6253_s18 + $0x18] sm:$0xff]  }
 0x4f0   :  { %3614 = vmatprep.subr.bf16.mxu1 %v3734_v37 }
 0x4f1   :  { %1561 = vmatprep.subr.bf16.mxu0 %v1546_v1  ;;  %3615 = vmatpush3.bf16.msra.mxu1 %v3734_v37 }
 0x4f2   :  { %1562 = vmatpush1.bf16.msra.mxu0 %v1545_v21 }
 0x4f3   :  { %1563 = vmatprep.subr.bf16.mxu0 %v1548_v16 }
 0x4f6   :  { %1564 = vmatpush1.bf16.msra.mxu0 %v1547_v19 }
 0x4f9   :  { %1582 = vmatmul.mubr.bf16.vlgmr.msra.gmra.mrb[48].mxu0 %v3853_v54 }
 0x4fa   :  { %1591 = vmatprep.mubr.bf16.mxu0 %v4333_v10 }
 0x501   :  { %1592 = vmatmul.mubr.bf16.gmra.mrb[52].mxu0 %v3854_v5 }
 0x502   :  { %1601 = vmatprep.mubr.bf16.mxu0 %v4333_v10 }
 0x509   :  { %1602 = vmatmul.mubr.bf16.gmra.mrb[56].mxu0 %v3855_v56 }
 0x50a   :  { %1611 = vmatprep.mubr.bf16.mxu0 %v4333_v10 }
 0x511   :  { %1612 = vmatmul.mubr.bf16.gmra.mrb[60].mxu0 %v3856_v46 }
 0x512   :  { %1621 = vmatprep.mubr.bf16.mxu0 %v4333_v10 }
 0x519   :  { %1622 = vmatmul.mubr.bf16.gmra.mrb[64].mxu0 %v3857_v33 }
 0x51a   :  { %1631 = vmatprep.mubr.bf16.mxu0 %v4333_v10 }
 0x521   :  { %1632 = vmatmul.mubr.bf16.gmra.mrb[68].mxu0 %v3858_v63 }
 0x522   :  { %1641 = vmatprep.mubr.bf16.mxu0 %v4333_v10 }
 0x529   :  { %1642 = vmatmul.mubr.bf16.gmra.mrb[72].mxu0 %v3859_v7 }
 0x52a   :  { %1651 = vmatprep.mubr.bf16.mxu0 %v4333_v10 }
 0x531   :  { %1652 = vmatmul.mubr.bf16.gmra.mrb[76].mxu0 %v3860_v22  ;;  %v3735_v22 = vld [vmem:[%s6253_s18 + $0x20] sm:$0xff]  }
 0x532   :  { %3616 = vmatprep.subr.bf16.mxu1 %v3735_v22 }
 0x533   :  { %3617 = vmatpush3.bf16.msra.mxu1 %v3735_v22 }
 0x5cc   :  { %v1583_v61 = vpop.f32.mrb[48].mxu0 }
 0x5cd   :  { %v1585_v39 = vpop.f32.mrb[49].mxu0  ;;  %v5272_v31 = vadd.f32 %v5267_v45, %v1583_v61 }
 0x5ce   :  { %v1587_v27 = vpop.f32.mrb[50].mxu0  ;;  %v5278_v10 = vadd.f32 %v5269_v23, %v1585_v39 }
 0x5cf   :  { %v5275_v32 = vadd.f32 %v5267_v45, %v1587_v27  ;;  %v1589_v2 = vpop.f32.mrb[51].mxu0 }
 0x5d0   :  { %v5281_v47 = vadd.f32 %v5269_v23, %v1589_v2 }
 0x5d1   :  { %v1711_v4 = vadd.f32 %v5275_v32, %v5272_v31 }
 0x5d2   :  { %v1901_v53 = vadd.f32 %v5281_v47, %v5278_v10 }
 0x5d4   :  { %v1593_v6 = vpop.f32.mrb[52].mxu0 }
 0x5d5   :  { %v5288_v26 = vadd.f32 %v5267_v45, %v1593_v6  ;;  %v1595_v8 = vpop.f32.mrb[53].mxu0 }
 0x5d6   :  { %v5291_v36 = vadd.f32 %v5269_v23, %v1595_v8  ;;  %v1597_v62 = vpop.f32.mrb[54].mxu0 }
 0x5d7   :  { %v1712_v3 = vadd.f32 %v1711_v4, %v5288_v26  ;;  %v5295_v38 = vadd.f32 %v5267_v45, %v1597_v62  ;;  %v1599_v48 = vpop.f32.mrb[55].mxu0  ;;  %v3736_v4 = vld [vmem:[%s6253_s18 + $0x28] sm:$0xff]  }
 0x5d8   :  { %v1902_v18 = vadd.f32 %v1901_v53, %v5291_v36  ;;  %v5299_v12 = vadd.f32 %v5269_v23, %v1599_v48  ;;  %3618 = vmatprep.subr.bf16.mxu1 %v3736_v4 }
 0x5d9   :  { %v1713_v43 = vadd.f32 %v1712_v3, %v5295_v38  ;;  %3619 = vmatpush3.bf16.msra.mxu1 %v3736_v4 }
 0x5da   :  { %v1903_v40 = vadd.f32 %v1902_v18, %v5299_v12 }
 0x5dc   :  { %v1603_v58 = vpop.f32.mrb[56].mxu0 }
 0x5dd   :  { %v5304_v44 = vadd.f32 %v5267_v45, %v1603_v58  ;;  %v1605_v59 = vpop.f32.mrb[57].mxu0 }
 0x5de   :  { %v5307_v11 = vadd.f32 %v5269_v23, %v1605_v59  ;;  %v1607_v14 = vpop.f32.mrb[58].mxu0 }
 0x5df   :  { %v1714_v19 = vadd.f32 %v1713_v43, %v5304_v44  ;;  %v5311_v15 = vadd.f32 %v5267_v45, %v1607_v14  ;;  %v1609_v21 = vpop.f32.mrb[59].mxu0 }
 0x5e0   :  { %v1904_v24 = vadd.f32 %v1903_v40, %v5307_v11  ;;  %v5315_v34 = vadd.f32 %v5269_v23, %v1609_v21  ;;  %v3737_v40 = vld [vmem:[%s6253_s18 + $0x30] sm:$0xff]   ;;  %v3738_v21 = vld [vmem:[%s6253_s18 + $0x38] sm:$0xff]   ;;  %s3241_s18 = sld [smem:[#allocation27 + $0x1]] }
 0x5e1   :  { %v1715_v13 = vadd.f32 %v1714_v19, %v5311_v15  ;;  %3620 = vmatprep.subr.bf16.mxu1 %v3737_v40 }
 0x5e2   :  { %v1905_v28 = vadd.f32 %v1904_v24, %v5315_v34  ;;  %3621 = vmatpush3.bf16.msra.mxu1 %v3737_v40 }
 0x5e3   :  { %3622 = vmatprep.subr.bf16.mxu1 %v3738_v21 }
 0x5e4   :  { %v1613_v25 = vpop.f32.mrb[60].mxu0 }
 0x5e5   :  { %v5320_v35 = vadd.f32 %v5267_v45, %v1613_v25  ;;  %v1615_v42 = vpop.f32.mrb[61].mxu0 }
 0x5e6   :  { %v5329_v0 = vadd.f32 %v5269_v23, %v1615_v42  ;;  %v1617_v49 = vpop.f32.mrb[62].mxu0  ;;  %3623 = vmatpush3.bf16.msra.mxu1 %v3738_v21 }
 0x5e7   :  { %v1716_v30 = vadd.f32 %v1715_v13, %v5320_v35  ;;  %v5333_v17 = vadd.f32 %v5267_v45, %v1617_v49  ;;  %v1619_v50 = vpop.f32.mrb[63].mxu0 }
 0x5e8   :  { %v1906_v60 = vadd.f32 %v1905_v28, %v5329_v0  ;;  %v5337_v20 = vadd.f32 %v5269_v23, %v1619_v50 }
 0x5e9   :  { %v1717_v9 = vadd.f32 %v1716_v30, %v5333_v17 }
 0x5ea   :  { %v1907_v52 = vadd.f32 %v1906_v60, %v5337_v20 }
 0x5ec   :  { %v1623_v55 = vpop.f32.mrb[64].mxu0 }
 0x5ed   :  { %v5345_v29 = vadd.f32 %v5267_v45, %v1623_v55  ;;  %v1625_v16 = vpop.f32.mrb[65].mxu0 }
 0x5ee   :  { %v5351_v1 = vadd.f32 %v5269_v23, %v1625_v16  ;;  %v1627_v54 = vpop.f32.mrb[66].mxu0 }
 0x5ef   :  { %v1718_v5 = vadd.f32 %v1717_v9, %v5345_v29  ;;  %v5355_v56 = vadd.f32 %v5267_v45, %v1627_v54  ;;  %v1629_v46 = vpop.f32.mrb[67].mxu0 }
 0x5f0   :  { %v1908_v33 = vadd.f32 %v1907_v52, %v5351_v1  ;;  %v5359_v63 = vadd.f32 %v5269_v23, %v1629_v46 }
 0x5f1   :  { %v1719_v7 = vadd.f32 %v1718_v5, %v5355_v56 }
 0x5f2   :  { %v1909_v61 = vadd.f32 %v1908_v33, %v5359_v63 }
 0x5f4   :  { %v1633_v39 = vpop.f32.mrb[68].mxu0 }
 0x5f5   :  { %v5367_v27 = vadd.f32 %v5267_v45, %v1633_v39  ;;  %v1635_v2 = vpop.f32.mrb[69].mxu0 }
 0x5f6   :  { %v5373_v53 = vadd.f32 %v5269_v23, %v1635_v2  ;;  %v1637_v6 = vpop.f32.mrb[70].mxu0 }
 0x5f7   :  { %v1720_v8 = vadd.f32 %v1719_v7, %v5367_v27  ;;  %v5377_v62 = vadd.f32 %v5267_v45, %v1637_v6  ;;  %v1639_v3 = vpop.f32.mrb[71].mxu0 }
 0x5f8   :  { %v1910_v48 = vadd.f32 %v1909_v61, %v5373_v53  ;;  %v5381_v18 = vadd.f32 %v5269_v23, %v1639_v3 }
 0x5f9   :  { %v1721_v43 = vadd.f32 %v1720_v8, %v5377_v62 }
 0x5fa   :  { %v1911_v58 = vadd.f32 %v1910_v48, %v5381_v18 }
 0x5fc   :  { %v1643_v59 = vpop.f32.mrb[72].mxu0 }
 0x5fd   :  { %v1681_v14 = vadd.f32 %v5267_v45, %v1643_v59  ;;  %v1645_v19 = vpop.f32.mrb[73].mxu0 }
 0x5fe   :  { %v5393_v24 = vadd.f32 %v5269_v23, %v1645_v19  ;;  %v1647_v13 = vpop.f32.mrb[74].mxu0 }
 0x5ff   :  { %v1722_v28 = vadd.f32 %v1721_v43, %v1681_v14  ;;  %v1682_v25 = vadd.f32 %v5267_v45, %v1647_v13  ;;  %v1649_v42 = vpop.f32.mrb[75].mxu0 }
 0x600   :  { %v1912_v41 = vadd.f32 %v1911_v58, %v5393_v24  ;;  %v5398_v57 = vadd.f32 %v5269_v23, %v1649_v42 }
 0x601   :  { %v1723_v49 = vadd.f32 %v1722_v28, %v1682_v25 }
 0x602   :  { %v1913_v30 = vadd.f32 %v1912_v41, %v5398_v57 }
 0x604   :  { %v1653_v50 = vpop.f32.mrb[76].mxu0 }
 0x605   :  { %v1683_v60 = vadd.f32 %v5267_v45, %v1653_v50  ;;  %v1655_v9 = vpop.f32.mrb[77].mxu0 }
 0x606   :  { %v1706_v51 = vadd.f32 %v5269_v23, %v1655_v9  ;;  %v1657_v52 = vpop.f32.mrb[78].mxu0 }
 0x607   :  { %v1724_v55 = vadd.f32 %v1723_v49, %v1683_v60  ;;  %v1684_v16 = vadd.f32 %v5267_v45, %v1657_v52  ;;  %v1659_v37 = vpop.f32.mrb[79].mxu0 }
 0x608   :  { %v1914_v54 = vadd.f32 %v1913_v30, %v1706_v51  ;;  %v1707_v5 = vadd.f32 %v5269_v23, %v1659_v37 }
 0x609   :  { %v1725_v46 = vadd.f32 %v1724_v55, %v1684_v16 }
 0x60a   :  { %v1915_v33 = vadd.f32 %v1914_v54, %v1707_v5 }
 0x60b   :  { %v1726_v7 = vrot.slane %v1725_v46, 4 }
 0x60c   :  { %v1916_v22 = vrot.slane %v1915_v33, 4 }
 0x60d   :  { %v1727_v61 = vadd.f32 %v1726_v7, %v1725_v46 }
 0x60e   :  { %v1917_v39 = vadd.f32 %v1916_v22, %v1915_v33 }
 0x60f   :  { %v1728_v2 = vrot.slane %v1727_v61, 2 }
 0x610   :  { %v1918_v4 = vrot.slane %v1917_v39, 2 }
 0x611   :  { %v1729_v6 = vadd.f32 %v1728_v2, %v1727_v61 }
 0x612   :  { %v1919_v8 = vadd.f32 %v1918_v4, %v1917_v39 }
 0x613   :  { %v1730_v3 = vrot.slane %v1729_v6, 1 }
 0x614   :  { %v1920_v48 = vrot.slane %v1919_v8, 1 }
 0x615   :  { %v1731_v43 = vadd.f32 %v1730_v3, %v1729_v6 }
 0x616   :  { %v1921_v58 = vadd.f32 %v1920_v48, %v1919_v8 }
 0x617   :  { %v1732_v40 = vmul.f32 0.0078125, %v1731_v43 }
 0x618   :  { %v1922_v41 = vmul.f32 0.0078125, %v1921_v58 }
 0x619   :  { %v5406_v45 = vsub.f32 %v5272_v31, %v1732_v40  ;;  %v5409_v23 = vsub.f32 %v5275_v32, %v1732_v40  ;;  %v5412_v59 = vsub.f32 %v5288_v26, %v1732_v40  ;;  %v5415_v19 = vsub.f32 %v5295_v38, %v1732_v40 }
 0x61a   :  { %v5418_v21 = vsub.f32 %v5304_v44, %v1732_v40  ;;  %v5421_v13 = vsub.f32 %v5311_v15, %v1732_v40  ;;  %v5424_v28 = vsub.f32 %v5320_v35, %v1732_v40  ;;  %v5427_v31 = vsub.f32 %v5333_v17, %v1732_v40 }
 0x61b   :  { %v5430_v32 = vsub.f32 %v5345_v29, %v1732_v40  ;;  %v5433_v26 = vsub.f32 %v5355_v56, %v1732_v40  ;;  %v5436_v38 = vsub.f32 %v5367_v27, %v1732_v40  ;;  %v5439_v44 = vsub.f32 %v5377_v62, %v1732_v40 }
 0x61c   :  { %v5441_v15 = vsub.f32 %v1681_v14, %v1732_v40  ;;  %v5443_v42 = vsub.f32 %v1682_v25, %v1732_v40  ;;  %v5445_v35 = vsub.f32 %v1683_v60, %v1732_v40  ;;  %v5447_v17 = vsub.f32 %v1684_v16, %v1732_v40 }
 0x61d   :  { %v1749_v29 = vmul.f32 %v5406_v45, %v5406_v45  ;;  %v1750_v56 = vmul.f32 %v5409_v23, %v5409_v23  ;;  %v1751_v27 = vmul.f32 %v5412_v59, %v5412_v59  ;;  %v1752_v62 = vmul.f32 %v5415_v19, %v5415_v19 }
 0x61e   :  { %v5458_v25 = vsub.f32 %v5278_v10, %v1922_v41  ;;  %v5461_v49 = vsub.f32 %v5281_v47, %v1922_v41  ;;  %v5464_v30 = vsub.f32 %v5291_v36, %v1922_v41  ;;  %v5467_v50 = vsub.f32 %v5299_v12, %v1922_v41 }
 0x61f   :  { %v1765_v14 = vadd.f32 %v1750_v56, %v1749_v29  ;;  %v5470_v60 = vsub.f32 %v5307_v11, %v1922_v41  ;;  %v5473_v9 = vsub.f32 %v5315_v34, %v1922_v41  ;;  %v5476_v52 = vsub.f32 %v5329_v0, %v1922_v41 }
 0x620   :  { %v5479_v55 = vsub.f32 %v5337_v20, %v1922_v41  ;;  %v5482_v47 = vsub.f32 %v5351_v1, %v1922_v41  ;;  %v5485_v36 = vsub.f32 %v5359_v63, %v1922_v41  ;;  %v5488_v12 = vsub.f32 %v5373_v53, %v1922_v41 }
 0x621   :  { %v1766_v10 = vadd.f32 %v1765_v14, %v1751_v27  ;;  %v5491_v11 = vsub.f32 %v5381_v18, %v1922_v41  ;;  %v5494_v34 = vsub.f32 %v5393_v24, %v1922_v41  ;;  %v5497_v0 = vsub.f32 %v5398_v57, %v1922_v41 }
 0x622   :  { %v1753_v20 = vmul.f32 %v5418_v21, %v5418_v21  ;;  %v5501_v16 = vsub.f32 %v1706_v51, %v1922_v41  ;;  %v5503_v63 = vsub.f32 %v1707_v5, %v1922_v41  ;;  %v1939_v53 = vmul.f32 %v5458_v25, %v5458_v25 }
 0x623   :  { %v1767_v1 = vadd.f32 %v1766_v10, %v1752_v62  ;;  %v1940_v18 = vmul.f32 %v5461_v49, %v5461_v49  ;;  %v1754_v24 = vmul.f32 %v5421_v13, %v5421_v13  ;;  %v1755_v57 = vmul.f32 %v5424_v28, %v5424_v28 }
 0x624   :  { %v1941_v51 = vmul.f32 %v5464_v30, %v5464_v30  ;;  %v1756_v5 = vmul.f32 %v5427_v31, %v5427_v31  ;;  %v1942_v7 = vmul.f32 %v5467_v50, %v5467_v50  ;;  %v1757_v61 = vmul.f32 %v5430_v32, %v5430_v32 }
 0x625   :  { %v1768_v37 = vadd.f32 %v1767_v1, %v1753_v20  ;;  %v1955_v46 = vadd.f32 %v1940_v18, %v1939_v53  ;;  %v1943_v2 = vmul.f32 %v5470_v60, %v5470_v60  ;;  %v1758_v6 = vmul.f32 %v5433_v26, %v5433_v26 }
 0x626   :  { %v1944_v3 = vmul.f32 %v5473_v9, %v5473_v9  ;;  %v1759_v43 = vmul.f32 %v5436_v38, %v5436_v38  ;;  %v1945_v58 = vmul.f32 %v5476_v52, %v5476_v52  ;;  %v1760_v56 = vmul.f32 %v5439_v44, %v5439_v44 }
 0x627   :  { %v1769_v54 = vadd.f32 %v1768_v37, %v1754_v24  ;;  %v1956_v22 = vadd.f32 %v1955_v46, %v1941_v51  ;;  %v1946_v27 = vmul.f32 %v5479_v55, %v5479_v55  ;;  %v1761_v14 = vmul.f32 %v5441_v15, %v5441_v15 }
 0x628   :  { %v1947_v20 = vmul.f32 %v5482_v47, %v5482_v47  ;;  %v1762_v53 = vmul.f32 %v5443_v42, %v5443_v42  ;;  %v1948_v24 = vmul.f32 %v5485_v36, %v5485_v36  ;;  %v1949_v51 = vmul.f32 %v5488_v12, %v5488_v12 }
 0x629   :  { %v1770_v33 = vadd.f32 %v1769_v54, %v1755_v57  ;;  %v1957_v4 = vadd.f32 %v1956_v22, %v1942_v7  ;;  %v1763_v57 = vmul.f32 %v5445_v35, %v5445_v35  ;;  %v1950_v7 = vmul.f32 %v5491_v11, %v5491_v11 }
 0x62b   :  { %v1771_v39 = vadd.f32 %v1770_v33, %v1756_v5  ;;  %v1958_v48 = vadd.f32 %v1957_v4, %v1943_v2  ;;  %v1764_v5 = vmul.f32 %v5447_v17, %v5447_v17 }
 0x62d   :  { %v1772_v8 = vadd.f32 %v1771_v39, %v1757_v61  ;;  %v1959_v29 = vadd.f32 %v1958_v48, %v1944_v3  ;;  %v1951_v39 = vmul.f32 %v5494_v34, %v5494_v34  ;;  %v1953_v48 = vmul.f32 %v5501_v16, %v5501_v16 }
 0x62f   :  { %v1773_v40 = vadd.f32 %v1772_v8, %v1758_v6  ;;  %v1960_v62 = vadd.f32 %v1959_v29, %v1945_v58  ;;  %v1952_v6 = vmul.f32 %v5497_v0, %v5497_v0  ;;  %v1954_v58 = vmul.f32 %v5503_v63, %v5503_v63 }
 0x631   :  { %v1774_v41 = vadd.f32 %v1773_v40, %v1759_v43  ;;  %v1961_v1 = vadd.f32 %v1960_v62, %v1946_v27 }
 0x633   :  { %v1775_v10 = vadd.f32 %v1774_v41, %v1760_v56  ;;  %v1962_v37 = vadd.f32 %v1961_v1, %v1947_v20 }
 0x635   :  { %v1776_v18 = vadd.f32 %v1775_v10, %v1761_v14  ;;  %v1963_v46 = vadd.f32 %v1962_v37, %v1948_v24 }
 0x637   :  { %v1777_v54 = vadd.f32 %v1776_v18, %v1762_v53  ;;  %v1964_v22 = vadd.f32 %v1963_v46, %v1949_v51  ;;  %v5561_v46 = vld [vmem:[#allocation14] ss:$0 sm:$0xff] }
 0x639   :  { %v1778_v33 = vadd.f32 %v1777_v54, %v1763_v57  ;;  %v1965_v2 = vadd.f32 %v1964_v22, %v1950_v7 }
 0x63b   :  { %v1779_v61 = vadd.f32 %v1778_v33, %v1764_v5  ;;  %v1966_v8 = vadd.f32 %v1965_v2, %v1951_v39 }
 0x63d   :  { %v1780_v4 = vrot.slane %v1779_v61, 4  ;;  %v1967_v43 = vadd.f32 %v1966_v8, %v1952_v6  ;;  %v5585_v6 = vstv %s3241_s18 }
 0x63f   :  { %v1781_v3 = vadd.f32 %v1780_v4, %v1779_v61  ;;  %v1968_v29 = vadd.f32 %v1967_v43, %v1953_v48  ;;  %v5573_v61 = vld [vmem:[#allocation15] ss:$0 sm:$0xff] }
 0x641   :  { %v1782_v40 = vrot.slane %v1781_v3, 2  ;;  %v1969_v41 = vadd.f32 %v1968_v29, %v1954_v58 }
 0x643   :  { %v1783_v56 = vadd.f32 %v1782_v40, %v1781_v3  ;;  %v1970_v62 = vrot.slane %v1969_v41, 4 }
 0x645   :  { %v1784_v27 = vrot.slane %v1783_v56, 1  ;;  %v1971_v10 = vadd.f32 %v1970_v62, %v1969_v41 }
 0x647   :  { %v1785_v14 = vadd.f32 %v1784_v27, %v1783_v56  ;;  %v1972_v1 = vrot.slane %v1971_v10, 2 }
 0x649   :  { %v1786_v20 = vmul.f32 0.0078125, %v1785_v14  ;;  %v1973_v18 = vadd.f32 %v1972_v1, %v1971_v10  ;;  %v5611_v14 = vld [vmem:[%s6251_s16] ss:$0 sm:$0xff]  ;;  %s5713_s16 = sld [smem:[#allocation27 + $0x3]] }
 0x64b   :  { %v1787_v53 = vadd.f32 1e-05, %v1786_v20  ;;  %v1974_v24 = vrot.slane %v1973_v18, 1 }
 0x64d   :  { %3751 = vrsqrt.f32 %v1787_v53  ;;  %v1975_v37 = vadd.f32 %v1974_v24, %v1973_v18 }
 0x64f   :  { %v1976_v57 = vmul.f32 0.0078125, %v1975_v37 }
 0x651   :  { %v1977_v54 = vadd.f32 1e-05, %v1976_v57 }
 0x653   :  { %3753 = vrsqrt.f32 %v1977_v54 }
 0x657   :  { %v5559_v51 = vpop.eup %3751 }
 0x658   :  { %v5565_v5 = vmul.f32 %v5559_v51, %v5445_v35  ;;  %v1804_v33 = vmul.f32 %v5559_v51, %v5447_v17  ;;  %v1791_v7 = vmul.f32 %v5559_v51, %v5412_v59  ;;  %v1792_v22 = vmul.f32 %v5559_v51, %v5415_v19 }
 0x659   :  { %v1789_v39 = vmul.f32 %v5559_v51, %v5406_v45  ;;  %v1790_v2 = vmul.f32 %v5559_v51, %v5409_v23  ;;  %v1793_v35 = vmul.f32 %v5559_v51, %v5418_v21  ;;  %v1794_v17 = vmul.f32 %v5559_v51, %v5421_v13 }
 0x65a   :  { %v1813_v4 = vmul.f32 %v5561_v46, %v1791_v7  ;;  %v1814_v59 = vmul.f32 %v5561_v46, %v1792_v22  ;;  %v1795_v19 = vmul.f32 %v5559_v51, %v5424_v28  ;;  %v1826_v3 = vmul.f32 %v5561_v46, %v1804_v33 }
 0x65b   :  { %v1811_v45 = vmul.f32 %v5561_v46, %v1789_v39  ;;  %v1812_v8 = vmul.f32 %v5561_v46, %v1790_v2  ;;  %v1815_v23 = vmul.f32 %v5561_v46, %v1793_v35  ;;  %v1816_v21 = vmul.f32 %v5561_v46, %v1794_v17 }
 0x65c   :  { %v1835_v13 = vadd.f32 %v5573_v61, %v1813_v4  ;;  %v1836_v48 = vadd.f32 %v5573_v61, %v1814_v59  ;;  %v1796_v43 = vmul.f32 %v5559_v51, %v5427_v31  ;;  %v5636_v33 = vadd.f32 %v5573_v61, %v1826_v3 }
 0x65d   :  { %v1833_v40 = vadd.f32 %v5573_v61, %v1811_v45  ;;  %v1834_v28 = vadd.f32 %v5573_v61, %v1812_v8  ;;  %v1837_v58 = vadd.f32 %v5573_v61, %v1815_v23  ;;  %v1838_v29 = vadd.f32 %v5573_v61, %v1816_v21  ;;  %v5606_v62 = vpop.eup %3753 }
 0x65e   :  { %vm1851_vm1 = vcmp.ge.f32.partialorder %v1835_v13, 0.0  ;;  %vm1852_vm2 = vcmp.ge.f32.partialorder %v1836_v48, 0.0  ;;  %v1868_v56 = vmul.f32 %v5585_v6, %v1835_v13  ;;  %v1869_v41 = vmul.f32 %v5585_v6, %v1836_v48 }
 0x65f   :  { %vm1849_vm3 = vcmp.ge.f32.partialorder %v1833_v40, 0.0  ;;  %v1866_v27 = vmul.f32 %v5585_v6, %v1833_v40  ;;  %vm1850_vm4 = vcmp.ge.f32.partialorder %v1834_v28, 0.0  ;;  %v1867_v31 = vmul.f32 %v5585_v6, %v1834_v28 }
 0x660   :  { %v5613_v10 = vsel %vm1851_vm1, %v1835_v13, %v1868_v56  ;;  %v5615_v20 = vsel %vm1852_vm2, %v1836_v48, %v1869_v41  ;;  %vm1853_vm5 = vcmp.ge.f32.partialorder %v1837_v58, 0.0  ;;  %vm1854_vm6 = vcmp.ge.f32.partialorder %v1838_v29, 0.0 }
 0x661   :  { %v1994_v1 = vmul.f32 %v5606_v62, %v5503_v63  ;;  %2099 = vst [vmem:[#allocation28 + $0x18] sm:$0xff] %v5615_v20  ;;  %v2648_v53 = vmul.f32 %v5613_v10, %v5613_v10  ;;  %v2089_v18 = vpack.c.bf16 %v5615_v20, %v5613_v10  ;;  %2098 = vst [vmem:[#allocation28 + $0x10] sm:$0xff] %v5613_v10  ;;  %vm1864_vm15 = vcmp.ge.f32.partialorder %v5636_v33, 0.0 }
 0x662   :  { %v5625_v24 = vsel %vm1849_vm3, %v1833_v40, %v1866_v27  ;;  %v5631_v57 = vsel %vm1850_vm4, %v1834_v28, %v1867_v31  ;;  %v1870_v63 = vmul.f32 %v5585_v6, %v1837_v58  ;;  %v1871_v54 = vmul.f32 %v5585_v6, %v1838_v29 }
 0x663   :  { %v2646_v37 = vmul.f32 %v5625_v24, %v5625_v24  ;;  %2096 = vst [vmem:[#allocation28] sm:$0xff] %v5625_v24  ;;  %v5639_v7 = vmul.f32 %v5611_v14, %v1994_v1  ;;  %2666 = vadd.xlane.f32.xlu1 %v2648_v53  ;;  %v2088_v22 = vpack.c.bf16 %v5631_v57, %v5625_v24  ;;  %2097 = vst [vmem:[#allocation28 + $0x8] sm:$0xff] %v5631_v57 }
 0x664   :  { %v2649_v39 = vmul.f32 %v5615_v20, %v5615_v20  ;;  %v5647_v2 = vsel %vm1853_vm5, %v1837_v58, %v1870_v63  ;;  %v5650_v35 = vsel %vm1854_vm6, %v1838_v29, %v1871_v54  ;;  %v1817_v17 = vmul.f32 %v5561_v46, %v1795_v19 }
 0x665   :  { %2662 = vadd.xlane.f32.xlu0 %v2646_v37  ;;  %v1818_v4 = vmul.f32 %v5561_v46, %v1796_v43  ;;  %3624 = vmatprep.mubr.bf16.mxu1 %v2088_v22  ;;  %v2090_v59 = vpack.c.bf16 %v5650_v35, %v5647_v2  ;;  %2100 = vst [vmem:[#allocation28 + $0x20] sm:$0xff] %v5647_v2  ;;  %2101 = vst [vmem:[#allocation28 + $0x28] sm:$0xff] %v5650_v35 }
 0x666   :  { %v2647_v45 = vmul.f32 %v5631_v57, %v5631_v57  ;;  %v2651_v8 = vmul.f32 %v5650_v35, %v5650_v35  ;;  %v1797_v23 = vmul.f32 %v5559_v51, %v5430_v32  ;;  %3625 = vmatmul.mubr.bf16.vlgmr.msra.gmra.mrb[48].mxu1 %v2089_v18  ;;  %v1839_v19 = vadd.f32 %v5573_v61, %v1817_v17 }
 0x667   :  { %v1840_v21 = vadd.f32 %v5573_v61, %v1818_v4  ;;  %v1798_v3 = vmul.f32 %v5559_v51, %v5433_v26  ;;  %v1799_v13 = vmul.f32 %v5559_v51, %v5436_v38  ;;  %3628 = vmatprep.mubr.bf16.mxu1 %v2090_v59  ;;  %2668 = vadd.xlane.f32.xlu1 %v2649_v39 }
 0x668   :  { %v1819_v48 = vmul.f32 %v5561_v46, %v1797_v23  ;;  %v1800_v43 = vmul.f32 %v5559_v51, %v5439_v44  ;;  %v1801_v32 = vmul.f32 %v5559_v51, %v5441_v15  ;;  %vm1855_vm7 = vcmp.ge.f32.partialorder %v1839_v19, 0.0 }
 0x669   :  { %2664 = vadd.xlane.f32.xlu0 %v2647_v45  ;;  %vm1856_vm8 = vcmp.ge.f32.partialorder %v1840_v21, 0.0  ;;  %v1872_v40 = vmul.f32 %v5585_v6, %v1839_v19  ;;  %v1873_v26 = vmul.f32 %v5585_v6, %v1840_v21  ;;  %v1820_v28 = vmul.f32 %v5561_v46, %v1798_v3 }
 0x66a   :  { %v1841_v38 = vadd.f32 %v5573_v61, %v1819_v48  ;;  %v1821_v58 = vmul.f32 %v5561_v46, %v1799_v13  ;;  %v1822_v29 = vmul.f32 %v5561_v46, %v1800_v43  ;;  %v2650_v44 = vmul.f32 %v5647_v2, %v5647_v2 }
 0x66b   :  { %v5683_v56 = vsel %vm1855_vm7, %v1839_v19, %v1872_v40  ;;  %v5685_v15 = vsel %vm1856_vm8, %v1840_v21, %v1873_v26  ;;  %v1802_v41 = vmul.f32 %v5559_v51, %v5443_v42  ;;  %2672 = vadd.xlane.f32.xlu1 %v2651_v8  ;;  %v1842_v27 = vadd.f32 %v5573_v61, %v1820_v28 }
 0x66c   :  { %2102 = vst [vmem:[#allocation28 + $0x30] sm:$0xff] %v5683_v56  ;;  %2103 = vst [vmem:[#allocation28 + $0x38] sm:$0xff] %v5685_v15  ;;  %vm1857_vm9 = vcmp.ge.f32.partialorder %v1841_v38, 0.0  ;;  %v1874_v31 = vmul.f32 %v5585_v6, %v1841_v38  ;;  %v1823_v1 = vmul.f32 %v5561_v46, %v1801_v32  ;;  %v2091_v53 = vpack.c.bf16 %v5685_v15, %v5683_v56 }
 0x66d   :  { %2670 = vadd.xlane.f32.xlu0 %v2650_v44  ;;  %v2653_v18 = vmul.f32 %v5685_v15, %v5685_v15  ;;  %v1843_v42 = vadd.f32 %v5573_v61, %v1821_v58  ;;  %v1844_v51 = vadd.f32 %v5573_v61, %v1822_v29  ;;  %vm1858_vm10 = vcmp.ge.f32.partialorder %v1842_v27, 0.0 }
 0x66e   :  { %v1875_v37 = vmul.f32 %v5585_v6, %v1842_v27  ;;  %v5701_v63 = vsel %vm1857_vm9, %v1841_v38, %v1874_v31  ;;  %v1824_v54 = vmul.f32 %v5561_v46, %v1802_v41  ;;  %3629 = vmatmul.mubr.bf16.gmra.mrb[52].mxu1 %v2091_v53  ;;  %v2652_v22 = vmul.f32 %v5683_v56, %v5683_v56  ;;  %v5760_v41 = vld [vmem:[%s6252_s17] ss:$0 sm:$0xff] }
 0x66f   :  { %2104 = vst [vmem:[#allocation28 + $0x40] sm:$0xff] %v5701_v63  ;;  %vm1859_vm11 = vcmp.ge.f32.partialorder %v1843_v42, 0.0  ;;  %vm1860_vm12 = vcmp.ge.f32.partialorder %v1844_v51, 0.0  ;;  %v1876_v39 = vmul.f32 %v5585_v6, %v1843_v42  ;;  %2676 = vadd.xlane.f32.xlu1 %v2653_v18  ;;  %v1877_v4 = vmul.f32 %v5585_v6, %v1844_v51 }
 0x670   :  { %v5708_v17 = vsel %vm1858_vm10, %v1842_v27, %v1875_v37  ;;  %v1845_v59 = vadd.f32 %v5573_v61, %v1823_v1  ;;  %v1846_v45 = vadd.f32 %v5573_v61, %v1824_v54  ;;  %v1825_v21 = vmul.f32 %v5561_v46, %v5565_v5 }
 0x671   :  { %v2092_v8 = vpack.c.bf16 %v5708_v17, %v5701_v63  ;;  %2105 = vst [vmem:[#allocation28 + $0x48] sm:$0xff] %v5708_v17  ;;  %2674 = vadd.xlane.f32.xlu0 %v2652_v22  ;;  %v2655_v23 = vmul.f32 %v5708_v17, %v5708_v17  ;;  %v5720_v19 = vsel %vm1859_vm11, %v1843_v42, %v1876_v39  ;;  %v5774_v1 = vstv %s5713_s16 }
 0x672   :  { %v5724_v3 = vsel %vm1860_vm12, %v1844_v51, %v1877_v4  ;;  %2106 = vst [vmem:[#allocation28 + $0x50] sm:$0xff] %v5720_v19  ;;  %vm1861_vm13 = vcmp.ge.f32.partialorder %v1845_v59, 0.0  ;;  %vm1862_vm14 = vcmp.ge.f32.partialorder %v1846_v45, 0.0  ;;  %v1878_v13 = vmul.f32 %v5585_v6, %v1845_v59 }
 0x673   :  { %3632 = vmatprep.mubr.bf16.mxu1 %v2092_v8  ;;  %v2654_v48 = vmul.f32 %v5701_v63, %v5701_v63  ;;  %v2093_v43 = vpack.c.bf16 %v5724_v3, %v5720_v19  ;;  %2107 = vst [vmem:[#allocation28 + $0x58] sm:$0xff] %v5724_v3  ;;  %v1879_v32 = vmul.f32 %v5585_v6, %v1846_v45 }
 0x674   :  { %2680 = vadd.xlane.f32.xlu1 %v2655_v23  ;;  %v5735_v46 = vsel %vm1861_vm13, %v1845_v59, %v1878_v13  ;;  %v1847_v5 = vadd.f32 %v5573_v61, %v1825_v21  ;;  %v1881_v40 = vmul.f32 %v5585_v6, %v5636_v33  ;;  %v1980_v26 = vmul.f32 %v5606_v62, %v5461_v49 }
 0x675   :  { %2678 = vadd.xlane.f32.xlu0 %v2654_v48  ;;  %v5742_v28 = vsel %vm1862_vm14, %v1846_v45, %v1879_v32  ;;  %2108 = vst [vmem:[#allocation28 + $0x60] sm:$0xff] %v5735_v46  ;;  %v2657_v38 = vmul.f32 %v5724_v3, %v5724_v3  ;;  %v1979_v58 = vmul.f32 %v5606_v62, %v5458_v25 }
 0x676   :  { %v1982_v61 = vmul.f32 %v5606_v62, %v5467_v50  ;;  %v2094_v29 = vpack.c.bf16 %v5742_v28, %v5735_v46  ;;  %2109 = vst [vmem:[#allocation28 + $0x68] sm:$0xff] %v5742_v28  ;;  %v2656_v49 = vmul.f32 %v5720_v19, %v5720_v19  ;;  %vm1863_vm0 = vcmp.ge.f32.partialorder %v1847_v5, 0.0  ;;  %3633 = vmatmul.mubr.bf16.gmra.mrb[56].mxu1 %v2093_v43 }
 0x677   :  { %v1880_v44 = vmul.f32 %v5585_v6, %v1847_v5  ;;  %v5765_v25 = vsel %vm1864_vm15, %v5636_v33, %v1881_v40  ;;  %v2002_v50 = vmul.f32 %v5611_v14, %v1980_v26  ;;  %v2001_v27 = vmul.f32 %v5611_v14, %v1979_v58 }
 0x678   :  { %v2004_v31 = vmul.f32 %v5611_v14, %v1982_v61  ;;  %3636 = vmatprep.mubr.bf16.mxu1 %v2094_v29  ;;  %2684 = vadd.xlane.f32.xlu1 %v2657_v38  ;;  %2111 = vst [vmem:[#allocation28 + $0x78] sm:$0xff] %v5765_v25  ;;  %v1981_v53 = vmul.f32 %v5606_v62, %v5464_v30 }
 0x679   :  { %v5770_v6 = vsel %vm1863_vm0, %v1847_v5, %v1880_v44  ;;  %2682 = vadd.xlane.f32.xlu0 %v2656_v49  ;;  %v2659_v33 = vmul.f32 %v5742_v28, %v5742_v28  ;;  %v2658_v18 = vmul.f32 %v5735_v46, %v5735_v46  ;;  %v2024_v42 = vadd.f32 %v5760_v41, %v2002_v50 }
 0x67a   :  { %2110 = vst [vmem:[#allocation28 + $0x70] sm:$0xff] %v5770_v6  ;;  %v2023_v51 = vadd.f32 %v5760_v41, %v2001_v27  ;;  %v2026_v37 = vadd.f32 %v5760_v41, %v2004_v31  ;;  %v2003_v54 = vmul.f32 %v5611_v14, %v1981_v53  ;;  %v1984_v30 = vmul.f32 %v5606_v62, %v5473_v9 }
 0x67b   :  { %v1983_v22 = vmul.f32 %v5606_v62, %v5470_v60  ;;  %vm2040_vm1 = vcmp.ge.f32.partialorder %v2024_v42, 0.0  ;;  %v2057_v39 = vmul.f32 %v5774_v1, %v2024_v42  ;;  %v2095_v59 = vpack.c.bf16 %v5765_v25, %v5770_v6 }
 0x67c   :  { %vm2039_vm2 = vcmp.ge.f32.partialorder %v2023_v51, 0.0  ;;  %v2056_v4 = vmul.f32 %v5774_v1, %v2023_v51  ;;  %2688 = vadd.xlane.f32.xlu1 %v2659_v33  ;;  %v2025_v45 = vadd.f32 %v5760_v41, %v2003_v54  ;;  %v2006_v8 = vmul.f32 %v5611_v14, %v1984_v30 }
 0x67d   :  { %2686 = vadd.xlane.f32.xlu0 %v2658_v18  ;;  %v5797_v23 = vsel %vm2040_vm1, %v2024_v42, %v2057_v39  ;;  %v2059_v9 = vmul.f32 %v5774_v1, %v2026_v37  ;;  %v2005_v60 = vmul.f32 %v5611_v14, %v1983_v22  ;;  %v1986_v21 = vmul.f32 %v5606_v62, %v5479_v55 }
 0x67e   :  { %v2661_v13 = vmul.f32 %v5765_v25, %v5765_v25  ;;  %v2660_v48 = vmul.f32 %v5770_v6, %v5770_v6  ;;  %v5807_v43 = vsel %vm2039_vm2, %v2023_v51, %v2056_v4  ;;  %vm2042_vm3 = vcmp.ge.f32.partialorder %v2026_v37, 0.0  ;;  %3637 = vmatmul.mubr.bf16.gmra.mrb[60].mxu1 %v2095_v59 }
 0x67f   :  { %v2999_v32 = vmul.f32 %v5797_v23, %v5797_v23  ;;  %v2058_v5 = vmul.f32 %v5774_v1, %v2025_v45  ;;  %v2028_v40 = vadd.f32 %v5760_v41, %v2006_v8  ;;  %v2027_v26 = vadd.f32 %v5760_v41, %v2005_v60 }
 0x680   :  { %2692 = vadd.xlane.f32.xlu1 %v2661_v13  ;;  %v2008_v55 = vmul.f32 %v5611_v14, %v1986_v21  ;;  %v1985_v38 = vmul.f32 %v5606_v62, %v5476_v52  ;;  %v1988_v58 = vmul.f32 %v5606_v62, %v5485_v36  ;;  %v1987_v61 = vmul.f32 %v5606_v62, %v5482_v47 }
 0x681   :  { %2690 = vadd.xlane.f32.xlu0 %v2660_v48  ;;  %v5821_v29 = vsel %vm2042_vm3, %v2026_v37, %v2059_v9  ;;  %vm2041_vm4 = vcmp.ge.f32.partialorder %v2025_v45, 0.0  ;;  %vm2044_vm5 = vcmp.ge.f32.partialorder %v2028_v40, 0.0  ;;  %v2061_v49 = vmul.f32 %v5774_v1, %v2028_v40 }
 0x682   :  { %vm2043_vm6 = vcmp.ge.f32.partialorder %v2027_v26, 0.0  ;;  %v2060_v44 = vmul.f32 %v5774_v1, %v2027_v26  ;;  %v2030_v50 = vadd.f32 %v5760_v41, %v2008_v55  ;;  %v2007_v52 = vmul.f32 %v5611_v14, %v1985_v38 }
 0x683   :  { %v2998_v36 = vmul.f32 %v5807_v43, %v5807_v43  ;;  %v2010_v27 = vmul.f32 %v5611_v14, %v1988_v58  ;;  %v2009_v47 = vmul.f32 %v5611_v14, %v1987_v61  ;;  %v1990_v31 = vmul.f32 %v5606_v62, %v5491_v11 }
 0x684   :  { %3016 = vadd.xlane.f32.xlu1 %v2999_v32  ;;  %v3001_v53 = vmul.f32 %v5821_v29, %v5821_v29  ;;  %v5835_v33 = vsel %vm2041_vm4, %v2025_v45, %v2058_v5  ;;  %v5837_v18 = vsel %vm2044_vm5, %v2028_v40, %v2061_v49  ;;  %v5839_v42 = vsel %vm2043_vm6, %v2027_v26, %v2060_v44 }
 0x685   :  { %3014 = vadd.xlane.f32.xlu0 %v2998_v36  ;;  %v2063_v51 = vmul.f32 %v5774_v1, %v2030_v50  ;;  %v2029_v37 = vadd.f32 %v5760_v41, %v2007_v52  ;;  %v2032_v54 = vadd.f32 %v5760_v41, %v2010_v27  ;;  %v2031_v30 = vadd.f32 %v5760_v41, %v2009_v47 }
 0x686   :  { %v2012_v11 = vmul.f32 %v5611_v14, %v1990_v31  ;;  %v1989_v22 = vmul.f32 %v5606_v62, %v5488_v12  ;;  %v1992_v39 = vmul.f32 %v5606_v62, %v5497_v0  ;;  %v3000_v4 = vmul.f32 %v5835_v33, %v5835_v33 }
 0x687   :  { %vm2046_vm7 = vcmp.ge.f32.partialorder %v2030_v50, 0.0  ;;  %v2062_v59 = vmul.f32 %v5774_v1, %v2029_v37  ;;  %vm2045_vm8 = vcmp.ge.f32.partialorder %v2029_v37, 0.0  ;;  %v3003_v45 = vmul.f32 %v5837_v18, %v5837_v18 }
 0x688   :  { %3020 = vadd.xlane.f32.xlu1 %v3001_v53  ;;  %v3002_v8 = vmul.f32 %v5839_v42, %v5839_v42  ;;  %v2011_v12 = vmul.f32 %v5611_v14, %v1989_v22  ;;  %v1991_v0 = vmul.f32 %v5606_v62, %v5494_v34  ;;  %v5860_v9 = vsel %vm2046_vm7, %v2030_v50, %v2063_v51 }
 0x689   :  { %3018 = vadd.xlane.f32.xlu0 %v3000_v4  ;;  %v2065_v60 = vmul.f32 %v5774_v1, %v2032_v54  ;;  %v2064_v21 = vmul.f32 %v5774_v1, %v2031_v30  ;;  %v2034_v13 = vadd.f32 %v5760_v41, %v2012_v11  ;;  %v5865_v48 = vsel %vm2045_vm8, %v2029_v37, %v2062_v59 }
 0x68a   :  { %vm2048_vm9 = vcmp.ge.f32.partialorder %v2032_v54, 0.0  ;;  %vm2047_vm10 = vcmp.ge.f32.partialorder %v2031_v30, 0.0  ;;  %v2014_v32 = vmul.f32 %v5611_v14, %v1992_v39  ;;  %v2033_v5 = vadd.f32 %v5760_v41, %v2011_v12 }
 0x68b   :  { %v2013_v40 = vmul.f32 %v5611_v14, %v1991_v0  ;;  %v1993_v34 = vmul.f32 %v5606_v62, %v5501_v16  ;;  %v2038_v26 = vadd.f32 %v5760_v41, %v5639_v7  ;;  %v3005_v55 = vmul.f32 %v5860_v9, %v5860_v9 }
 0x68c   :  { %3024 = vadd.xlane.f32.xlu1 %v3003_v45  ;;  %v3004_v38 = vmul.f32 %v5865_v48, %v5865_v48  ;;  %v5878_v58 = vsel %vm2048_vm9, %v2032_v54, %v2065_v60  ;;  %v5880_v61 = vsel %vm2047_vm10, %v2031_v30, %v2064_v21  ;;  %v2067_v49 = vmul.f32 %v5774_v1, %v2034_v13 }
 0x68d   :  { %3022 = vadd.xlane.f32.xlu0 %v3002_v8  ;;  %v2036_v44 = vadd.f32 %v5760_v41, %v2014_v32  ;;  %v2015_v16 = vmul.f32 %v5611_v14, %v1993_v34  ;;  %vm2054_vm11 = vcmp.ge.f32.partialorder %v2038_v26, 0.0  ;;  %v2071_v62 = vmul.f32 %v5774_v1, %v2038_v26 }
 0x68e   :  { %vm2050_vm12 = vcmp.ge.f32.partialorder %v2034_v13, 0.0  ;;  %v2066_v7 = vmul.f32 %v5774_v1, %v2033_v5  ;;  %v2035_v50 = vadd.f32 %v5760_v41, %v2013_v40  ;;  %vm2049_vm13 = vcmp.ge.f32.partialorder %v2033_v5, 0.0 }
 0x68f   :  { %v2037_v52 = vadd.f32 %v5760_v41, %v2015_v16  ;;  %v5889_v36 = vsel %vm2054_vm11, %v2038_v26, %v2071_v62  ;;  %v3007_v27 = vmul.f32 %v5878_v58, %v5878_v58  ;;  %v3006_v14 = vmul.f32 %v5880_v61, %v5880_v61 }
 0x690   :  { %3028 = vadd.xlane.f32.xlu1 %v3005_v55  ;;  %v5895_v47 = vsel %vm2050_vm12, %v2034_v13, %v2067_v49  ;;  %v2069_v31 = vmul.f32 %v5774_v1, %v2036_v44  ;;  %v5899_v51 = vsel %vm2049_vm13, %v2033_v5, %v2066_v7  ;;  %vm2052_vm15 = vcmp.ge.f32.partialorder %v2036_v44, 0.0 }
 0x691   :  { %3026 = vadd.xlane.f32.xlu0 %v3004_v38  ;;  %vm2053_vm14 = vcmp.ge.f32.partialorder %v2037_v52, 0.0  ;;  %v2070_v53 = vmul.f32 %v5774_v1, %v2037_v52  ;;  %v2068_v41 = vmul.f32 %v5774_v1, %v2035_v50  ;;  %vm2051_vm0 = vcmp.ge.f32.partialorder %v2035_v50, 0.0 }
 0x692   :  { %v3009_v54 = vmul.f32 %v5895_v47, %v5895_v47  ;;  %v3008_v30 = vmul.f32 %v5899_v51, %v5899_v51  ;;  %v5908_v11 = vsel %vm2052_vm15, %v2036_v44, %v2069_v31 }
 0x693   :  { %v5902_v37 = vsel %vm2053_vm14, %v2037_v52, %v2070_v53  ;;  %v5910_v22 = vsel %vm2051_vm0, %v2035_v50, %v2068_v41  ;;  %v3011_v39 = vmul.f32 %v5908_v11, %v5908_v11 }
 0x694   :  { %3032 = vadd.xlane.f32.xlu1 %v3007_v27  ;;  %v3010_v1 = vmul.f32 %v5910_v22, %v5910_v22 }
 0x695   :  { %3030 = vadd.xlane.f32.xlu0 %v3006_v14 }
 0x698   :  { %3036 = vadd.xlane.f32.xlu1 %v3009_v54 }
 0x699   :  { %3034 = vadd.xlane.f32.xlu0 %v3008_v30 }
 0x69c   :  { %3040 = vadd.xlane.f32.xlu1 %v3011_v39 }
 0x69d   :  { %3038 = vadd.xlane.f32.xlu0 %v3010_v1 }
 0x6f0   :  { %v2667_v4 = vpop.xlane.xlu1 %2666 }
 0x6f1   :  { %v2696_v59 = vmax.f32 %v2667_v4, 1e-24 }
 0x6f2   :  { %v2663_v45 = vpop.xlane.xlu0 %2662 }
 0x6f3   :  { %v2694_v8 = vmax.f32 %v2663_v45, 1e-24  ;;  %3755 = vrsqrt.f32 %v2696_v59 }
 0x6f4   :  { %v2669_v12 = vpop.xlane.xlu1 %2668 }
 0x6f5   :  { %v2697_v0 = vmax.f32 %v2669_v12, 1e-24  ;;  %3757 = vrsqrt.f32 %v2694_v8 }
 0x6f6   :  { %v2665_v60 = vpop.xlane.xlu0 %2664 }
 0x6f7   :  { %v2695_v21 = vmax.f32 %v2665_v60, 1e-24  ;;  %3759 = vrsqrt.f32 %v2697_v0 }
 0x6f8   :  { %v2673_v13 = vpop.xlane.xlu1 %2672 }
 0x6f9   :  { %3761 = vrsqrt.f32 %v2695_v21  ;;  %v2699_v32 = vmax.f32 %v2673_v13, 1e-24 }
 0x6fa   :  { %v2671_v5 = vpop.xlane.xlu0 %2670 }
 0x6fb   :  { %v2698_v40 = vmax.f32 %v2671_v5, 1e-24  ;;  %3763 = vrsqrt.f32 %v2699_v32 }
 0x6fc   :  { %v2677_v34 = vpop.xlane.xlu1 %2676 }
 0x6fd   :  { %3765 = vrsqrt.f32 %v2698_v40  ;;  %v2701_v26 = vmax.f32 %v2677_v34, 1e-24  ;;  %v3756_v49 = vpop.eup %3755 }
 0x6fe   :  { %v2675_v55 = vpop.xlane.xlu0 %2674  ;;  %v2728_v27 = vmul.f32 %v3756_v49, %v5613_v10 }
 0x6ff   :  { %v2700_v38 = vmax.f32 %v2675_v55, 1e-24  ;;  %3767 = vrsqrt.f32 %v2701_v26  ;;  %v3758_v44 = vpop.eup %3757 }
 0x700   :  { %v2726_v53 = vmul.f32 %v3758_v44, %v5625_v24 }
 0x701   :  { %3769 = vrsqrt.f32 %v2700_v38  ;;  %v2681_v16 = vpop.xlane.xlu1 %2680  ;;  %v3760_v62 = vpop.eup %3759 }
 0x702   :  { %v2703_v7 = vmax.f32 %v2681_v16, 1e-24  ;;  %v2679_v50 = vpop.xlane.xlu0 %2678  ;;  %v2729_v14 = vmul.f32 %v3760_v62, %v5615_v20 }
 0x703   :  { %v3762_v52 = vpop.eup %3761  ;;  %v2702_v31 = vmax.f32 %v2679_v50, 1e-24 }
 0x704   :  { %v2727_v41 = vmul.f32 %v3762_v52, %v5631_v57  ;;  %3771 = vrsqrt.f32 %v2703_v7  ;;  %v3340_v54 = vpack.c.bf16 %v2729_v14, %v2728_v27 }
 0x705   :  { %3773 = vrsqrt.f32 %v2702_v31  ;;  %v2685_v30 = vpop.xlane.xlu1 %2684  ;;  %v3764_v39 = vpop.eup %3763 }
 0x706   :  { %v3335_v1 = vpack.c.bf16 %v2727_v41, %v2726_v53  ;;  %v2705_v4 = vmax.f32 %v2685_v30, 1e-24  ;;  %v2683_v59 = vpop.xlane.xlu0 %2682  ;;  %3412 = vst [vmem:[#allocation29 + $0x8] sm:$0xff] %v3340_v54   ;;  %v2731_v8 = vmul.f32 %v3764_v39, %v5650_v35 }
 0x707   :  { %v3766_v45 = vpop.eup %3765  ;;  %v2704_v10 = vmax.f32 %v2683_v59, 1e-24 }
 0x708   :  { %3336 = vst [vmem:[#allocation29] sm:$0xff] %v3335_v1   ;;  %v2730_v20 = vmul.f32 %v3766_v45, %v5647_v2  ;;  %3775 = vrsqrt.f32 %v2705_v4 }
 0x709   :  { %3777 = vrsqrt.f32 %v2704_v10  ;;  %v2689_v24 = vpop.xlane.xlu1 %2688  ;;  %v3768_v57 = vpop.eup %3767 }
 0x70a   :  { %v3345_v12 = vpack.c.bf16 %v2731_v8, %v2730_v20  ;;  %v2707_v0 = vmax.f32 %v2689_v24, 1e-24  ;;  %v2687_v60 = vpop.xlane.xlu0 %2686  ;;  %v2733_v13 = vmul.f32 %v3768_v57, %v5685_v15 }
 0x70b   :  { %v3770_v21 = vpop.eup %3769  ;;  %v2706_v32 = vmax.f32 %v2687_v60, 1e-24 }
 0x70c   :  { %3413 = vst [vmem:[#allocation29 + $0x10] sm:$0xff] %v3345_v12   ;;  %v2732_v5 = vmul.f32 %v3770_v21, %v5683_v56  ;;  %3779 = vrsqrt.f32 %v2707_v0 }
 0x70d   :  { %3781 = vrsqrt.f32 %v2706_v32  ;;  %v2693_v35 = vpop.xlane.xlu1 %2692 }
 0x70e   :  { %v3772_v40 = vpop.eup %3771  ;;  %v3350_v34 = vpack.c.bf16 %v2733_v13, %v2732_v5  ;;  %v2709_v2 = vmax.f32 %v2693_v35, 1e-24  ;;  %v2691_v26 = vpop.xlane.xlu0 %2690 }
 0x70f   :  { %v3774_v55 = vpop.eup %3773  ;;  %v2735_v38 = vmul.f32 %v3772_v40, %v5708_v17  ;;  %v2708_v49 = vmax.f32 %v2691_v26, 1e-24 }
 0x710   :  { %3414 = vst [vmem:[#allocation29 + $0x18] sm:$0xff] %v3350_v34   ;;  %v2734_v44 = vmul.f32 %v3774_v55, %v5701_v63  ;;  %3783 = vrsqrt.f32 %v2709_v2 }
 0x711   :  { %3785 = vrsqrt.f32 %v2708_v49  ;;  %v3017_v15 = vpop.xlane.xlu1 %3016 }
 0x712   :  { %v3776_v16 = vpop.eup %3775  ;;  %v3355_v62 = vpack.c.bf16 %v2735_v38, %v2734_v44  ;;  %v3047_v56 = vmax.f32 %v3017_v15, 1e-24  ;;  %v3015_v7 = vpop.xlane.xlu0 %3014 }
 0x713   :  { %v3778_v50 = vpop.eup %3777  ;;  %v2737_v52 = vmul.f32 %v3776_v16, %v5724_v3  ;;  %v3046_v27 = vmax.f32 %v3015_v7, 1e-24 }
 0x714   :  { %3415 = vst [vmem:[#allocation29 + $0x20] sm:$0xff] %v3355_v62   ;;  %v2736_v14 = vmul.f32 %v3778_v50, %v5720_v19  ;;  %3787 = vrsqrt.f32 %v3047_v56 }
 0x715   :  { %3789 = vrsqrt.f32 %v3046_v27  ;;  %v3021_v17 = vpop.xlane.xlu1 %3020 }
 0x716   :  { %v3780_v31 = vpop.eup %3779  ;;  %v3360_v53 = vpack.c.bf16 %v2737_v52, %v2736_v14  ;;  %v3049_v63 = vmax.f32 %v3021_v17, 1e-24  ;;  %v3019_v41 = vpop.xlane.xlu0 %3018 }
 0x717   :  { %v3782_v54 = vpop.eup %3781  ;;  %v2739_v30 = vmul.f32 %v3780_v31, %v5742_v28  ;;  %v3048_v39 = vmax.f32 %v3019_v41, 1e-24  ;;  %v3739_v31 = vld [vmem:[#allocation26] sm:$0xff]  }
 0x718   :  { %3416 = vst [vmem:[#allocation29 + $0x28] sm:$0xff] %v3360_v53   ;;  %v2738_v1 = vmul.f32 %v3782_v54, %v5735_v46  ;;  %3791 = vrsqrt.f32 %v3049_v63  ;;  %v3740_v53 = vld [vmem:[#allocation26 + $0x8] sm:$0xff]   ;;  %3640 = vmatprep.subr.bf16.mxu1 %v3739_v31  ;;  %v3741_v54 = vld [vmem:[#allocation26 + $0x10] sm:$0xff]  }
 0x719   :  { %3793 = vrsqrt.f32 %v3048_v39  ;;  %v3025_v3 = vpop.xlane.xlu1 %3024  ;;  %3641 = vmatpush3.bf16.msra.mxu1 %v3739_v31 }
 0x71a   :  { %v3784_v4 = vpop.eup %3783  ;;  %v3365_v59 = vpack.c.bf16 %v2739_v30, %v2738_v1  ;;  %v3051_v19 = vmax.f32 %v3025_v3, 1e-24  ;;  %v3023_v45 = vpop.xlane.xlu0 %3022  ;;  %3642 = vmatprep.subr.bf16.mxu1 %v3740_v53  ;;  %v3742_v1 = vld [vmem:[#allocation26 + $0x18] sm:$0xff]  }
 0x71b   :  { %v3786_v8 = vpop.eup %3785  ;;  %v2741_v10 = vmul.f32 %v3784_v4, %v5765_v25  ;;  %v3050_v20 = vmax.f32 %v3023_v45, 1e-24 }
 0x71c   :  { %3417 = vst [vmem:[#allocation29 + $0x30] sm:$0xff] %v3365_v59   ;;  %v2740_v24 = vmul.f32 %v3786_v8, %v5770_v6  ;;  %3795 = vrsqrt.f32 %v3051_v19  ;;  %v3743_v19 = vld [vmem:[#allocation26 + $0x20] sm:$0xff]  }
 0x71d   :  { %3797 = vrsqrt.f32 %v3050_v20  ;;  %v3029_v28 = vpop.xlane.xlu1 %3028  ;;  %3643 = vmatpush3.bf16.msra.mxu1 %v3740_v53 }
 0x71e   :  { %v3788_v57 = vpop.eup %3787  ;;  %v3370_v12 = vpack.c.bf16 %v2741_v10, %v2740_v24  ;;  %v3053_v46 = vmax.f32 %v3029_v28, 1e-24  ;;  %v3027_v0 = vpop.xlane.xlu0 %3026  ;;  %3644 = vmatprep.subr.bf16.mxu1 %v3741_v54  ;;  %v3744_v10 = vld [vmem:[#allocation26 + $0x28] sm:$0xff]  }
 0x71f   :  { %v3790_v60 = vpop.eup %3789  ;;  %v3079_v21 = vmul.f32 %v3788_v57, %v5797_v23  ;;  %v3052_v13 = vmax.f32 %v3027_v0, 1e-24 }
 0x720   :  { %3418 = vst [vmem:[#allocation29 + $0x38] sm:$0xff] %v3370_v12   ;;  %v3078_v32 = vmul.f32 %v3790_v60, %v5807_v43  ;;  %3799 = vrsqrt.f32 %v3053_v46 }
 0x721   :  { %3095 = vst [vmem:[#allocation32 + $0x8] sm:$0xff] %v3079_v21  ;;  %3801 = vrsqrt.f32 %v3052_v13  ;;  %v3033_v25 = vpop.xlane.xlu1 %3032  ;;  %3645 = vmatpush3.bf16.msra.mxu1 %v3741_v54  ;;  %v3745_v21 = vld [vmem:[#allocation26 + $0x30] sm:$0xff]  }
 0x722   :  { %v3792_v5 = vpop.eup %3791  ;;  %3094 = vst [vmem:[#allocation32] sm:$0xff] %v3078_v32  ;;  %v3055_v6 = vmax.f32 %v3033_v25, 1e-24  ;;  %v3031_v35 = vpop.xlane.xlu0 %3030  ;;  %3646 = vmatprep.subr.bf16.mxu1 %v3742_v1 }
 0x723   :  { %v3794_v40 = vpop.eup %3793  ;;  %v3081_v34 = vmul.f32 %v3792_v5, %v5821_v29  ;;  %v3054_v2 = vmax.f32 %v3031_v35, 1e-24 }
 0x724   :  { %v3080_v26 = vmul.f32 %v3794_v40, %v5835_v33  ;;  %3803 = vrsqrt.f32 %v3055_v6  ;;  %v3746_v6 = vld [vmem:[#allocation26 + $0x38] sm:$0xff]  }
 0x725   :  { %3097 = vst [vmem:[#allocation32 + $0x18] sm:$0xff] %v3081_v34  ;;  %3805 = vrsqrt.f32 %v3054_v2  ;;  %v3037_v23 = vpop.xlane.xlu1 %3036  ;;  %3647 = vmatpush3.bf16.msra.mxu1 %v3742_v1 }
 0x726   :  { %v3796_v55 = vpop.eup %3795  ;;  %3096 = vst [vmem:[#allocation32 + $0x10] sm:$0xff] %v3080_v26  ;;  %v3057_v43 = vmax.f32 %v3037_v23, 1e-24  ;;  %v3035_v38 = vpop.xlane.xlu0 %3034  ;;  %3648 = vmatprep.subr.bf16.mxu1 %v3743_v19 }
 0x727   :  { %v3798_v49 = vpop.eup %3797  ;;  %v3083_v44 = vmul.f32 %v3796_v55, %v5837_v18  ;;  %v3056_v15 = vmax.f32 %v3035_v38, 1e-24 }
 0x728   :  { %v3082_v16 = vmul.f32 %v3798_v49, %v5839_v42  ;;  %3807 = vrsqrt.f32 %v3057_v43 }
 0x729   :  { %3099 = vst [vmem:[#allocation32 + $0x28] sm:$0xff] %v3083_v44  ;;  %3809 = vrsqrt.f32 %v3056_v15  ;;  %v3041_v29 = vpop.xlane.xlu1 %3040  ;;  %3649 = vmatpush3.bf16.msra.mxu1 %v3743_v19 }
 0x72a   :  { %v3800_v62 = vpop.eup %3799  ;;  %3098 = vst [vmem:[#allocation32 + $0x20] sm:$0xff] %v3082_v16  ;;  %v3059_v33 = vmax.f32 %v3041_v29, 1e-24  ;;  %v3039_v56 = vpop.xlane.xlu0 %3038  ;;  %3650 = vmatprep.subr.bf16.mxu1 %v3744_v10 }
 0x72b   :  { %v3802_v7 = vpop.eup %3801  ;;  %v3085_v50 = vmul.f32 %v3800_v62, %v5860_v9  ;;  %v3058_v52 = vmax.f32 %v3039_v56, 1e-24 }
 0x72c   :  { %v3084_v27 = vmul.f32 %v3802_v7, %v5865_v48  ;;  %3811 = vrsqrt.f32 %v3059_v33 }
 0x72d   :  { %3101 = vst [vmem:[#allocation32 + $0x38] sm:$0xff] %v3085_v50  ;;  %3813 = vrsqrt.f32 %v3058_v52  ;;  %3651 = vmatpush3.bf16.msra.mxu1 %v3744_v10 }
 0x72e   :  { %v3804_v18 = vpop.eup %3803  ;;  %3100 = vst [vmem:[#allocation32 + $0x30] sm:$0xff] %v3084_v27  ;;  %3652 = vmatprep.subr.bf16.mxu1 %v3745_v21 }
 0x72f   :  { %v3806_v42 = vpop.eup %3805  ;;  %v3087_v14 = vmul.f32 %v3804_v18, %v5878_v58 }
 0x730   :  { %v3086_v17 = vmul.f32 %v3806_v42, %v5880_v61 }
 0x731   :  { %3103 = vst [vmem:[#allocation32 + $0x48] sm:$0xff] %v3087_v14  ;;  %3653 = vmatpush3.bf16.msra.mxu1 %v3745_v21 }
 0x732   :  { %v3808_v63 = vpop.eup %3807  ;;  %3102 = vst [vmem:[#allocation32 + $0x40] sm:$0xff] %v3086_v17  ;;  %3654 = vmatprep.subr.bf16.mxu1 %v3746_v6 }
 0x733   :  { %v3810_v41 = vpop.eup %3809  ;;  %v3089_v9 = vmul.f32 %v3808_v63, %v5895_v47 }
 0x734   :  { %v3088_v48 = vmul.f32 %v3810_v41, %v5899_v51  ;;  %v3247_v51 = vld [vmem:[%s6254_s19] ss:$0 sm:$0xff]  ;;  %s3256_s19 = sld [smem:[#allocation27 + $0x4]] }
 0x735   :  { %3105 = vst [vmem:[#allocation32 + $0x58] sm:$0xff] %v3089_v9  ;;  %3655 = vmatpush3.bf16.msra.mxu1 %v3746_v6 }
 0x736   :  { %v3812_v30 = vpop.eup %3811  ;;  %3104 = vst [vmem:[#allocation32 + $0x50] sm:$0xff] %v3088_v48 }
 0x737   :  { %v3814_v58 = vpop.eup %3813  ;;  %v3091_v61 = vmul.f32 %v3812_v30, %v5908_v11 }
 0x738   :  { %v3090_v39 = vmul.f32 %v3814_v58, %v5910_v22 }
 0x739   :  { %3107 = vst [vmem:[#allocation32 + $0x68] sm:$0xff] %v3091_v61  ;;  %v3626_v47 = vpop.f32.mrb[48].mxu1 }
 0x73a   :  { %3106 = vst [vmem:[#allocation32 + $0x60] sm:$0xff] %v3090_v39  ;;  %v2217_v3 = vpop.f32.mrb[49].mxu1  ;;  %v2226_v8 = vadd.f32 %v3626_v47, %v3247_v51 }
 0x73b   :  { %v3627_v4 = vpop.f32.mrb[50].mxu1  ;;  %v2218_v45 = vadd.f32 %v3247_v51, %v2217_v3 }
 0x73c   :  { %v2220_v59 = vpop.f32.mrb[51].mxu1  ;;  %v2229_v20 = vadd.f32 %v3627_v4, %v3247_v51 }
 0x73d   :  { %v2221_v11 = vadd.f32 %v3247_v51, %v2220_v59 }
 0x73f   :  { %v2283_v22 = vadd.f32 %v2221_v11, %v2218_v45 }
 0x741   :  { %v2284_v24 = vadd.f32 %v2283_v22, %v2226_v8  ;;  %v3630_v28 = vpop.f32.mrb[52].mxu1 }
 0x742   :  { %v2233_v57 = vpop.f32.mrb[53].mxu1  ;;  %v2242_v25 = vadd.f32 %v3630_v28, %v3247_v51 }
 0x743   :  { %v2234_v12 = vadd.f32 %v3247_v51, %v2233_v57  ;;  %v2285_v46 = vadd.f32 %v2284_v24, %v2229_v20  ;;  %v3631_v0 = vpop.f32.mrb[54].mxu1 }
 0x744   :  { %v2236_v60 = vpop.f32.mrb[55].mxu1  ;;  %v2245_v35 = vadd.f32 %v3631_v0, %v3247_v51 }
 0x745   :  { %v2286_v13 = vadd.f32 %v2285_v46, %v2234_v12  ;;  %v2237_v32 = vadd.f32 %v3247_v51, %v2236_v60 }
 0x747   :  { %v2287_v5 = vadd.f32 %v2286_v13, %v2237_v32 }
 0x749   :  { %v2288_v40 = vadd.f32 %v2287_v5, %v2242_v25  ;;  %v3634_v34 = vpop.f32.mrb[56].mxu1 }
 0x74a   :  { %v2249_v2 = vpop.f32.mrb[57].mxu1  ;;  %v2258_v44 = vadd.f32 %v3634_v34, %v3247_v51 }
 0x74b   :  { %v2250_v26 = vadd.f32 %v3247_v51, %v2249_v2  ;;  %v2289_v23 = vadd.f32 %v2288_v40, %v2245_v35  ;;  %v3635_v55 = vpop.f32.mrb[58].mxu1 }
 0x74c   :  { %v2252_v43 = vpop.f32.mrb[59].mxu1  ;;  %v2261_v16 = vadd.f32 %v3635_v55, %v3247_v51 }
 0x74d   :  { %v2290_v38 = vadd.f32 %v2289_v23, %v2250_v26  ;;  %v2253_v49 = vadd.f32 %v3247_v51, %v2252_v43 }
 0x74f   :  { %v2291_v15 = vadd.f32 %v2290_v38, %v2253_v49 }
 0x751   :  { %v2292_v29 = vadd.f32 %v2291_v15, %v2258_v44  ;;  %v3638_v62 = vpop.f32.mrb[60].mxu1 }
 0x752   :  { %v2265_v33 = vpop.f32.mrb[61].mxu1  ;;  %v2274_v42 = vadd.f32 %v3638_v62, %v3247_v51 }
 0x753   :  { %v2266_v56 = vadd.f32 %v3247_v51, %v2265_v33  ;;  %v2293_v7 = vadd.f32 %v2292_v29, %v2261_v16  ;;  %v3639_v50 = vpop.f32.mrb[62].mxu1 }
 0x754   :  { %v2268_v52 = vpop.f32.mrb[63].mxu1  ;;  %v2277_v17 = vadd.f32 %v3639_v50, %v3247_v51 }
 0x755   :  { %v2294_v27 = vadd.f32 %v2293_v7, %v2266_v56  ;;  %v2269_v18 = vadd.f32 %v3247_v51, %v2268_v52 }
 0x757   :  { %v2295_v14 = vadd.f32 %v2294_v27, %v2269_v18 }
 0x759   :  { %v2296_v31 = vadd.f32 %v2295_v14, %v2274_v42 }
 0x75b   :  { %v2297_v53 = vadd.f32 %v2296_v31, %v2277_v17 }
 0x75d   :  { %v2298_v63 = vrot.slane %v2297_v53, 4 }
 0x75f   :  { %v2299_v41 = vadd.f32 %v2298_v63, %v2297_v53 }
 0x761   :  { %v2300_v9 = vrot.slane %v2299_v41, 2 }
 0x763   :  { %v2301_v48 = vadd.f32 %v2300_v9, %v2299_v41  ;;  %v5986_v41 = vld [vmem:[%s6255_s20] ss:$0 sm:$0xff]  ;;  %v5988_v9 = vstv %s3256_s19 }
 0x765   :  { %v2302_v54 = vrot.slane %v2301_v48, 1 }
 0x767   :  { %v2303_v30 = vadd.f32 %v2302_v54, %v2301_v48 }
 0x769   :  { %v2304_v58 = vmul.f32 0.0078125, %v2303_v30 }
 0x76b   :  { %v2305_v61 = vsub.f32 %v2218_v45, %v2304_v58  ;;  %v2306_v39 = vsub.f32 %v2221_v11, %v2304_v58  ;;  %v2307_v1 = vsub.f32 %v2226_v8, %v2304_v58  ;;  %v2308_v47 = vsub.f32 %v2229_v20, %v2304_v58 }
 0x76c   :  { %v2309_v3 = vsub.f32 %v2234_v12, %v2304_v58  ;;  %v2310_v4 = vsub.f32 %v2237_v32, %v2304_v58  ;;  %v2311_v59 = vsub.f32 %v2242_v25, %v2304_v58  ;;  %v5949_v19 = vsub.f32 %v2245_v35, %v2304_v58 }
 0x76d   :  { %v5951_v22 = vsub.f32 %v2250_v26, %v2304_v58  ;;  %v5953_v51 = vsub.f32 %v2253_v49, %v2304_v58  ;;  %v5955_v10 = vsub.f32 %v2258_v44, %v2304_v58  ;;  %v5957_v24 = vsub.f32 %v2261_v16, %v2304_v58 }
 0x76e   :  { %v5959_v28 = vsub.f32 %v2266_v56, %v2304_v58  ;;  %v2318_v57 = vsub.f32 %v2269_v18, %v2304_v58  ;;  %v5961_v45 = vsub.f32 %v2274_v42, %v2304_v58  ;;  %v5963_v11 = vsub.f32 %v2277_v17, %v2304_v58 }
 0x76f   :  { %v2321_v8 = vmul.f32 %v2305_v61, %v2305_v61  ;;  %v2322_v20 = vmul.f32 %v2306_v39, %v2306_v39  ;;  %v2323_v12 = vmul.f32 %v2307_v1, %v2307_v1  ;;  %v2324_v0 = vmul.f32 %v2308_v47, %v2308_v47 }
 0x770   :  { %v2325_v21 = vmul.f32 %v2309_v3, %v2309_v3  ;;  %v2326_v32 = vmul.f32 %v2310_v4, %v2310_v4  ;;  %v2327_v5 = vmul.f32 %v2311_v59, %v2311_v59  ;;  %v2328_v35 = vmul.f32 %v5949_v19, %v5949_v19 }
 0x771   :  { %v2337_v46 = vadd.f32 %v2322_v20, %v2321_v8  ;;  %v2329_v34 = vmul.f32 %v5951_v22, %v5951_v22  ;;  %v2330_v26 = vmul.f32 %v5953_v51, %v5953_v51  ;;  %v2331_v55 = vmul.f32 %v5955_v10, %v5955_v10  ;;  %v5997_v8 = vld [vmem:[%s6256_s21] ss:$0 sm:$0xff] }
 0x772   :  { %v2332_v38 = vmul.f32 %v5957_v24, %v5957_v24  ;;  %v2333_v44 = vmul.f32 %v5959_v28, %v5959_v28  ;;  %v2334_v16 = vmul.f32 %v2318_v57, %v2318_v57  ;;  %v2335_v62 = vmul.f32 %v5961_v45, %v5961_v45 }
 0x773   :  { %v2338_v60 = vadd.f32 %v2337_v46, %v2323_v12  ;;  %v2336_v56 = vmul.f32 %v5963_v11, %v5963_v11 }
 0x775   :  { %v2339_v13 = vadd.f32 %v2338_v60, %v2324_v0 }
 0x777   :  { %v2340_v25 = vadd.f32 %v2339_v13, %v2325_v21 }
 0x779   :  { %v2341_v6 = vadd.f32 %v2340_v25, %v2326_v32 }
 0x77b   :  { %v2342_v40 = vadd.f32 %v2341_v6, %v2327_v5 }
 0x77d   :  { %v2343_v2 = vadd.f32 %v2342_v40, %v2328_v35 }
 0x77f   :  { %v2344_v23 = vadd.f32 %v2343_v2, %v2329_v34 }
 0x781   :  { %v2345_v43 = vadd.f32 %v2344_v23, %v2330_v26 }
 0x783   :  { %v2346_v49 = vadd.f32 %v2345_v43, %v2331_v55 }
 0x785   :  { %v2347_v15 = vadd.f32 %v2346_v49, %v2332_v38 }
 0x787   :  { %v2348_v29 = vadd.f32 %v2347_v15, %v2333_v44 }
 0x789   :  { %v2349_v33 = vadd.f32 %v2348_v29, %v2334_v16 }
 0x78b   :  { %v2350_v7 = vadd.f32 %v2349_v33, %v2335_v62 }
 0x78d   :  { %v2351_v50 = vadd.f32 %v2350_v7, %v2336_v56 }
 0x78f   :  { %v2352_v52 = vrot.slane %v2351_v50, 4 }
 0x791   :  { %v2353_v27 = vadd.f32 %v2352_v52, %v2351_v50 }
 0x793   :  { %v2354_v18 = vrot.slane %v2353_v27, 2 }
 0x795   :  { %v2355_v42 = vadd.f32 %v2354_v18, %v2353_v27 }
 0x797   :  { %v2356_v14 = vrot.slane %v2355_v42, 1 }
 0x799   :  { %v2357_v17 = vadd.f32 %v2356_v14, %v2355_v42 }
 0x79b   :  { %v2358_v31 = vmul.f32 0.0078125, %v2357_v17 }
 0x79d   :  { %v2359_v53 = vadd.f32 1e-05, %v2358_v31 }
 0x79f   :  { %3815 = vrsqrt.f32 %v2359_v53 }
 0x7a9   :  { %v5981_v63 = vpop.eup %3815 }
 0x7aa   :  { %v2374_v48 = vmul.f32 %v5981_v63, %v2318_v57  ;;  %v2361_v54 = vmul.f32 %v5981_v63, %v2305_v61  ;;  %v2362_v30 = vmul.f32 %v5981_v63, %v2306_v39  ;;  %v2363_v58 = vmul.f32 %v5981_v63, %v2307_v1 }
 0x7ab   :  { %v2364_v20 = vmul.f32 %v5981_v63, %v2308_v47  ;;  %v2365_v12 = vmul.f32 %v5981_v63, %v2309_v3  ;;  %v2366_v46 = vmul.f32 %v5981_v63, %v2310_v4  ;;  %v2367_v0 = vmul.f32 %v5981_v63, %v2311_v59 }
 0x7ac   :  { %v2396_v57 = vmul.f32 %v5986_v41, %v2374_v48  ;;  %v2383_v61 = vmul.f32 %v5986_v41, %v2361_v54  ;;  %v2384_v39 = vmul.f32 %v5986_v41, %v2362_v30  ;;  %v2385_v1 = vmul.f32 %v5986_v41, %v2363_v58 }
 0x7ad   :  { %v2386_v60 = vmul.f32 %v5986_v41, %v2364_v20  ;;  %v2387_v21 = vmul.f32 %v5986_v41, %v2365_v12  ;;  %v2388_v47 = vmul.f32 %v5986_v41, %v2366_v46  ;;  %v2368_v3 = vmul.f32 %v5981_v63, %v5949_v19 }
 0x7ae   :  { %v6013_v4 = vadd.f32 %v5997_v8, %v2396_v57  ;;  %v2405_v59 = vadd.f32 %v5997_v8, %v2383_v61  ;;  %v2406_v13 = vadd.f32 %v5997_v8, %v2384_v39  ;;  %v2407_v32 = vadd.f32 %v5997_v8, %v2385_v1 }
 0x7af   :  { %v2408_v25 = vadd.f32 %v5997_v8, %v2386_v60  ;;  %v2409_v5 = vadd.f32 %v5997_v8, %v2387_v21  ;;  %v2410_v6 = vadd.f32 %v5997_v8, %v2388_v47  ;;  %v2389_v35 = vmul.f32 %v5986_v41, %v2367_v0 }
 0x7b0   :  { %vm2421_vm1 = vcmp.ge.f32.partialorder %v2405_v59, 0.0  ;;  %vm2422_vm2 = vcmp.ge.f32.partialorder %v2406_v13, 0.0  ;;  %v2438_v19 = vmul.f32 %v5988_v9, %v2405_v59  ;;  %v2439_v40 = vmul.f32 %v5988_v9, %v2406_v13 }
 0x7b1   :  { %vm2423_vm3 = vcmp.ge.f32.partialorder %v2407_v32, 0.0  ;;  %vm2424_vm4 = vcmp.ge.f32.partialorder %v2408_v25, 0.0  ;;  %v2440_v34 = vmul.f32 %v5988_v9, %v2407_v32  ;;  %v2441_v2 = vmul.f32 %v5988_v9, %v2408_v25 }
 0x7b2   :  { %v2454_v26 = vsel %vm2421_vm1, %v2405_v59, %v2438_v19  ;;  %v2455_v23 = vsel %vm2422_vm2, %v2406_v13, %v2439_v40  ;;  %vm2425_vm5 = vcmp.ge.f32.partialorder %v2409_v5, 0.0  ;;  %vm2426_vm6 = vcmp.ge.f32.partialorder %v2410_v6, 0.0 }
 0x7b3   :  { %v2470_v55 = vpack.c.bf16 %v2455_v23, %v2454_v26  ;;  %v2456_v43 = vsel %vm2423_vm3, %v2407_v32, %v2440_v34  ;;  %v2457_v38 = vsel %vm2424_vm4, %v2408_v25, %v2441_v2  ;;  %v2442_v49 = vmul.f32 %v5988_v9, %v2409_v5 }
 0x7b4   :  { %v2471_v44 = vpack.c.bf16 %v2457_v38, %v2456_v43  ;;  %v2443_v15 = vmul.f32 %v5988_v9, %v2410_v6  ;;  %v2390_v16 = vmul.f32 %v5986_v41, %v2368_v3  ;;  %v2411_v29 = vadd.f32 %v5997_v8, %v2389_v35 }
 0x7b5   :  { %3656 = vmatprep.mubr.bf16.mxu1 %v2470_v55  ;;  %v2458_v62 = vsel %vm2425_vm5, %v2409_v5, %v2442_v49  ;;  %v2369_v33 = vmul.f32 %v5981_v63, %v5951_v22  ;;  %v2370_v56 = vmul.f32 %v5981_v63, %v5953_v51  ;;  %v2371_v7 = vmul.f32 %v5981_v63, %v5955_v10 }
 0x7b6   :  { %3657 = vmatmul.mubr.bf16.vlgmr.msra.gmra.mrb[64].mxu1 %v2471_v44  ;;  %v2459_v50 = vsel %vm2426_vm6, %v2410_v6, %v2443_v15  ;;  %v2412_v52 = vadd.f32 %v5997_v8, %v2390_v16  ;;  %vm2427_vm7 = vcmp.ge.f32.partialorder %v2411_v29, 0.0  ;;  %v2444_v27 = vmul.f32 %v5988_v9, %v2411_v29 }
 0x7b7   :  { %v2472_v18 = vpack.c.bf16 %v2459_v50, %v2458_v62  ;;  %v2391_v42 = vmul.f32 %v5986_v41, %v2369_v33  ;;  %v2392_v14 = vmul.f32 %v5986_v41, %v2370_v56  ;;  %v2372_v22 = vmul.f32 %v5981_v63, %v5957_v24 }
 0x7b8   :  { %vm2428_vm8 = vcmp.ge.f32.partialorder %v2412_v52, 0.0  ;;  %v2445_v51 = vmul.f32 %v5988_v9, %v2412_v52  ;;  %v2460_v17 = vsel %vm2427_vm7, %v2411_v29, %v2444_v27  ;;  %v2393_v10 = vmul.f32 %v5986_v41, %v2371_v7 }
 0x7b9   :  { %3660 = vmatprep.mubr.bf16.mxu1 %v2472_v18  ;;  %v2413_v31 = vadd.f32 %v5997_v8, %v2391_v42  ;;  %v2414_v53 = vadd.f32 %v5997_v8, %v2392_v14  ;;  %v2394_v48 = vmul.f32 %v5986_v41, %v2372_v22  ;;  %v2373_v54 = vmul.f32 %v5981_v63, %v5959_v28 }
 0x7ba   :  { %v2461_v30 = vsel %vm2428_vm8, %v2412_v52, %v2445_v51  ;;  %v2415_v58 = vadd.f32 %v5997_v8, %v2393_v10  ;;  %v2451_v24 = vmul.f32 %v5988_v9, %v6013_v4  ;;  %vm2434_vm12 = vcmp.ge.f32.partialorder %v6013_v4, 0.0 }
 0x7bb   :  { %v2473_v20 = vpack.c.bf16 %v2461_v30, %v2460_v17  ;;  %vm2429_vm9 = vcmp.ge.f32.partialorder %v2413_v31, 0.0  ;;  %vm2430_vm10 = vcmp.ge.f32.partialorder %v2414_v53, 0.0  ;;  %v2446_v12 = vmul.f32 %v5988_v9, %v2413_v31 }
 0x7bc   :  { %v2447_v46 = vmul.f32 %v5988_v9, %v2414_v53  ;;  %v2416_v0 = vadd.f32 %v5997_v8, %v2394_v48  ;;  %vm2431_vm11 = vcmp.ge.f32.partialorder %v2415_v58, 0.0  ;;  %v2448_v57 = vmul.f32 %v5988_v9, %v2415_v58 }
 0x7bd   :  { %v2462_v61 = vsel %vm2429_vm9, %v2413_v31, %v2446_v12  ;;  %v2395_v28 = vmul.f32 %v5986_v41, %v2373_v54  ;;  %v2375_v39 = vmul.f32 %v5981_v63, %v5961_v45  ;;  %v2376_v59 = vmul.f32 %v5981_v63, %v5963_v11 }
 0x7be   :  { %3661 = vmatmul.mubr.bf16.gmra.mrb[68].mxu1 %v2473_v20  ;;  %v2463_v1 = vsel %vm2430_vm10, %v2414_v53, %v2447_v46  ;;  %vm2432_vm13 = vcmp.ge.f32.partialorder %v2416_v0, 0.0  ;;  %v2449_v60 = vmul.f32 %v5988_v9, %v2416_v0  ;;  %v2464_v21 = vsel %vm2431_vm11, %v2415_v58, %v2448_v57 }
 0x7bf   :  { %v2474_v47 = vpack.c.bf16 %v2463_v1, %v2462_v61  ;;  %v2417_v3 = vadd.f32 %v5997_v8, %v2395_v28  ;;  %v2397_v13 = vmul.f32 %v5986_v41, %v2375_v39  ;;  %v2467_v25 = vsel %vm2434_vm12, %v6013_v4, %v2451_v24 }
 0x7c0   :  { %v2465_v32 = vsel %vm2432_vm13, %v2416_v0, %v2449_v60  ;;  %v2398_v6 = vmul.f32 %v5986_v41, %v2376_v59  ;;  %v3259_v41 = vld [vmem:[%s6258_s23] ss:$0 sm:$0xff]  ;;  %s4334_s23 = smov [#allocation29]  }
 0x7c1   :  { %3664 = vmatprep.mubr.bf16.mxu1 %v2474_v47  ;;  %v2475_v5 = vpack.c.bf16 %v2465_v32, %v2464_v21  ;;  %vm2433_vm14 = vcmp.ge.f32.partialorder %v2417_v3, 0.0  ;;  %v2450_v45 = vmul.f32 %v5988_v9, %v2417_v3  ;;  %v2419_v35 = vadd.f32 %v5997_v8, %v2397_v13  ;;  %s3127_s2 = sshll.u32 %s4334_s23, 4  ;;  %s3128_s2 = int_to_ptr.vmem [resolvable:$true] %s3127_s2 }
 0x7c2   :  { %v2420_v40 = vadd.f32 %v5997_v8, %v2398_v6  ;;  %s4203_s3 = scalar_lea.vmem %s3128_s2, 1024  ;;  %p4208_p0 = scmp.lt.s32.totalorder %s3128_s2, %s3128_s2 }
 0x7c3   :  { %v2466_v19 = vsel %vm2433_vm14, %v2417_v3, %v2450_v45  ;;  %vm2435_vm15 = vcmp.ge.f32.partialorder %v2419_v35, 0.0  ;;  %v2452_v11 = vmul.f32 %v5988_v9, %v2419_v35  ;;  %p4204_p13 = scmp.ne.s32.totalorder %s3128_s2, %s4203_s3  ;;  %p4209_p1 = scmp.lt.s32.totalorder %s4203_s3, %s4203_s3 }
 0x7c4   :  { %v2476_v34 = vpack.c.bf16 %v2467_v25, %v2466_v19  ;;  %vm2436_vm0 = vcmp.ge.f32.partialorder %v2420_v40, 0.0  ;;  %v2453_v63 = vmul.f32 %v5988_v9, %v2420_v40  ;;  %v3012_v25 = vmul.f32 %v5902_v37, %v5902_v37 }
 0x7c5   :  { %v2468_v4 = vsel %vm2435_vm15, %v2419_v35, %v2452_v11  ;;  %p4210_p2 = por %p4209_p1, %p4208_p0 }
 0x7c6   :  { %3665 = vmatmul.mubr.bf16.gmra.mrb[72].mxu1 %v2475_v5  ;;  %v2469_v2 = vsel %vm2436_vm0, %v2420_v40, %v2453_v63  ;;  %v3013_v5 = vmul.f32 %v5889_v36, %v5889_v36 }
 0x7c7   :  { %3668 = vmatprep.mubr.bf16.mxu1 %v2476_v34  ;;  %v2477_v26 = vpack.c.bf16 %v2469_v2, %v2468_v4  ;;  %p4211_p3 = pnand %p4210_p2, %p4204_p13 }
 0x7ce   :  { %3669 = vmatmul.mubr.bf16.gmra.mrb[76].mxu1 %v2477_v26 }
 0x889   :  { %v3658_v23 = vpop.f32.mrb[64].mxu1 }
 0x88a   :  { %v6075_v55 = vadd.f32 %v3658_v23, %v3259_v41  ;;  %v2583_v8 = vpop.f32.mrb[65].mxu1 }
 0x88b   :  { %v3659_v43 = vpop.f32.mrb[66].mxu1  ;;  %v6077_v38 = vadd.f32 %v3259_v41, %v2583_v8 }
 0x88c   :  { %v6079_v49 = vadd.f32 %v3659_v43, %v3259_v41  ;;  %v2586_v9 = vpop.f32.mrb[67].mxu1  ;;  %v2824_v44 = vmul.f32 %v6075_v55, %v6075_v55 }
 0x88d   :  { %v6083_v15 = vadd.f32 %v3259_v41, %v2586_v9  ;;  %v2822_v29 = vmul.f32 %v6077_v38, %v6077_v38 }
 0x88e   :  { %2842 = vadd.xlane.f32.xlu0 %v2824_v44  ;;  %v2825_v16 = vmul.f32 %v6079_v49, %v6079_v49 }
 0x88f   :  { %v2823_v7 = vmul.f32 %v6083_v15, %v6083_v15 }
 0x890   :  { %2844 = vadd.xlane.f32.xlu1 %v2825_v16 }
 0x891   :  { %v3662_v62 = vpop.f32.mrb[68].mxu1 }
 0x892   :  { %v6089_v33 = vadd.f32 %v3662_v62, %v3259_v41  ;;  %v2599_v56 = vpop.f32.mrb[69].mxu1  ;;  %2838 = vadd.xlane.f32.xlu0 %v2822_v29 }
 0x893   :  { %v3663_v50 = vpop.f32.mrb[70].mxu1  ;;  %v6093_v52 = vadd.f32 %v3259_v41, %v2599_v56 }
 0x894   :  { %v6095_v27 = vadd.f32 %v3663_v50, %v3259_v41  ;;  %v2602_v18 = vpop.f32.mrb[71].mxu1  ;;  %2840 = vadd.xlane.f32.xlu1 %v2823_v7  ;;  %v2828_v42 = vmul.f32 %v6089_v33, %v6089_v33 }
 0x895   :  { %v6099_v14 = vadd.f32 %v3259_v41, %v2602_v18  ;;  %v2826_v51 = vmul.f32 %v6093_v52, %v6093_v52 }
 0x896   :  { %2850 = vadd.xlane.f32.xlu0 %v2828_v42  ;;  %v2829_v22 = vmul.f32 %v6095_v27, %v6095_v27 }
 0x897   :  { %v2827_v53 = vmul.f32 %v6099_v14, %v6099_v14 }
 0x898   :  { %2852 = vadd.xlane.f32.xlu1 %v2829_v22 }
 0x899   :  { %v3666_v17 = vpop.f32.mrb[72].mxu1 }
 0x89a   :  { %v6105_v10 = vadd.f32 %v3666_v17, %v3259_v41  ;;  %v2615_v31 = vpop.f32.mrb[73].mxu1  ;;  %2846 = vadd.xlane.f32.xlu0 %v2826_v51 }
 0x89b   :  { %v3667_v48 = vpop.f32.mrb[74].mxu1  ;;  %v6109_v54 = vadd.f32 %v3259_v41, %v2615_v31 }
 0x89c   :  { %v6111_v30 = vadd.f32 %v3667_v48, %v3259_v41  ;;  %v2618_v58 = vpop.f32.mrb[75].mxu1  ;;  %2848 = vadd.xlane.f32.xlu1 %v2827_v53  ;;  %v2832_v24 = vmul.f32 %v6105_v10, %v6105_v10 }
 0x89d   :  { %v6115_v20 = vadd.f32 %v3259_v41, %v2618_v58  ;;  %v2830_v46 = vmul.f32 %v6109_v54, %v6109_v54 }
 0x89e   :  { %2858 = vadd.xlane.f32.xlu0 %v2832_v24  ;;  %v2833_v12 = vmul.f32 %v6111_v30, %v6111_v30 }
 0x89f   :  { %v2831_v28 = vmul.f32 %v6115_v20, %v6115_v20 }
 0x8a0   :  { %2860 = vadd.xlane.f32.xlu1 %v2833_v12 }
 0x8a1   :  { %v3670_v0 = vpop.f32.mrb[76].mxu1 }
 0x8a2   :  { %v6121_v57 = vadd.f32 %v3670_v0, %v3259_v41  ;;  %v2631_v61 = vpop.f32.mrb[77].mxu1  ;;  %2854 = vadd.xlane.f32.xlu0 %v2830_v46 }
 0x8a3   :  { %v3671_v39 = vpop.f32.mrb[78].mxu1  ;;  %v6125_v1 = vadd.f32 %v3259_v41, %v2631_v61 }
 0x8a4   :  { %v6127_v60 = vadd.f32 %v3671_v39, %v3259_v41  ;;  %v2634_v21 = vpop.f32.mrb[79].mxu1  ;;  %2856 = vadd.xlane.f32.xlu1 %v2831_v28  ;;  %v2836_v47 = vmul.f32 %v6121_v57, %v6121_v57 }
 0x8a5   :  { %v6131_v3 = vadd.f32 %v3259_v41, %v2634_v21  ;;  %v2834_v13 = vmul.f32 %v6125_v1, %v6125_v1 }
 0x8a6   :  { %2866 = vadd.xlane.f32.xlu0 %v2836_v47  ;;  %v2837_v59 = vmul.f32 %v6127_v60, %v6127_v60 }
 0x8a7   :  { %v2835_v32 = vmul.f32 %v6131_v3, %v6131_v3 }
 0x8a8   :  { %2868 = vadd.xlane.f32.xlu1 %v2837_v59 }
 0x8aa   :  { %2862 = vadd.xlane.f32.xlu0 %v2834_v13 }
 0x8ac   :  { %2864 = vadd.xlane.f32.xlu1 %v2835_v32 }
 0x8ae   :  { %3042 = vadd.xlane.f32.xlu0 %v3012_v25 }
 0x8b0   :  { %3044 = vadd.xlane.f32.xlu1 %v3013_v5 }
 0x8b1   :  { %4214 = shalt.err (!%p4211_p3)
}
 0x8b2   :  { %s4215_s28 = scalar_lea.hbm %s6261_s26, 1024 }
 0x8b3   :  { %p4216_p4 = scmp.ne.s32.totalorder %s6261_s26, %s4215_s28  ;;  %p4219_p5 = scmp.lt.u32.totalorder %s4215_s28, %s6261_s26 }
 0x8b5   :  { %p4221_p6 = pnand %p4219_p5, %p4216_p4 }
 0x8b7   :  { %4224 = shalt.err (!%p4221_p6)
}
 0x8b8   :  { %3133 = dma.vmem_to_hbm [thread:$0]  %s3128_s2, 1024, %s6261_s26, [#allocation30], %s4323_s15, %s4323_s15, %s4324_s9  }
 0x8b9   :  { %s4225_s16 = scalar_lea.vmem %s6143_s13, 2048  ;;  %p4230_p8 = scmp.lt.s32.totalorder %s6143_s13, %s6143_s13 }
 0x8ba   :  { %p4226_p7 = scmp.ne.s32.totalorder %s6143_s13, %s4225_s16  ;;  %p4231_p9 = scmp.lt.s32.totalorder %s4225_s16, %s4225_s16 }
 0x8bc   :  { %p4232_p10 = por %p4231_p9, %p4230_p8 }
 0x8be   :  { %p4233_p11 = pnand %p4232_p10, %p4226_p7 }
 0x8c0   :  { %4236 = shalt.err (!%p4233_p11)
}
 0x8c1   :  { %s4237_s17 = scalar_lea.hbm %s6260_s25, 2048 }
 0x8c2   :  { %p4238_p12 = scmp.ne.s32.totalorder %s6260_s25, %s4237_s17  ;;  %p4241_p13 = scmp.lt.u32.totalorder %s4237_s17, %s6260_s25 }
 0x8c4   :  { %p4243_p0 = pnand %p4241_p13, %p4238_p12 }
 0x8c6   :  { %4246 = shalt.err (!%p4243_p0)
}
 0x8c7   :  { %s4336_s26 = smov 128   ;;  %s4337_s5 = smov 8  }
 0x8c8   :  { %3121 = dma.vmem_to_hbm [thread:$0]  %s6143_s13, 2048, %s6260_s25, [#allocation4], %s4336_s26, %s4336_s26, %s4337_s5  }
 0x8c9   :  { %s4338_s25 = smov [#allocation31]   ;;  %s4339_s23 = smov [#allocation32]  }
 0x8ca   :  { %s3139_s21 = sshll.u32 %s4338_s25, 4  ;;  %s3151_s2 = sshll.u32 %s4339_s23, 4  ;;  %s3140_s21 = int_to_ptr.vmem [resolvable:$true] %s3139_s21  ;;  %s6198_s2 = int_to_ptr.vmem [resolvable:$true] %s3151_s2 }
 0x8cb   :  { %s4247_s12 = scalar_lea.vmem %s3140_s21, 1024  ;;  %p4252_p2 = scmp.lt.s32.totalorder %s3140_s21, %s3140_s21 }
 0x8cc   :  { %p4248_p1 = scmp.ne.s32.totalorder %s3140_s21, %s4247_s12  ;;  %p4253_p3 = scmp.lt.s32.totalorder %s4247_s12, %s4247_s12 }
 0x8ce   :  { %p4254_p4 = por %p4253_p3, %p4252_p2 }
 0x8d0   :  { %p4255_p5 = pnand %p4254_p4, %p4248_p1 }
 0x91b   :  { %v2843_v45 = vpop.xlane.xlu0 %2842 }
 0x91c   :  { %v2872_v6 = vmax.f32 %v2843_v45, 1e-24 }
 0x91d   :  { %v2845_v35 = vpop.xlane.xlu1 %2844 }
 0x91e   :  { %3817 = vrsqrt.f32 %v2872_v6  ;;  %v2873_v19 = vmax.f32 %v2845_v35, 1e-24 }
 0x91f   :  { %v2839_v40 = vpop.xlane.xlu0 %2838 }
 0x920   :  { %3819 = vrsqrt.f32 %v2873_v19  ;;  %v2870_v34 = vmax.f32 %v2839_v40, 1e-24 }
 0x921   :  { %v2841_v11 = vpop.xlane.xlu1 %2840 }
 0x922   :  { %3821 = vrsqrt.f32 %v2870_v34  ;;  %v2871_v63 = vmax.f32 %v2841_v11, 1e-24 }
 0x923   :  { %v2851_v4 = vpop.xlane.xlu0 %2850 }
 0x924   :  { %3823 = vrsqrt.f32 %v2871_v63  ;;  %v2876_v2 = vmax.f32 %v2851_v4, 1e-24 }
 0x925   :  { %v2853_v26 = vpop.xlane.xlu1 %2852 }
 0x926   :  { %3825 = vrsqrt.f32 %v2876_v2  ;;  %v2877_v41 = vmax.f32 %v2853_v26, 1e-24 }
 0x927   :  { %v2847_v23 = vpop.xlane.xlu0 %2846 }
 0x928   :  { %v3818_v8 = vpop.eup %3817  ;;  %3827 = vrsqrt.f32 %v2877_v41  ;;  %v2874_v43 = vmax.f32 %v2847_v23, 1e-24 }
 0x929   :  { %v2849_v9 = vpop.xlane.xlu1 %2848  ;;  %v2904_v29 = vmul.f32 %v3818_v8, %v6075_v55 }
 0x92a   :  { %v3820_v44 = vpop.eup %3819  ;;  %3829 = vrsqrt.f32 %v2874_v43  ;;  %v2875_v16 = vmax.f32 %v2849_v9, 1e-24 }
 0x92b   :  { %v2905_v62 = vmul.f32 %v3820_v44, %v6079_v49  ;;  %v2859_v56 = vpop.xlane.xlu0 %2858 }
 0x92c   :  { %v3822_v7 = vpop.eup %3821  ;;  %3831 = vrsqrt.f32 %v2875_v16  ;;  %v2880_v50 = vmax.f32 %v2859_v56, 1e-24 }
 0x92d   :  { %v3380_v18 = vpack.c.bf16 %v2905_v62, %v2904_v29  ;;  %v2861_v42 = vpop.xlane.xlu1 %2860  ;;  %v2902_v17 = vmul.f32 %v3822_v7, %v6077_v38 }
 0x92e   :  { %v3824_v22 = vpop.eup %3823  ;;  %3833 = vrsqrt.f32 %v2880_v50  ;;  %v2881_v51 = vmax.f32 %v2861_v42, 1e-24 }
 0x92f   :  { %3419 = vst [vmem:[#allocation31 + $0x8] sm:$0xff] %v3380_v18   ;;  %v2903_v31 = vmul.f32 %v3824_v22, %v6083_v15  ;;  %v2855_v53 = vpop.xlane.xlu0 %2854 }
 0x930   :  { %v3826_v48 = vpop.eup %3825  ;;  %3835 = vrsqrt.f32 %v2881_v51  ;;  %v2878_v55 = vmax.f32 %v2855_v53, 1e-24 }
 0x931   :  { %v3375_v58 = vpack.c.bf16 %v2903_v31, %v2902_v17  ;;  %v2857_v49 = vpop.xlane.xlu1 %2856  ;;  %v2908_v46 = vmul.f32 %v3826_v48, %v6089_v33 }
 0x932   :  { %v3828_v24 = vpop.eup %3827  ;;  %3837 = vrsqrt.f32 %v2878_v55  ;;  %v2879_v12 = vmax.f32 %v2857_v49, 1e-24 }
 0x933   :  { %3376 = vst [vmem:[#allocation31] sm:$0xff] %v3375_v58   ;;  %v2909_v0 = vmul.f32 %v3828_v24, %v6095_v27  ;;  %v2867_v61 = vpop.xlane.xlu0 %2866 }
 0x934   :  { %v3830_v28 = vpop.eup %3829  ;;  %3839 = vrsqrt.f32 %v2879_v12  ;;  %v2884_v38 = vmax.f32 %v2867_v61, 1e-24 }
 0x935   :  { %v3390_v39 = vpack.c.bf16 %v2909_v0, %v2908_v46  ;;  %v2869_v15 = vpop.xlane.xlu1 %2868  ;;  %v2906_v59 = vmul.f32 %v3830_v28, %v6093_v52 }
 0x936   :  { %v3832_v21 = vpop.eup %3831  ;;  %3841 = vrsqrt.f32 %v2884_v38  ;;  %v2885_v47 = vmax.f32 %v2869_v15, 1e-24 }
 0x937   :  { %3421 = vst [vmem:[#allocation31 + $0x18] sm:$0xff] %v3390_v39   ;;  %v2907_v13 = vmul.f32 %v3832_v21, %v6099_v14  ;;  %v2863_v32 = vpop.xlane.xlu0 %2862 }
 0x938   :  { %v3834_v25 = vpop.eup %3833  ;;  %3843 = vrsqrt.f32 %v2885_v47  ;;  %v2882_v33 = vmax.f32 %v2863_v32, 1e-24 }
 0x939   :  { %v3385_v5 = vpack.c.bf16 %v2907_v13, %v2906_v59  ;;  %v2865_v27 = vpop.xlane.xlu1 %2864  ;;  %v2912_v35 = vmul.f32 %v3834_v25, %v6105_v10 }
 0x93a   :  { %v3836_v45 = vpop.eup %3835  ;;  %3845 = vrsqrt.f32 %v2882_v33  ;;  %v2883_v6 = vmax.f32 %v2865_v27, 1e-24 }
 0x93b   :  { %3420 = vst [vmem:[#allocation31 + $0x10] sm:$0xff] %v3385_v5   ;;  %v2913_v19 = vmul.f32 %v3836_v45, %v6111_v30  ;;  %v3043_v40 = vpop.xlane.xlu0 %3042 }
 0x93c   :  { %v3838_v34 = vpop.eup %3837  ;;  %3847 = vrsqrt.f32 %v2883_v6  ;;  %v3060_v52 = vmax.f32 %v3043_v40, 1e-24 }
 0x93d   :  { %v3400_v11 = vpack.c.bf16 %v2913_v19, %v2912_v35  ;;  %v3045_v14 = vpop.xlane.xlu1 %3044  ;;  %v2910_v2 = vmul.f32 %v3838_v34, %v6109_v54 }
 0x93e   :  { %v3840_v63 = vpop.eup %3839  ;;  %3849 = vrsqrt.f32 %v3060_v52  ;;  %v3061_v4 = vmax.f32 %v3045_v14, 1e-24 }
 0x93f   :  { %3423 = vst [vmem:[#allocation31 + $0x28] sm:$0xff] %v3400_v11   ;;  %v2911_v26 = vmul.f32 %v3840_v63, %v6115_v20 }
 0x940   :  { %v3842_v41 = vpop.eup %3841  ;;  %3851 = vrsqrt.f32 %v3061_v4 }
 0x941   :  { %v3395_v23 = vpack.c.bf16 %v2911_v26, %v2910_v2  ;;  %v2916_v30 = vmul.f32 %v3842_v41, %v6121_v57 }
 0x942   :  { %v3844_v10 = vpop.eup %3843 }
 0x943   :  { %3422 = vst [vmem:[#allocation31 + $0x20] sm:$0xff] %v3395_v23   ;;  %v2917_v8 = vmul.f32 %v3844_v10, %v6127_v60 }
 0x944   :  { %v3846_v43 = vpop.eup %3845 }
 0x945   :  { %v3410_v9 = vpack.c.bf16 %v2917_v8, %v2916_v30  ;;  %v2914_v16 = vmul.f32 %v3846_v43, %v6125_v1 }
 0x946   :  { %v3848_v44 = vpop.eup %3847 }
 0x947   :  { %3425 = vst [vmem:[#allocation31 + $0x38] sm:$0xff] %v3410_v9   ;;  %v2915_v54 = vmul.f32 %v3848_v44, %v6131_v3 }
 0x948   :  { %v3850_v20 = vpop.eup %3849 }
 0x949   :  { %v3405_v29 = vpack.c.bf16 %v2915_v54, %v2914_v16  ;;  %v3092_v62 = vmul.f32 %v3850_v20, %v5902_v37 }
 0x94a   :  { %v3852_v57 = vpop.eup %3851 }
 0x94b   :  { %3424 = vst [vmem:[#allocation31 + $0x30] sm:$0xff] %v3405_v29   ;;  %3108 = vst [vmem:[#allocation32 + $0x70] sm:$0xff] %v3092_v62  ;;  %v3093_v60 = vmul.f32 %v3852_v57, %v5889_v36 }
 0x94c   :  { %4258 = shalt.err (!%p4255_p5)
}
 0x94d   :  { %s4259_s29 = scalar_lea.hbm %s6262_s27, 1024 }
 0x94e   :  { %p4260_p6 = scmp.ne.s32.totalorder %s6262_s27, %s4259_s29  ;;  %p4263_p7 = scmp.lt.u32.totalorder %s4259_s29, %s6262_s27 }
 0x950   :  { %p4265_p8 = pnand %p4263_p7, %p4260_p6 }
 0x952   :  { %4268 = shalt.err (!%p4265_p8)
}
 0x953   :  { %3145 = dma.vmem_to_hbm [thread:$0]  %s3140_s21, 1024, %s6262_s27, [#allocation30], %s4323_s15, %s4323_s15, %s4324_s9   ;;  %3109 = vst [vmem:[#allocation32 + $0x78] sm:$0xff] %v3093_v60 }
 0x954   :  { %s4269_s10 = scalar_lea.vmem %s6198_s2, 2048  ;;  %p4274_p10 = scmp.lt.s32.totalorder %s6198_s2, %s6198_s2 }
 0x955   :  { %p4270_p9 = scmp.ne.s32.totalorder %s6198_s2, %s4269_s10  ;;  %p4275_p11 = scmp.lt.s32.totalorder %s4269_s10, %s4269_s10 }
 0x957   :  { %p4276_p12 = por %p4275_p11, %p4274_p10 }
 0x959   :  { %p4277_p13 = pnand %p4276_p12, %p4270_p9 }
 0x95b   :  { %4280 = shalt.err (!%p4277_p13)
}
 0x95c   :  { %s6305_s14 = sld [smem:[#allocation59_spill]] }
 0x962   :  { %s4281_s22 = scalar_lea.hbm %s6305_s14, 2048 }
 0x963   :  { %p4282_p0 = scmp.ne.s32.totalorder %s6305_s14, %s4281_s22  ;;  %p4285_p1 = scmp.lt.u32.totalorder %s4281_s22, %s6305_s14 }
 0x965   :  { %p4287_p2 = pnand %p4285_p1, %p4282_p0 }
 0x967   :  { %4290 = shalt.err (!%p4287_p2)
}
 0x968   :  { %3157 = dma.vmem_to_hbm [thread:$0]  %s6198_s2, 2048, %s6305_s14, [#allocation33], %s4336_s26, %s4336_s26, %s4337_s5  }
 0x969   :  { %4309 = dma.done.wait [#allocation4], 2048  }
 0x96a   :  { %4310 = vsyncadd [#allocation4], 4294965248 }
 0x96b   :  { %4311 = dma.done.wait [#allocation30], 2048  }
 0x96c   :  { %4312 = vsyncadd [#allocation30], 4294965248 }
 0x96d   :  { %4313 = dma.done.wait [#allocation33], 2048  }
 0x96e   :  { %4314 = vsyncadd [#allocation33], 4294965248 }
 0x96f   :  { %3170 = vsyncpa [#allocation3], 1 }
 0x970   :  { %3171 = vsyncpa [#allocation7], 1 }
 0x971   :  { %3172 = vsyncpa [#allocation10], 1 }
 0x972   :  { %3173 = vsyncpa [#allocation13], 1 }
 0x973   :  { %3174 = vsyncpa [#allocation16], 1 }
 0x974   :  { %3175 = vsyncpa [#allocation19], 1 }
 0x975   :  { %3176 = vsyncpa [#allocation22], 1 }
 0x976   :  { %3177 = vsyncpa [#allocation25], 1 }
 0x977   :  { %3178 = vsyncpa [#allocation4], 1 }
 0x978   :  { %3179 = vsyncpa [#allocation30], 1 }
 0x979   :  { %3180 = vsyncpa [#allocation33], 1 }
 0x97a   :  { %3181 = vsyncpa [#allocation5], 1 }

</bundles_post_ra>
